<compile_context>
chip_gen: v5e
topology: v5e:2x2
jax: 0.10.0
libtpu: 0.0.40
codegen_flags: <defaults>
</compile_context>

<pallas_src>
import jax
import jax.numpy as jnp
from jax.experimental import pallas as pl
from jax.experimental.pallas import tpu as pltpu

EPS = 1e-5                      # nn.BatchNorm2d default eps
# Per-step footprint at production shapes (C=256, 56x56) is ~20-25 MiB; 40 MiB
# leaves headroom on v7x's 64 MiB physical VMEM and is well inside v5e/v6e's
# 128 MiB.
VMEM_LIMIT = 40 * 1024 * 1024


# ----------------------------- kernel bodies ------------------------------ #

def _zero_halo(xcol_ref, H, W, C):
    """Zero the padding cells the fill never writes (top/bottom halo rows;
    left column of the dx=0 lane block, right column of the dx=2 lane block).
    Done unconditionally each step: it is tiny next to the fill and stays
    correct when the batch axis is megacore-sharded."""
    zrow = jnp.zeros((1, W, 3 * C), jnp.bfloat16)
    xcol_ref[0:1, :, :] = zrow
    xcol_ref[H + 1:H + 2, :, :] = zrow
    zcol = jnp.zeros((H + 2, 1, C), jnp.bfloat16)
    xcol_ref[:, 0:1, 0:C] = zcol
    xcol_ref[:, W - 1:W, 2 * C:3 * C] = zcol


def _conv3x3_with_stats(xb, w_ref, y_ref, stats_ref, xcol_ref, acc_ref):
    """SAME-padded 3x3 conv of one (H, W, C) bf16 image + per-sample BN stats.

    xcol_ref : (H+2, W, 3C) bf16  dx-expanded scratch (halo pre-zeroed)
    acc_ref  : (H*W, C)     f32   explicit accumulator
    y_ref    : (1, H, W, C) bf16  conv output block
    stats_ref: (1, 2, C)    f32   row 0 = sum(y), row 1 = sum((y - mean)^2)
    """
    H, W, C = xb.shape
    HW = H * W

    # dx-expanded fill: 3 strip copies. Lane blocks [0:C]/[C:2C]/[2C:3C] are
    # the left / center / right taps.
    xcol_ref[1:H + 1, :, C:2 * C] = xb                           # dx = 1
    xcol_ref[1:H + 1, 1:W, 0:C] = xb[:, 0:W - 1, :]              # dx = 0
    xcol_ref[1:H + 1, 0:W - 1, 2 * C:3 * C] = xb[:, 1:W, :]      # dx = 2

    # 3 bf16 MXU matmuls (HW, 3C) x (3C, C), f32 accumulation in VMEM scratch.
    # dy slice is a leading-axis view; the (H,W)->(HW) merge is a relabel
    # when W % 16 == 0 (bf16 sublane tile).
    for dy in range(3):
        lhs = xcol_ref[dy:dy + H, :, :].reshape(HW, 3 * C)
        p = jax.lax.dot_general(
            lhs, w_ref[dy],
            dimension_numbers=(((1,), (0,)), ((), ())),
            preferred_element_type=jnp.float32)
        if dy == 0:
            acc_ref[...] = p
        else:
            acc_ref[...] += p

    y = acc_ref[...]                                             # (HW, C) f32

    # Per-sample BN partials: two-pass (mean, then centered M2) for numerical
    # stability; combined across samples in the wrapper (Chan's formula).
    s = jnp.sum(y, axis=0, keepdims=True)                        # (1, C)
    mu = s * (1.0 / float(HW))
    d = y - mu
    m2 = jnp.sum(d * d, axis=0, keepdims=True)                   # (1, C)
    stats_ref[0:1, 0:1, :] = s.reshape(1, 1, C)
    stats_ref[0:1, 1:2, :] = m2.reshape(1, 1, C)

    y_ref[...] = y.reshape(1, H, W, C).astype(y_ref.dtype)


def _conv1_kernel(x_ref, w_ref, y_ref, stats_ref, xcol_ref, acc_ref):
    _, H, W, C = x_ref.shape
    _zero_halo(xcol_ref, H, W, C)
    _conv3x3_with_stats(x_ref[0], w_ref, y_ref, stats_ref, xcol_ref, acc_ref)


def _bn_relu_conv2_kernel(y1_ref, scale_ref, shift_ref, w_ref,
                          y_ref, stats_ref, xcol_ref, acc_ref):
    _, H, W, C = y1_ref.shape
    _zero_halo(xcol_ref, H, W, C)
    a = y1_ref[0].astype(jnp.float32) * scale_ref[...] + shift_ref[...]
    xb = jnp.maximum(a, 0.0).astype(jnp.bfloat16)
    _conv3x3_with_stats(xb, w_ref, y_ref, stats_ref, xcol_ref, acc_ref)


def _bn_add_relu_kernel(y2_ref, x_ref, scale_ref, shift_ref, out_ref):
    y = y2_ref[...].astype(jnp.float32) * scale_ref[...] + shift_ref[...]
    y = y + x_ref[...].astype(jnp.float32)
    out_ref[...] = jnp.maximum(y, 0.0).astype(out_ref.dtype)


# ------------------------------- wrapper ---------------------------------- #

def _combine_stats(stats, hw):
    """Chan's parallel-variance combine of per-sample (sum, centered M2)."""
    total = float(stats.shape[0] * hw)
    s = stats[:, 0, :]                                           # (N, C)
    m2 = stats[:, 1, :]                                          # (N, C)
    mean_i = s / float(hw)
    mean = jnp.sum(s, axis=0, keepdims=True) / total             # (1, C)
    m2_tot = (jnp.sum(m2, axis=0, keepdims=True)
              + float(hw) * jnp.sum((mean_i - mean) ** 2, axis=0, keepdims=True))
    var = m2_tot / total                    # biased variance (BN training mode)
    return mean, var


def _bn_scale_shift(mean, var, gamma, beta):
    scale = gamma * jax.lax.rsqrt(var + EPS)
    shift = beta - mean * scale
    return scale, shift


@jax.jit
def resblock_forward(x_nhwc, params):
    N, H, W, C = x_nhwc.shape
    HW = H * W
    x_bf = x_nhwc.astype(jnp.bfloat16)
    # HWIO (3,3,C,C) -> (3, 3C, C): rows ordered dx*C + i; bf16 MXU operands.
    w1 = params["w1"].reshape(3, 3 * C, C).astype(jnp.bfloat16)
    w2 = params["w2"].reshape(3, 3 * C, C).astype(jnp.bfloat16)

    act_spec = pl.BlockSpec((1, H, W, C), lambda n: (n, 0, 0, 0))
    w_spec = pl.BlockSpec((3, 3 * C, C), lambda n: (0, 0, 0))     # resident
    vec_spec = pl.BlockSpec((1, C), lambda n: (0, 0))             # resident
    stats_spec = pl.BlockSpec((1, 2, C), lambda n: (n, 0, 0))
    scratch = [pltpu.VMEM((H + 2, W, 3 * C), jnp.bfloat16),       # xcol
               pltpu.VMEM((HW, C), jnp.float32)]                  # f32 acc
    cparams = pltpu.CompilerParams(
        dimension_semantics=("parallel",),       # v7x: shard batch over 2 TCs
        vmem_limit_bytes=VMEM_LIMIT)
    conv_out_shape = (jax.ShapeDtypeStruct((N, H, W, C), jnp.bfloat16),
                      jax.ShapeDtypeStruct((N, 2, C), jnp.float32))

    # Pass 1: conv1 (bias folded into BN) + per-sample BN1 stats.
    y1, st1 = pl.pallas_call(
        _conv1_kernel,
        out_shape=conv_out_shape,
        grid_spec=pltpu.PrefetchScalarGridSpec(
            num_scalar_prefetch=0, grid=(N,),
            in_specs=[act_spec, w_spec],
            out_specs=(act_spec, stats_spec),
            scratch_shapes=scratch),
        compiler_params=cparams,
    )(x_bf, w1)

    mean1, var1 = _combine_stats(st1, HW)
    scale1, shift1 = _bn_scale_shift(mean1, var1, params["g1"], params["be1"])

    # Pass 2: bn1 affine + relu + conv2 + per-sample BN2 stats.
    y2, st2 = pl.pallas_call(
        _bn_relu_conv2_kernel,
        out_shape=conv_out_shape,
        grid_spec=pltpu.PrefetchScalarGridSpec(
            num_scalar_prefetch=0, grid=(N,),
            in_specs=[act_spec, vec_spec, vec_spec, w_spec],
            out_specs=(act_spec, stats_spec),
            scratch_shapes=scratch),
        compiler_params=cparams,
    )(y1, scale1, shift1, w2)

    mean2, var2 = _combine_stats(st2, HW)
    scale2, shift2 = _bn_scale_shift(mean2, var2, params["g2"], params["be2"])

    # Pass 3: bn2 affine + residual + relu (pointwise).
    out = pl.pallas_call(
        _bn_add_relu_kernel,
        out_shape=jax.ShapeDtypeStruct((N, H, W, C), jnp.float32),
        grid_spec=pltpu.PrefetchScalarGridSpec(
            num_scalar_prefetch=0, grid=(N,),
            in_specs=[act_spec, act_spec, vec_spec, vec_spec],
            out_specs=act_spec),
        compiler_params=cparams,
    )(y2, x_bf, scale2, shift2)
    return out


# ------------------------------ reference --------------------------------- #

def resblock_reference(x_nhwc, params):
    # Pure-JAX f32 reference, faithful to the PyTorch module (conv WITH bias,
    # training-mode BN).
    def conv(x, w, b):
        y = jax.lax.conv_general_dilated(
            x, w, window_strides=(1, 1), padding="SAME",
            dimension_numbers=("NHWC", "HWIO", "NHWC"))
        return y + b.reshape(1, 1, 1, -1)

    def bn(y, g, be):
        mu = jnp.mean(y, axis=(0, 1, 2), keepdims=True)
        var = jnp.mean((y - mu) ** 2, axis=(0, 1, 2), keepdims=True)
        return (y - mu) * jax.lax.rsqrt(var + EPS) * g.reshape(1, 1, 1, -1) \
            + be.reshape(1, 1, 1, -1)

    y = jnp.maximum(bn(conv(x_nhwc, params["w1"], params["b1"]),
                       params["g1"], params["be1"]), 0.0)
    y = bn(conv(y, params["w2"], params["b2"]), params["g2"], params["be2"])
    return jnp.maximum(y + x_nhwc, 0.0)


def init_params(key, num_filters):
    C = num_filters
    k = jax.random.split(key, 6)
    scale = 1.0 / jnp.sqrt(9.0 * C)  # ~ kaiming-uniform scale for 3x3 conv
    return {
        "w1": jax.random.uniform(k[0], (3, 3, C, C), jnp.float32, -scale, scale),
        "b1": jax.random.uniform(k[1], (1, C), jnp.float32, -scale, scale),
        "g1": 1.0 + 0.1 * jax.random.normal(k[2], (1, C), jnp.float32),
        "be1": 0.1 * jax.random.normal(k[3], (1, C), jnp.float32),
        "w2": jax.random.uniform(k[4], (3, 3, C, C), jnp.float32, -scale, scale),
        "b2": jax.random.uniform(k[5], (1, C), jnp.float32, -scale, scale),
        "g2": jnp.ones((1, C), jnp.float32),
        "be2": jnp.zeros((1, C), jnp.float32),
    }


if __name__ == "__main__":
    key = jax.random.PRNGKey(0)
    # Small stand-in for num_filters=256 (don't benchmark at this shape).
    N, C, H, W = 2, 8, 16, 16
    kx, kp = jax.random.split(key)
    x_nchw = jax.random.normal(kx, (N, C, H, W), jnp.float32)   # PyTorch layout
    x_nhwc = jnp.transpose(x_nchw, (0, 2, 3, 1))                # kernel layout
    params = init_params(kp, C)

    out = jax.block_until_ready(resblock_forward(x_nhwc, params))
    ref = jax.block_until_ready(resblock_reference(x_nhwc, params))

    assert out.shape == (N, H, W, C)
    max_err = float(jnp.max(jnp.abs(out - ref)))
    rel_fro = float(jnp.linalg.norm(out - ref) / (jnp.linalg.norm(ref) + 1e-12))
    # bf16 conv operands / bf16 intermediate activations (f32 accumulation and
    # BN stats) -> loose elementwise tolerance plus a global relative check.
    assert jnp.allclose(out, ref, rtol=1e-1, atol=1e-1), \
        f"max abs err {max_err}, rel fro {rel_fro}"
    assert rel_fro < 5e-2, f"rel fro err {rel_fro}"
    print("KERNEL_OK")
</pallas_src>

<mosaic_0001>
module attributes {stable_mosaic.version = 11 : i64} {
  func.func @_conv1_kernel(%arg0: i32, %arg1: memref<1x16x16x8xbf16, #tpu.memory_space<vmem>>, %arg2: memref<3x24x8xbf16, #tpu.memory_space<vmem>>, %arg3: memref<1x16x16x8xbf16, #tpu.memory_space<vmem>>, %arg4: memref<1x2x8xf32, #tpu.memory_space<vmem>>, %arg5: memref<18x16x24xbf16, #tpu.memory_space<vmem>>, %arg6: memref<256x8xf32, #tpu.memory_space<vmem>>) attributes {dimension_semantics = [#tpu.dimension_semantics<parallel>], iteration_bounds = array<i64: 2>, scalar_prefetch = 0 : i64, scratch_operands = 2 : i64, tpu.core_type = #tpu.core_type<tc>, window_params = [{transform_indices = @transform_0, window_bounds = array<i64: 1, 16, 16, 8>}, {pipeline_mode = #tpu.pipeline_mode<synchronous>, transform_indices = @transform_1, window_bounds = array<i64: 3, 24, 8>}, {transform_indices = @transform_2, window_bounds = array<i64: 1, 16, 16, 8>}, {transform_indices = @transform_3, window_bounds = array<i64: 1, 2, 8>}]} {
    %cst = arith.constant 0.000000e+00 : bf16
    %0 = vector.broadcast %cst : bf16 to vector<1x16x24xbf16>
    %c0 = arith.constant 0 : index
    %c0_0 = arith.constant 0 : index
    %c0_1 = arith.constant 0 : index
    %1 = vector.load %arg5[%c0, %c0_0, %c0_1] : memref<18x16x24xbf16, #tpu.memory_space<vmem>>, vector<1x16x24xbf16>
    tpu.vector_store %arg5[%c0, %c0_0, %c0_1], %0 {strides = array<i32>} : memref<18x16x24xbf16, #tpu.memory_space<vmem>>, vector<1x16x24xbf16>,
    %c17 = arith.constant 17 : index
    %c0_2 = arith.constant 0 : index
    %c0_3 = arith.constant 0 : index
    %2 = vector.load %arg5[%c17, %c0_2, %c0_3] : memref<18x16x24xbf16, #tpu.memory_space<vmem>>, vector<1x16x24xbf16>
    tpu.vector_store %arg5[%c17, %c0_2, %c0_3], %0 {strides = array<i32>} : memref<18x16x24xbf16, #tpu.memory_space<vmem>>, vector<1x16x24xbf16>,
    %cst_4 = arith.constant 0.000000e+00 : bf16
    %3 = vector.broadcast %cst_4 : bf16 to vector<18x1x8xbf16>
    %c0_5 = arith.constant 0 : index
    %c0_6 = arith.constant 0 : index
    %c0_7 = arith.constant 0 : index
    %4 = vector.load %arg5[%c0_5, %c0_6, %c0_7] : memref<18x16x24xbf16, #tpu.memory_space<vmem>>, vector<18x1x8xbf16>
    tpu.vector_store %arg5[%c0_5, %c0_6, %c0_7], %3 {strides = array<i32>} : memref<18x16x24xbf16, #tpu.memory_space<vmem>>, vector<18x1x8xbf16>,
    %c0_8 = arith.constant 0 : index
    %c15 = arith.constant 15 : index
    %c16 = arith.constant 16 : index
    %5 = vector.load %arg5[%c0_8, %c15, %c16] : memref<18x16x24xbf16, #tpu.memory_space<vmem>>, vector<18x1x8xbf16>
    tpu.vector_store %arg5[%c0_8, %c15, %c16], %3 {strides = array<i32>} : memref<18x16x24xbf16, #tpu.memory_space<vmem>>, vector<18x1x8xbf16>,
    %c0_9 = arith.constant 0 : index
    %c0_10 = arith.constant 0 : index
    %c0_11 = arith.constant 0 : index
    %c0_12 = arith.constant 0 : index
    %6 = vector.load %arg1[%c0_9, %c0_10, %c0_11, %c0_12] : memref<1x16x16x8xbf16, #tpu.memory_space<vmem>>, vector<1x16x16x8xbf16>
    %7 = vector.shape_cast %6 : vector<1x16x16x8xbf16> to vector<16x16x8xbf16>
    %c1 = arith.constant 1 : index
    %c0_13 = arith.constant 0 : index
    %c8 = arith.constant 8 : index
    %8 = vector.load %arg5[%c1, %c0_13, %c8] : memref<18x16x24xbf16, #tpu.memory_space<vmem>>, vector<16x16x8xbf16>
    tpu.vector_store %arg5[%c1, %c0_13, %c8], %7 {strides = array<i32>} : memref<18x16x24xbf16, #tpu.memory_space<vmem>>, vector<16x16x8xbf16>,
    %9 = vector.extract_strided_slice %7 {offsets = [0, 0, 0], sizes = [16, 15, 8], strides = [1, 1, 1]} : vector<16x16x8xbf16> to vector<16x15x8xbf16>
    %c1_14 = arith.constant 1 : index
    %c1_15 = arith.constant 1 : index
    %c0_16 = arith.constant 0 : index
    %10 = vector.load %arg5[%c1_14, %c1_15, %c0_16] : memref<18x16x24xbf16, #tpu.memory_space<vmem>>, vector<16x15x8xbf16>
    tpu.vector_store %arg5[%c1_14, %c1_15, %c0_16], %9 {strides = array<i32>} : memref<18x16x24xbf16, #tpu.memory_space<vmem>>, vector<16x15x8xbf16>,
    %11 = vector.extract_strided_slice %7 {offsets = [0, 1, 0], sizes = [16, 15, 8], strides = [1, 1, 1]} : vector<16x16x8xbf16> to vector<16x15x8xbf16>
    %c1_17 = arith.constant 1 : index
    %c0_18 = arith.constant 0 : index
    %c16_19 = arith.constant 16 : index
    %12 = vector.load %arg5[%c1_17, %c0_18, %c16_19] : memref<18x16x24xbf16, #tpu.memory_space<vmem>>, vector<16x15x8xbf16>
    tpu.vector_store %arg5[%c1_17, %c0_18, %c16_19], %11 {strides = array<i32>} : memref<18x16x24xbf16, #tpu.memory_space<vmem>>, vector<16x15x8xbf16>,
    %c0_20 = arith.constant 0 : index
    %c0_21 = arith.constant 0 : index
    %c0_22 = arith.constant 0 : index
    %13 = vector.load %arg5[%c0_20, %c0_21, %c0_22] : memref<18x16x24xbf16, #tpu.memory_space<vmem>>, vector<16x16x24xbf16>
    %14 = vector.shape_cast %13 : vector<16x16x24xbf16> to vector<256x24xbf16>
    %c0_23 = arith.constant 0 : index
    %c0_24 = arith.constant 0 : index
    %c0_25 = arith.constant 0 : index
    %15 = vector.load %arg2[%c0_23, %c0_24, %c0_25] : memref<3x24x8xbf16, #tpu.memory_space<vmem>>, vector<1x24x8xbf16>
    %16 = vector.shape_cast %15 : vector<1x24x8xbf16> to vector<24x8xbf16>
    %cst_26 = arith.constant dense<0.000000e+00> : vector<256x8xf32>
    %17 = tpu.matmul %14, %16, %cst_26 {dimension_numbers = #tpu.dot_dimension_numbers<[1], [0], [0], [1], [0, 0, 1, 1], [], []>} : vector<256x24xbf16>, vector<24x8xbf16>, vector<256x8xf32> -> vector<256x8xf32>
    %c0_27 = arith.constant 0 : index
    %c0_28 = arith.constant 0 : index
    %18 = vector.load %arg6[%c0_27, %c0_28] : memref<256x8xf32, #tpu.memory_space<vmem>>, vector<256x8xf32>
    tpu.vector_store %arg6[%c0_27, %c0_28], %17 {strides = array<i32>} : memref<256x8xf32, #tpu.memory_space<vmem>>, vector<256x8xf32>,
    %c1_29 = arith.constant 1 : index
    %c0_30 = arith.constant 0 : index
    %c0_31 = arith.constant 0 : index
    %19 = vector.load %arg5[%c1_29, %c0_30, %c0_31] : memref<18x16x24xbf16, #tpu.memory_space<vmem>>, vector<16x16x24xbf16>
    %20 = vector.shape_cast %19 : vector<16x16x24xbf16> to vector<256x24xbf16>
    %c1_32 = arith.constant 1 : index
    %c0_33 = arith.constant 0 : index
    %c0_34 = arith.constant 0 : index
    %21 = vector.load %arg2[%c1_32, %c0_33, %c0_34] : memref<3x24x8xbf16, #tpu.memory_space<vmem>>, vector<1x24x8xbf16>
    %22 = vector.shape_cast %21 : vector<1x24x8xbf16> to vector<24x8xbf16>
    %cst_35 = arith.constant dense<0.000000e+00> : vector<256x8xf32>
    %23 = tpu.matmul %20, %22, %cst_35 {dimension_numbers = #tpu.dot_dimension_numbers<[1], [0], [0], [1], [0, 0, 1, 1], [], []>} : vector<256x24xbf16>, vector<24x8xbf16>, vector<256x8xf32> -> vector<256x8xf32>
    %c0_36 = arith.constant 0 : index
    %c0_37 = arith.constant 0 : index
    %24 = vector.load %arg6[%c0_36, %c0_37] : memref<256x8xf32, #tpu.memory_space<vmem>>, vector<256x8xf32>
    %25 = arith.addf %24, %23 : vector<256x8xf32>
    %c0_38 = arith.constant 0 : index
    %c0_39 = arith.constant 0 : index
    %26 = vector.load %arg6[%c0_38, %c0_39] : memref<256x8xf32, #tpu.memory_space<vmem>>, vector<256x8xf32>
    tpu.vector_store %arg6[%c0_38, %c0_39], %25 {strides = array<i32>} : memref<256x8xf32, #tpu.memory_space<vmem>>, vector<256x8xf32>,
    %c2 = arith.constant 2 : index
    %c0_40 = arith.constant 0 : index
    %c0_41 = arith.constant 0 : index
    %27 = vector.load %arg5[%c2, %c0_40, %c0_41] : memref<18x16x24xbf16, #tpu.memory_space<vmem>>, vector<16x16x24xbf16>
    %28 = vector.shape_cast %27 : vector<16x16x24xbf16> to vector<256x24xbf16>
    %c2_42 = arith.constant 2 : index
    %c0_43 = arith.constant 0 : index
    %c0_44 = arith.constant 0 : index
    %29 = vector.load %arg2[%c2_42, %c0_43, %c0_44] : memref<3x24x8xbf16, #tpu.memory_space<vmem>>, vector<1x24x8xbf16>
    %30 = vector.shape_cast %29 : vector<1x24x8xbf16> to vector<24x8xbf16>
    %cst_45 = arith.constant dense<0.000000e+00> : vector<256x8xf32>
    %31 = tpu.matmul %28, %30, %cst_45 {dimension_numbers = #tpu.dot_dimension_numbers<[1], [0], [0], [1], [0, 0, 1, 1], [], []>} : vector<256x24xbf16>, vector<24x8xbf16>, vector<256x8xf32> -> vector<256x8xf32>
    %c0_46 = arith.constant 0 : index
    %c0_47 = arith.constant 0 : index
    %32 = vector.load %arg6[%c0_46, %c0_47] : memref<256x8xf32, #tpu.memory_space<vmem>>, vector<256x8xf32>
    %33 = arith.addf %32, %31 : vector<256x8xf32>
    %c0_48 = arith.constant 0 : index
    %c0_49 = arith.constant 0 : index
    %34 = vector.load %arg6[%c0_48, %c0_49] : memref<256x8xf32, #tpu.memory_space<vmem>>, vector<256x8xf32>
    tpu.vector_store %arg6[%c0_48, %c0_49], %33 {strides = array<i32>} : memref<256x8xf32, #tpu.memory_space<vmem>>, vector<256x8xf32>,
    %c0_50 = arith.constant 0 : index
    %c0_51 = arith.constant 0 : index
    %35 = vector.load %arg6[%c0_50, %c0_51] : memref<256x8xf32, #tpu.memory_space<vmem>>, vector<256x8xf32>
    %cst_52 = arith.constant dense<0.000000e+00> : vector<8xf32>
    %36 = vector.multi_reduction <add>, %35, %cst_52 [0] : vector<256x8xf32> to vector<8xf32>
    %37 = vector.shape_cast %36 : vector<8xf32> to vector<1x8xf32>
    %cst_53 = arith.constant 3.906250e-03 : f32
    %38 = vector.broadcast %cst_53 : f32 to vector<1x8xf32>
    %39 = arith.mulf %37, %38 : vector<1x8xf32>
    %40 = vector.broadcast %39 : vector<1x8xf32> to vector<256x8xf32>
    %41 = arith.subf %35, %40 : vector<256x8xf32>
    %42 = arith.mulf %41, %41 : vector<256x8xf32>
    %cst_54 = arith.constant dense<0.000000e+00> : vector<8xf32>
    %43 = vector.multi_reduction <add>, %42, %cst_54 [0] : vector<256x8xf32> to vector<8xf32>
    %44 = vector.shape_cast %43 : vector<8xf32> to vector<1x8xf32>
    %45 = vector.shape_cast %37 : vector<1x8xf32> to vector<1x1x8xf32>
    %c0_55 = arith.constant 0 : index
    %c0_56 = arith.constant 0 : index
    %c0_57 = arith.constant 0 : index
    %46 = vector.load %arg4[%c0_55, %c0_56, %c0_57] : memref<1x2x8xf32, #tpu.memory_space<vmem>>, vector<1x1x8xf32>
    tpu.vector_store %arg4[%c0_55, %c0_56, %c0_57], %45 {strides = array<i32>} : memref<1x2x8xf32, #tpu.memory_space<vmem>>, vector<1x1x8xf32>,
    %47 = vector.shape_cast %44 : vector<1x8xf32> to vector<1x1x8xf32>
    %c0_58 = arith.constant 0 : index
    %c1_59 = arith.constant 1 : index
    %c0_60 = arith.constant 0 : index
    %48 = vector.load %arg4[%c0_58, %c1_59, %c0_60] : memref<1x2x8xf32, #tpu.memory_space<vmem>>, vector<1x1x8xf32>
    tpu.vector_store %arg4[%c0_58, %c1_59, %c0_60], %47 {strides = array<i32>} : memref<1x2x8xf32, #tpu.memory_space<vmem>>, vector<1x1x8xf32>,
    %49 = vector.shape_cast %35 : vector<256x8xf32> to vector<1x16x16x8xf32>
    %50 = arith.truncf %49 : vector<1x16x16x8xf32> to vector<1x16x16x8xbf16>
    %c0_61 = arith.constant 0 : index
    %c0_62 = arith.constant 0 : index
    %c0_63 = arith.constant 0 : index
    %c0_64 = arith.constant 0 : index
    %51 = vector.load %arg3[%c0_61, %c0_62, %c0_63, %c0_64] : memref<1x16x16x8xbf16, #tpu.memory_space<vmem>>, vector<1x16x16x8xbf16>
    tpu.vector_store %arg3[%c0_61, %c0_62, %c0_63, %c0_64], %50 {strides = array<i32>} : memref<1x16x16x8xbf16, #tpu.memory_space<vmem>>, vector<1x16x16x8xbf16>,
    return
  }
  func.func @transform_0(%arg0: i32) -> (i32, i32, i32, i32) {
    %c0_i32 = arith.constant 0 : i32
    %c0_i32_0 = arith.constant 0 : i32
    %c0_i32_1 = arith.constant 0 : i32
    %c0_i32_2 = arith.constant 0 : i32
    return %arg0, %c0_i32, %c0_i32_0, %c0_i32_1 : i32, i32, i32, i32
  }
  func.func @transform_1(%arg0: i32) -> (i32, i32, i32) {
    %c0_i32 = arith.constant 0 : i32
    %c0_i32_0 = arith.constant 0 : i32
    %c0_i32_1 = arith.constant 0 : i32
    %c0_i32_2 = arith.constant 0 : i32
    return %c0_i32, %c0_i32_0, %c0_i32_1 : i32, i32, i32
  }
  func.func @transform_2(%arg0: i32) -> (i32, i32, i32, i32) {
    %c0_i32 = arith.constant 0 : i32
    %c0_i32_0 = arith.constant 0 : i32
    %c0_i32_1 = arith.constant 0 : i32
    %c0_i32_2 = arith.constant 0 : i32
    return %arg0, %c0_i32, %c0_i32_0, %c0_i32_1 : i32, i32, i32, i32
  }
  func.func @transform_3(%arg0: i32) -> (i32, i32, i32) {
    %c0_i32 = arith.constant 0 : i32
    %c0_i32_0 = arith.constant 0 : i32
    %c0_i32_1 = arith.constant 0 : i32
    return %arg0, %c0_i32, %c0_i32_0 : i32, i32, i32
  }
}

module attributes {stable_mosaic.version = 11 : i64} {
  func.func @_bn_relu_conv2_kernel(%arg0: i32, %arg1: memref<1x16x16x8xbf16, #tpu.memory_space<vmem>>, %arg2: memref<1x8xf32, #tpu.memory_space<vmem>>, %arg3: memref<1x8xf32, #tpu.memory_space<vmem>>, %arg4: memref<3x24x8xbf16, #tpu.memory_space<vmem>>, %arg5: memref<1x16x16x8xbf16, #tpu.memory_space<vmem>>, %arg6: memref<1x2x8xf32, #tpu.memory_space<vmem>>, %arg7: memref<18x16x24xbf16, #tpu.memory_space<vmem>>, %arg8: memref<256x8xf32, #tpu.memory_space<vmem>>) attributes {dimension_semantics = [#tpu.dimension_semantics<parallel>], iteration_bounds = array<i64: 2>, scalar_prefetch = 0 : i64, scratch_operands = 2 : i64, tpu.core_type = #tpu.core_type<tc>, window_params = [{transform_indices = @transform_0, window_bounds = array<i64: 1, 16, 16, 8>}, {pipeline_mode = #tpu.pipeline_mode<synchronous>, transform_indices = @transform_1, window_bounds = array<i64: 1, 8>}, {pipeline_mode = #tpu.pipeline_mode<synchronous>, transform_indices = @transform_2, window_bounds = array<i64: 1, 8>}, {pipeline_mode = #tpu.pipeline_mode<synchronous>, transform_indices = @transform_3, window_bounds = array<i64: 3, 24, 8>}, {transform_indices = @transform_4, window_bounds = array<i64: 1, 16, 16, 8>}, {transform_indices = @transform_5, window_bounds = array<i64: 1, 2, 8>}]} {
    %cst = arith.constant 0.000000e+00 : bf16
    %0 = vector.broadcast %cst : bf16 to vector<1x16x24xbf16>
    %c0 = arith.constant 0 : index
    %c0_0 = arith.constant 0 : index
    %c0_1 = arith.constant 0 : index
    %1 = vector.load %arg7[%c0, %c0_0, %c0_1] : memref<18x16x24xbf16, #tpu.memory_space<vmem>>, vector<1x16x24xbf16>
    tpu.vector_store %arg7[%c0, %c0_0, %c0_1], %0 {strides = array<i32>} : memref<18x16x24xbf16, #tpu.memory_space<vmem>>, vector<1x16x24xbf16>,
    %c17 = arith.constant 17 : index
    %c0_2 = arith.constant 0 : index
    %c0_3 = arith.constant 0 : index
    %2 = vector.load %arg7[%c17, %c0_2, %c0_3] : memref<18x16x24xbf16, #tpu.memory_space<vmem>>, vector<1x16x24xbf16>
    tpu.vector_store %arg7[%c17, %c0_2, %c0_3], %0 {strides = array<i32>} : memref<18x16x24xbf16, #tpu.memory_space<vmem>>, vector<1x16x24xbf16>,
    %cst_4 = arith.constant 0.000000e+00 : bf16
    %3 = vector.broadcast %cst_4 : bf16 to vector<18x1x8xbf16>
    %c0_5 = arith.constant 0 : index
    %c0_6 = arith.constant 0 : index
    %c0_7 = arith.constant 0 : index
    %4 = vector.load %arg7[%c0_5, %c0_6, %c0_7] : memref<18x16x24xbf16, #tpu.memory_space<vmem>>, vector<18x1x8xbf16>
    tpu.vector_store %arg7[%c0_5, %c0_6, %c0_7], %3 {strides = array<i32>} : memref<18x16x24xbf16, #tpu.memory_space<vmem>>, vector<18x1x8xbf16>,
    %c0_8 = arith.constant 0 : index
    %c15 = arith.constant 15 : index
    %c16 = arith.constant 16 : index
    %5 = vector.load %arg7[%c0_8, %c15, %c16] : memref<18x16x24xbf16, #tpu.memory_space<vmem>>, vector<18x1x8xbf16>
    tpu.vector_store %arg7[%c0_8, %c15, %c16], %3 {strides = array<i32>} : memref<18x16x24xbf16, #tpu.memory_space<vmem>>, vector<18x1x8xbf16>,
    %c0_9 = arith.constant 0 : index
    %c0_10 = arith.constant 0 : index
    %c0_11 = arith.constant 0 : index
    %c0_12 = arith.constant 0 : index
    %6 = vector.load %arg1[%c0_9, %c0_10, %c0_11, %c0_12] : memref<1x16x16x8xbf16, #tpu.memory_space<vmem>>, vector<1x16x16x8xbf16>
    %7 = vector.shape_cast %6 : vector<1x16x16x8xbf16> to vector<16x16x8xbf16>
    %8 = arith.extf %7 : vector<16x16x8xbf16> to vector<16x16x8xf32>
    %c0_13 = arith.constant 0 : index
    %c0_14 = arith.constant 0 : index
    %9 = vector.load %arg2[%c0_13, %c0_14] : memref<1x8xf32, #tpu.memory_space<vmem>>, vector<1x8xf32>
    %10 = vector.shape_cast %9 : vector<1x8xf32> to vector<1x1x8xf32>
    %11 = vector.broadcast %10 : vector<1x1x8xf32> to vector<16x16x8xf32>
    %12 = arith.mulf %8, %11 : vector<16x16x8xf32>
    %c0_15 = arith.constant 0 : index
    %c0_16 = arith.constant 0 : index
    %13 = vector.load %arg3[%c0_15, %c0_16] : memref<1x8xf32, #tpu.memory_space<vmem>>, vector<1x8xf32>
    %14 = vector.shape_cast %13 : vector<1x8xf32> to vector<1x1x8xf32>
    %15 = vector.broadcast %14 : vector<1x1x8xf32> to vector<16x16x8xf32>
    %16 = arith.addf %12, %15 : vector<16x16x8xf32>
    %cst_17 = arith.constant 0.000000e+00 : f32
    %17 = vector.broadcast %cst_17 : f32 to vector<16x16x8xf32>
    %18 = arith.maximumf %16, %17 : vector<16x16x8xf32>
    %19 = arith.truncf %18 : vector<16x16x8xf32> to vector<16x16x8xbf16>
    %c1 = arith.constant 1 : index
    %c0_18 = arith.constant 0 : index
    %c8 = arith.constant 8 : index
    %20 = vector.load %arg7[%c1, %c0_18, %c8] : memref<18x16x24xbf16, #tpu.memory_space<vmem>>, vector<16x16x8xbf16>
    tpu.vector_store %arg7[%c1, %c0_18, %c8], %19 {strides = array<i32>} : memref<18x16x24xbf16, #tpu.memory_space<vmem>>, vector<16x16x8xbf16>,
    %21 = vector.extract_strided_slice %19 {offsets = [0, 0, 0], sizes = [16, 15, 8], strides = [1, 1, 1]} : vector<16x16x8xbf16> to vector<16x15x8xbf16>
    %c1_19 = arith.constant 1 : index
    %c1_20 = arith.constant 1 : index
    %c0_21 = arith.constant 0 : index
    %22 = vector.load %arg7[%c1_19, %c1_20, %c0_21] : memref<18x16x24xbf16, #tpu.memory_space<vmem>>, vector<16x15x8xbf16>
    tpu.vector_store %arg7[%c1_19, %c1_20, %c0_21], %21 {strides = array<i32>} : memref<18x16x24xbf16, #tpu.memory_space<vmem>>, vector<16x15x8xbf16>,
    %23 = vector.extract_strided_slice %19 {offsets = [0, 1, 0], sizes = [16, 15, 8], strides = [1, 1, 1]} : vector<16x16x8xbf16> to vector<16x15x8xbf16>
    %c1_22 = arith.constant 1 : index
    %c0_23 = arith.constant 0 : index
    %c16_24 = arith.constant 16 : index
    %24 = vector.load %arg7[%c1_22, %c0_23, %c16_24] : memref<18x16x24xbf16, #tpu.memory_space<vmem>>, vector<16x15x8xbf16>
    tpu.vector_store %arg7[%c1_22, %c0_23, %c16_24], %23 {strides = array<i32>} : memref<18x16x24xbf16, #tpu.memory_space<vmem>>, vector<16x15x8xbf16>,
    %c0_25 = arith.constant 0 : index
    %c0_26 = arith.constant 0 : index
    %c0_27 = arith.constant 0 : index
    %25 = vector.load %arg7[%c0_25, %c0_26, %c0_27] : memref<18x16x24xbf16, #tpu.memory_space<vmem>>, vector<16x16x24xbf16>
    %26 = vector.shape_cast %25 : vector<16x16x24xbf16> to vector<256x24xbf16>
    %c0_28 = arith.constant 0 : index
    %c0_29 = arith.constant 0 : index
    %c0_30 = arith.constant 0 : index
    %27 = vector.load %arg4[%c0_28, %c0_29, %c0_30] : memref<3x24x8xbf16, #tpu.memory_space<vmem>>, vector<1x24x8xbf16>
    %28 = vector.shape_cast %27 : vector<1x24x8xbf16> to vector<24x8xbf16>
    %cst_31 = arith.constant dense<0.000000e+00> : vector<256x8xf32>
    %29 = tpu.matmul %26, %28, %cst_31 {dimension_numbers = #tpu.dot_dimension_numbers<[1], [0], [0], [1], [0, 0, 1, 1], [], []>} : vector<256x24xbf16>, vector<24x8xbf16>, vector<256x8xf32> -> vector<256x8xf32>
    %c0_32 = arith.constant 0 : index
    %c0_33 = arith.constant 0 : index
    %30 = vector.load %arg8[%c0_32, %c0_33] : memref<256x8xf32, #tpu.memory_space<vmem>>, vector<256x8xf32>
    tpu.vector_store %arg8[%c0_32, %c0_33], %29 {strides = array<i32>} : memref<256x8xf32, #tpu.memory_space<vmem>>, vector<256x8xf32>,
    %c1_34 = arith.constant 1 : index
    %c0_35 = arith.constant 0 : index
    %c0_36 = arith.constant 0 : index
    %31 = vector.load %arg7[%c1_34, %c0_35, %c0_36] : memref<18x16x24xbf16, #tpu.memory_space<vmem>>, vector<16x16x24xbf16>
    %32 = vector.shape_cast %31 : vector<16x16x24xbf16> to vector<256x24xbf16>
    %c1_37 = arith.constant 1 : index
    %c0_38 = arith.constant 0 : index
    %c0_39 = arith.constant 0 : index
    %33 = vector.load %arg4[%c1_37, %c0_38, %c0_39] : memref<3x24x8xbf16, #tpu.memory_space<vmem>>, vector<1x24x8xbf16>
    %34 = vector.shape_cast %33 : vector<1x24x8xbf16> to vector<24x8xbf16>
    %cst_40 = arith.constant dense<0.000000e+00> : vector<256x8xf32>
    %35 = tpu.matmul %32, %34, %cst_40 {dimension_numbers = #tpu.dot_dimension_numbers<[1], [0], [0], [1], [0, 0, 1, 1], [], []>} : vector<256x24xbf16>, vector<24x8xbf16>, vector<256x8xf32> -> vector<256x8xf32>
    %c0_41 = arith.constant 0 : index
    %c0_42 = arith.constant 0 : index
    %36 = vector.load %arg8[%c0_41, %c0_42] : memref<256x8xf32, #tpu.memory_space<vmem>>, vector<256x8xf32>
    %37 = arith.addf %36, %35 : vector<256x8xf32>
    %c0_43 = arith.constant 0 : index
    %c0_44 = arith.constant 0 : index
    %38 = vector.load %arg8[%c0_43, %c0_44] : memref<256x8xf32, #tpu.memory_space<vmem>>, vector<256x8xf32>
    tpu.vector_store %arg8[%c0_43, %c0_44], %37 {strides = array<i32>} : memref<256x8xf32, #tpu.memory_space<vmem>>, vector<256x8xf32>,
    %c2 = arith.constant 2 : index
    %c0_45 = arith.constant 0 : index
    %c0_46 = arith.constant 0 : index
    %39 = vector.load %arg7[%c2, %c0_45, %c0_46] : memref<18x16x24xbf16, #tpu.memory_space<vmem>>, vector<16x16x24xbf16>
    %40 = vector.shape_cast %39 : vector<16x16x24xbf16> to vector<256x24xbf16>
    %c2_47 = arith.constant 2 : index
    %c0_48 = arith.constant 0 : index
    %c0_49 = arith.constant 0 : index
    %41 = vector.load %arg4[%c2_47, %c0_48, %c0_49] : memref<3x24x8xbf16, #tpu.memory_space<vmem>>, vector<1x24x8xbf16>
    %42 = vector.shape_cast %41 : vector<1x24x8xbf16> to vector<24x8xbf16>
    %cst_50 = arith.constant dense<0.000000e+00> : vector<256x8xf32>
    %43 = tpu.matmul %40, %42, %cst_50 {dimension_numbers = #tpu.dot_dimension_numbers<[1], [0], [0], [1], [0, 0, 1, 1], [], []>} : vector<256x24xbf16>, vector<24x8xbf16>, vector<256x8xf32> -> vector<256x8xf32>
    %c0_51 = arith.constant 0 : index
    %c0_52 = arith.constant 0 : index
    %44 = vector.load %arg8[%c0_51, %c0_52] : memref<256x8xf32, #tpu.memory_space<vmem>>, vector<256x8xf32>
    %45 = arith.addf %44, %43 : vector<256x8xf32>
    %c0_53 = arith.constant 0 : index
    %c0_54 = arith.constant 0 : index
    %46 = vector.load %arg8[%c0_53, %c0_54] : memref<256x8xf32, #tpu.memory_space<vmem>>, vector<256x8xf32>
    tpu.vector_store %arg8[%c0_53, %c0_54], %45 {strides = array<i32>} : memref<256x8xf32, #tpu.memory_space<vmem>>, vector<256x8xf32>,
    %c0_55 = arith.constant 0 : index
    %c0_56 = arith.constant 0 : index
    %47 = vector.load %arg8[%c0_55, %c0_56] : memref<256x8xf32, #tpu.memory_space<vmem>>, vector<256x8xf32>
    %cst_57 = arith.constant dense<0.000000e+00> : vector<8xf32>
    %48 = vector.multi_reduction <add>, %47, %cst_57 [0] : vector<256x8xf32> to vector<8xf32>
    %49 = vector.shape_cast %48 : vector<8xf32> to vector<1x8xf32>
    %cst_58 = arith.constant 3.906250e-03 : f32
    %50 = vector.broadcast %cst_58 : f32 to vector<1x8xf32>
    %51 = arith.mulf %49, %50 : vector<1x8xf32>
    %52 = vector.broadcast %51 : vector<1x8xf32> to vector<256x8xf32>
    %53 = arith.subf %47, %52 : vector<256x8xf32>
    %54 = arith.mulf %53, %53 : vector<256x8xf32>
    %cst_59 = arith.constant dense<0.000000e+00> : vector<8xf32>
    %55 = vector.multi_reduction <add>, %54, %cst_59 [0] : vector<256x8xf32> to vector<8xf32>
    %56 = vector.shape_cast %55 : vector<8xf32> to vector<1x8xf32>
    %57 = vector.shape_cast %49 : vector<1x8xf32> to vector<1x1x8xf32>
    %c0_60 = arith.constant 0 : index
    %c0_61 = arith.constant 0 : index
    %c0_62 = arith.constant 0 : index
    %58 = vector.load %arg6[%c0_60, %c0_61, %c0_62] : memref<1x2x8xf32, #tpu.memory_space<vmem>>, vector<1x1x8xf32>
    tpu.vector_store %arg6[%c0_60, %c0_61, %c0_62], %57 {strides = array<i32>} : memref<1x2x8xf32, #tpu.memory_space<vmem>>, vector<1x1x8xf32>,
    %59 = vector.shape_cast %56 : vector<1x8xf32> to vector<1x1x8xf32>
    %c0_63 = arith.constant 0 : index
    %c1_64 = arith.constant 1 : index
    %c0_65 = arith.constant 0 : index
    %60 = vector.load %arg6[%c0_63, %c1_64, %c0_65] : memref<1x2x8xf32, #tpu.memory_space<vmem>>, vector<1x1x8xf32>
    tpu.vector_store %arg6[%c0_63, %c1_64, %c0_65], %59 {strides = array<i32>} : memref<1x2x8xf32, #tpu.memory_space<vmem>>, vector<1x1x8xf32>,
    %61 = vector.shape_cast %47 : vector<256x8xf32> to vector<1x16x16x8xf32>
    %62 = arith.truncf %61 : vector<1x16x16x8xf32> to vector<1x16x16x8xbf16>
    %c0_66 = arith.constant 0 : index
    %c0_67 = arith.constant 0 : index
    %c0_68 = arith.constant 0 : index
    %c0_69 = arith.constant 0 : index
    %63 = vector.load %arg5[%c0_66, %c0_67, %c0_68, %c0_69] : memref<1x16x16x8xbf16, #tpu.memory_space<vmem>>, vector<1x16x16x8xbf16>
    tpu.vector_store %arg5[%c0_66, %c0_67, %c0_68, %c0_69], %62 {strides = array<i32>} : memref<1x16x16x8xbf16, #tpu.memory_space<vmem>>, vector<1x16x16x8xbf16>,
    return
  }
  func.func @transform_0(%arg0: i32) -> (i32, i32, i32, i32) {
    %c0_i32 = arith.constant 0 : i32
    %c0_i32_0 = arith.constant 0 : i32
    %c0_i32_1 = arith.constant 0 : i32
    %c0_i32_2 = arith.constant 0 : i32
    return %arg0, %c0_i32, %c0_i32_0, %c0_i32_1 : i32, i32, i32, i32
  }
  func.func @transform_1(%arg0: i32) -> (i32, i32) {
    %c0_i32 = arith.constant 0 : i32
    %c0_i32_0 = arith.constant 0 : i32
    %c0_i32_1 = arith.constant 0 : i32
    return %c0_i32, %c0_i32_0 : i32, i32
  }
  func.func @transform_2(%arg0: i32) -> (i32, i32) {
    %c0_i32 = arith.constant 0 : i32
    %c0_i32_0 = arith.constant 0 : i32
    %c0_i32_1 = arith.constant 0 : i32
    return %c0_i32, %c0_i32_0 : i32, i32
  }
  func.func @transform_3(%arg0: i32) -> (i32, i32, i32) {
    %c0_i32 = arith.constant 0 : i32
    %c0_i32_0 = arith.constant 0 : i32
    %c0_i32_1 = arith.constant 0 : i32
    %c0_i32_2 = arith.constant 0 : i32
    return %c0_i32, %c0_i32_0, %c0_i32_1 : i32, i32, i32
  }
  func.func @transform_4(%arg0: i32) -> (i32, i32, i32, i32) {
    %c0_i32 = arith.constant 0 : i32
    %c0_i32_0 = arith.constant 0 : i32
    %c0_i32_1 = arith.constant 0 : i32
    %c0_i32_2 = arith.constant 0 : i32
    return %arg0, %c0_i32, %c0_i32_0, %c0_i32_1 : i32, i32, i32, i32
  }
  func.func @transform_5(%arg0: i32) -> (i32, i32, i32) {
    %c0_i32 = arith.constant 0 : i32
    %c0_i32_0 = arith.constant 0 : i32
    %c0_i32_1 = arith.constant 0 : i32
    return %arg0, %c0_i32, %c0_i32_0 : i32, i32, i32
  }
}

module attributes {stable_mosaic.version = 11 : i64} {
  func.func @_bn_add_relu_kernel(%arg0: i32, %arg1: memref<1x16x16x8xbf16, #tpu.memory_space<vmem>>, %arg2: memref<1x16x16x8xbf16, #tpu.memory_space<vmem>>, %arg3: memref<1x8xf32, #tpu.memory_space<vmem>>, %arg4: memref<1x8xf32, #tpu.memory_space<vmem>>, %arg5: memref<1x16x16x8xf32, #tpu.memory_space<vmem>>) attributes {dimension_semantics = [#tpu.dimension_semantics<parallel>], iteration_bounds = array<i64: 2>, scalar_prefetch = 0 : i64, scratch_operands = 0 : i64, tpu.core_type = #tpu.core_type<tc>, window_params = [{transform_indices = @transform_0, window_bounds = array<i64: 1, 16, 16, 8>}, {transform_indices = @transform_1, window_bounds = array<i64: 1, 16, 16, 8>}, {pipeline_mode = #tpu.pipeline_mode<synchronous>, transform_indices = @transform_2, window_bounds = array<i64: 1, 8>}, {pipeline_mode = #tpu.pipeline_mode<synchronous>, transform_indices = @transform_3, window_bounds = array<i64: 1, 8>}, {transform_indices = @transform_4, window_bounds = array<i64: 1, 16, 16, 8>}]} {
    %c0 = arith.constant 0 : index
    %c0_0 = arith.constant 0 : index
    %c0_1 = arith.constant 0 : index
    %c0_2 = arith.constant 0 : index
    %0 = vector.load %arg1[%c0, %c0_0, %c0_1, %c0_2] : memref<1x16x16x8xbf16, #tpu.memory_space<vmem>>, vector<1x16x16x8xbf16>
    %1 = arith.extf %0 : vector<1x16x16x8xbf16> to vector<1x16x16x8xf32>
    %c0_3 = arith.constant 0 : index
    %c0_4 = arith.constant 0 : index
    %2 = vector.load %arg3[%c0_3, %c0_4] : memref<1x8xf32, #tpu.memory_space<vmem>>, vector<1x8xf32>
    %3 = vector.shape_cast %2 : vector<1x8xf32> to vector<1x1x1x8xf32>
    %4 = vector.broadcast %3 : vector<1x1x1x8xf32> to vector<1x16x16x8xf32>
    %5 = arith.mulf %1, %4 : vector<1x16x16x8xf32>
    %c0_5 = arith.constant 0 : index
    %c0_6 = arith.constant 0 : index
    %6 = vector.load %arg4[%c0_5, %c0_6] : memref<1x8xf32, #tpu.memory_space<vmem>>, vector<1x8xf32>
    %7 = vector.shape_cast %6 : vector<1x8xf32> to vector<1x1x1x8xf32>
    %8 = vector.broadcast %7 : vector<1x1x1x8xf32> to vector<1x16x16x8xf32>
    %9 = arith.addf %5, %8 : vector<1x16x16x8xf32>
    %c0_7 = arith.constant 0 : index
    %c0_8 = arith.constant 0 : index
    %c0_9 = arith.constant 0 : index
    %c0_10 = arith.constant 0 : index
    %10 = vector.load %arg2[%c0_7, %c0_8, %c0_9, %c0_10] : memref<1x16x16x8xbf16, #tpu.memory_space<vmem>>, vector<1x16x16x8xbf16>
    %11 = arith.extf %10 : vector<1x16x16x8xbf16> to vector<1x16x16x8xf32>
    %12 = arith.addf %9, %11 : vector<1x16x16x8xf32>
    %cst = arith.constant 0.000000e+00 : f32
    %13 = vector.broadcast %cst : f32 to vector<1x16x16x8xf32>
    %14 = arith.maximumf %12, %13 : vector<1x16x16x8xf32>
    %c0_11 = arith.constant 0 : index
    %c0_12 = arith.constant 0 : index
    %c0_13 = arith.constant 0 : index
    %c0_14 = arith.constant 0 : index
    %15 = vector.load %arg5[%c0_11, %c0_12, %c0_13, %c0_14] : memref<1x16x16x8xf32, #tpu.memory_space<vmem>>, vector<1x16x16x8xf32>
    tpu.vector_store %arg5[%c0_11, %c0_12, %c0_13, %c0_14], %14 {strides = array<i32>} : memref<1x16x16x8xf32, #tpu.memory_space<vmem>>, vector<1x16x16x8xf32>,
    return
  }
  func.func @transform_0(%arg0: i32) -> (i32, i32, i32, i32) {
    %c0_i32 = arith.constant 0 : i32
    %c0_i32_0 = arith.constant 0 : i32
    %c0_i32_1 = arith.constant 0 : i32
    %c0_i32_2 = arith.constant 0 : i32
    return %arg0, %c0_i32, %c0_i32_0, %c0_i32_1 : i32, i32, i32, i32
  }
  func.func @transform_1(%arg0: i32) -> (i32, i32, i32, i32) {
    %c0_i32 = arith.constant 0 : i32
    %c0_i32_0 = arith.constant 0 : i32
    %c0_i32_1 = arith.constant 0 : i32
    %c0_i32_2 = arith.constant 0 : i32
    return %arg0, %c0_i32, %c0_i32_0, %c0_i32_1 : i32, i32, i32, i32
  }
  func.func @transform_2(%arg0: i32) -> (i32, i32) {
    %c0_i32 = arith.constant 0 : i32
    %c0_i32_0 = arith.constant 0 : i32
    %c0_i32_1 = arith.constant 0 : i32
    return %c0_i32, %c0_i32_0 : i32, i32
  }
  func.func @transform_3(%arg0: i32) -> (i32, i32) {
    %c0_i32 = arith.constant 0 : i32
    %c0_i32_0 = arith.constant 0 : i32
    %c0_i32_1 = arith.constant 0 : i32
    return %c0_i32, %c0_i32_0 : i32, i32
  }
  func.func @transform_4(%arg0: i32) -> (i32, i32, i32, i32) {
    %c0_i32 = arith.constant 0 : i32
    %c0_i32_0 = arith.constant 0 : i32
    %c0_i32_1 = arith.constant 0 : i32
    %c0_i32_2 = arith.constant 0 : i32
    return %arg0, %c0_i32, %c0_i32_0, %c0_i32_1 : i32, i32, i32, i32
  }
}

</mosaic_0001>

<bundles_post_ra>
// kernel: resblock_forward.5
= control target key start
LH: loop header
LB: loop body
LE: loop exit
PB: predicated region body
PF: predicated region fallthrough
CT: control target
= control target key end

     0   :  { %s799_s15 = smov 0   ;;  %s999_s0 = inlined_call_operand.vmem [shape: bf16[2,16,16,8], index: 0, kind: input, shape index: {}]   ;;  %s1000_s1 = inlined_call_operand.vmem [shape: bf16[2,16,16,8], index: 1, kind: input, shape index: {}]   ;;  %s1001_s2 = inlined_call_operand.vmem [shape: f32[1,8], index: 2, kind: input, shape index: {}]   ;;  %s1002_s3 = inlined_call_operand.vmem [shape: f32[1,8], index: 3, kind: input, shape index: {}]   ;;  %s1003_s4 = inlined_call_operand.vmem [shape: f32[2,16,16,8], index: 4, kind: output, shape index: {}]  }
   0x1 LB: > { %s582_s16 = sadd.s32 4294967295, %s772_s15   ;;  %p586_p0 = scmp.ge.s32.totalorder %s772_s15, 1  ;;  %s772_s15 = sphi %s799_s15, %s14_s15  }
   0x2   : > { %p172_p1 = scmp.lt.s32.totalorder %s772_s15, 3 }
   0x4   : > { %p173_p2 = pnand %p586_p0, %p172_p1 }
   0x5   : > { %p203_p3 = scmp.lt.s32.totalorder (!%p173_p2), %s582_s16, 1 }
   0x6   : > { %176 = sbr.rel (%p173_p2) target bundleno = 69 (0x45), region = 36 }
   0xb   : > { %s1005_s16 = smov (!%p203_p3, %s582_s16), 1  ;;  %v823_v0 = vld [vmem:[%s1001_s2] ss:$0 sm:$0xff]  ;;  %vm482_vm0 = vcmask 64512  }
   0xc   : > { %s595_s17 = sshll.u32 %s1005_s16, 7  ;;  %v828_v1 = vld [vmem:[%s1002_s3] ss:$0 sm:$0xff]  ;;  %s597_s28 = sshll.u32 %s1005_s16, 8 }
   0xd   : > { %s813_s20 = scalar_lea.vmem %s999_s0, %s595_s17  ;;  %s818_s23 = scalar_lea.vmem %s1000_s1, %s595_s17 }
   0xe   : > { %v599_v2 = vld [vmem:[%s813_s20] sm:$0xff]   ;;  %v726_v4 = vld [vmem:[%s813_s20 + $0x8] sm:$0xff]   ;;  %v727_v10 = vld [vmem:[%s813_s20 + $0x10] sm:$0xff]   ;;  %s854_s5 = scalar_lea.vmem %s1003_s4, %s597_s28 }
   0xf   : > { %v663_v3 = vld [vmem:[%s818_s23] sm:$0xff]   ;;  %v600_v5 = vunpack.c.l.bf16 %v599_v2  ;;  %v601_v7 = vunpack.c.h.bf16 %v599_v2  ;;  %v741_v9 = vld [vmem:[%s818_s23 + $0x8] sm:$0xff]   ;;  %v742_v11 = vld [vmem:[%s818_s23 + $0x10] sm:$0xff]   ;;  %v604_v12 = vunpack.c.l.bf16 %v726_v4  ;;  %v605_v14 = vunpack.c.h.bf16 %v726_v4 }
  0x10   : > { %v664_v6 = vunpack.c.l.bf16 %v663_v3  ;;  %v665_v8 = vunpack.c.h.bf16 %v663_v3  ;;  %v668_v13 = vunpack.c.l.bf16 %v741_v9  ;;  %v669_v15 = vunpack.c.h.bf16 %v741_v9  ;;  %v728_v16 = vld [vmem:[%s813_s20 + $0x18] sm:$0xff]   ;;  %v729_v42 = vld [vmem:[%s813_s20 + $0x20] sm:$0xff]   ;;  %v730_v52 = vld [vmem:[%s813_s20 + $0x28] sm:$0xff]  }
  0x11   : > { %v286_v17 = vmul.f32 %v823_v0, %v600_v5  ;;  %v287_v18 = vmul.f32 %v823_v0, %v601_v7  ;;  %v608_v19 = vunpack.c.l.bf16 %v727_v10  ;;  %v672_v20 = vunpack.c.l.bf16 %v742_v11  ;;  %v743_v21 = vld [vmem:[%s818_s23 + $0x18] sm:$0xff]   ;;  %v744_v47 = vld [vmem:[%s818_s23 + $0x20] sm:$0xff]   ;;  %v745_v57 = vld [vmem:[%s818_s23 + $0x28] sm:$0xff]  }
  0x12   : > { %v288_v22 = vmul.f32 %v823_v0, %v604_v12  ;;  %v289_v23 = vmul.f32 %v823_v0, %v605_v14  ;;  %v609_v24 = vunpack.c.h.bf16 %v727_v10  ;;  %v673_v25 = vunpack.c.h.bf16 %v742_v11  ;;  %v731_v62 = vld [vmem:[%s813_s20 + $0x30] sm:$0xff]   ;;  %v732_v14 = vld [vmem:[%s813_s20 + $0x38] sm:$0xff]  }
  0x13   : > { %v322_v26 = vadd.f32 %v828_v1, %v286_v17  ;;  %v323_v27 = vadd.f32 %v828_v1, %v287_v18  ;;  %v290_v28 = vmul.f32 %v823_v0, %v608_v19  ;;  %v612_v29 = vunpack.c.l.bf16 %v728_v16  ;;  %v746_v5 = vld [vmem:[%s818_s23 + $0x30] sm:$0xff]  }
  0x14   : > { %v324_v30 = vadd.f32 %v828_v1, %v288_v22  ;;  %v325_v31 = vadd.f32 %v828_v1, %v289_v23  ;;  %v291_v32 = vmul.f32 %v823_v0, %v609_v24  ;;  %v676_v33 = vunpack.c.l.bf16 %v743_v21  ;;  %v747_v23 = vld [vmem:[%s818_s23 + $0x38] sm:$0xff]  }
  0x15   : > { %v418_v34 = vadd.f32 %v664_v6, %v322_v26  ;;  %v419_v35 = vadd.f32 %v665_v8, %v323_v27  ;;  %v326_v36 = vadd.f32 %v828_v1, %v290_v28  ;;  %v292_v37 = vmul.f32 %v823_v0, %v612_v29 }
  0x16   : > { %v420_v38 = vadd.f32 %v668_v13, %v324_v30  ;;  %v421_v39 = vadd.f32 %v669_v15, %v325_v31  ;;  %v327_v40 = vadd.f32 %v828_v1, %v291_v32  ;;  %v613_v41 = vunpack.c.h.bf16 %v728_v16  ;;  %v733_v32 = vld [vmem:[%s813_s20 + $0x40] sm:$0xff]  }
  0x17   : > { %v450_v43 = vmax.f32 %v418_v34, 0.0  ;;  %v451_v44 = vmax.f32 %v419_v35, 0.0  ;;  %v422_v45 = vadd.f32 %v672_v20, %v326_v36  ;;  %v328_v46 = vadd.f32 %v828_v1, %v292_v37  ;;  %v748_v37 = vld [vmem:[%s818_s23 + $0x40] sm:$0xff]  }
  0x18   : > { %v452_v48 = vmax.f32 %v420_v38, 0.0  ;;  %v453_v49 = vmax.f32 %v421_v39, 0.0  ;;  %v423_v50 = vadd.f32 %v673_v25, %v327_v40  ;;  %v293_v51 = vmul.f32 %v823_v0, %v613_v41 }
  0x19   : > { %483 = vst.msk [vmem:[%s854_s5] sm:$0xff] %vm482_vm0, %v450_v43  ;;  %v454_v53 = vmax.f32 %v422_v45, 0.0  ;;  %v424_v54 = vadd.f32 %v676_v33, %v328_v46  ;;  %v677_v55 = vunpack.c.h.bf16 %v743_v21  ;;  %v616_v56 = vunpack.c.l.bf16 %v729_v42  ;;  %v734_v46 = vld [vmem:[%s813_s20 + $0x48] sm:$0xff]  }
  0x1a   : > { %484 = vst.msk [vmem:[%s854_s5 + $0x8] sm:$0xff] %vm482_vm0, %v451_v44  ;;  %v455_v58 = vmax.f32 %v423_v50, 0.0  ;;  %v329_v59 = vadd.f32 %v828_v1, %v293_v51  ;;  %v680_v60 = vunpack.c.l.bf16 %v744_v47  ;;  %v617_v61 = vunpack.c.h.bf16 %v729_v42 }
  0x1b   : > { %485 = vst.msk [vmem:[%s854_s5 + $0x10] sm:$0xff] %vm482_vm0, %v452_v48  ;;  %v456_v63 = vmax.f32 %v424_v54, 0.0  ;;  %v294_v2 = vmul.f32 %v823_v0, %v616_v56  ;;  %v681_v3 = vunpack.c.h.bf16 %v744_v47  ;;  %v620_v4 = vunpack.c.l.bf16 %v730_v52  ;;  %v749_v47 = vld [vmem:[%s818_s23 + $0x48] sm:$0xff]   ;;  %v735_v56 = vld [vmem:[%s813_s20 + $0x50] sm:$0xff]  }
  0x1c   : > { %486 = vst.msk [vmem:[%s854_s5 + $0x18] sm:$0xff] %vm482_vm0, %v453_v49  ;;  %v425_v6 = vadd.f32 %v677_v55, %v329_v59  ;;  %v295_v7 = vmul.f32 %v823_v0, %v617_v61  ;;  %v684_v8 = vunpack.c.l.bf16 %v745_v57  ;;  %v621_v9 = vunpack.c.h.bf16 %v730_v52  ;;  %v750_v61 = vld [vmem:[%s818_s23 + $0x50] sm:$0xff]  }
  0x1d   : > { %487 = vst.msk [vmem:[%s854_s5 + $0x20] sm:$0xff] %vm482_vm0, %v454_v53  ;;  %v330_v10 = vadd.f32 %v828_v1, %v294_v2  ;;  %v296_v11 = vmul.f32 %v823_v0, %v620_v4  ;;  %v685_v12 = vunpack.c.h.bf16 %v745_v57  ;;  %v624_v13 = vunpack.c.l.bf16 %v731_v62 }
  0x1e   : > { %488 = vst.msk [vmem:[%s854_s5 + $0x28] sm:$0xff] %vm482_vm0, %v455_v58  ;;  %v457_v15 = vmax.f32 %v425_v6, 0.0  ;;  %v331_v16 = vadd.f32 %v828_v1, %v295_v7  ;;  %v297_v17 = vmul.f32 %v823_v0, %v621_v9  ;;  %v688_v18 = vunpack.c.l.bf16 %v746_v5 }
  0x1f   : > { %489 = vst.msk [vmem:[%s854_s5 + $0x30] sm:$0xff] %vm482_vm0, %v456_v63  ;;  %v426_v19 = vadd.f32 %v680_v60, %v330_v10  ;;  %v332_v20 = vadd.f32 %v828_v1, %v296_v11  ;;  %v298_v21 = vmul.f32 %v823_v0, %v624_v13  ;;  %v625_v22 = vunpack.c.h.bf16 %v731_v62 }
  0x20   : > { %490 = vst.msk [vmem:[%s854_s5 + $0x38] sm:$0xff] %vm482_vm0, %v457_v15  ;;  %v427_v24 = vadd.f32 %v681_v3, %v331_v16  ;;  %v333_v25 = vadd.f32 %v828_v1, %v297_v17  ;;  %v689_v26 = vunpack.c.h.bf16 %v746_v5  ;;  %v628_v27 = vunpack.c.l.bf16 %v732_v14  ;;  %v751_v17 = vld [vmem:[%s818_s23 + $0x58] sm:$0xff]  }
  0x21   : > { %v458_v28 = vmax.f32 %v426_v19, 0.0  ;;  %v428_v29 = vadd.f32 %v684_v8, %v332_v20  ;;  %v334_v30 = vadd.f32 %v828_v1, %v298_v21  ;;  %v299_v31 = vmul.f32 %v823_v0, %v625_v22 }
  0x22   : > { %v459_v33 = vmax.f32 %v427_v24, 0.0  ;;  %v429_v34 = vadd.f32 %v685_v12, %v333_v25  ;;  %v300_v35 = vmul.f32 %v823_v0, %v628_v27  ;;  %v692_v36 = vunpack.c.l.bf16 %v747_v23  ;;  %v736_v12 = vld [vmem:[%s813_s20 + $0x58] sm:$0xff]  }
  0x23   : > { %491 = vst.msk [vmem:[%s854_s5 + $0x40] sm:$0xff] %vm482_vm0, %v458_v28  ;;  %v460_v38 = vmax.f32 %v428_v29, 0.0  ;;  %v430_v39 = vadd.f32 %v688_v18, %v334_v30  ;;  %v335_v40 = vadd.f32 %v828_v1, %v299_v31  ;;  %v629_v41 = vunpack.c.h.bf16 %v732_v14  ;;  %v752_v31 = vld [vmem:[%s818_s23 + $0x60] sm:$0xff]  }
  0x24   : > { %492 = vst.msk [vmem:[%s854_s5 + $0x48] sm:$0xff] %vm482_vm0, %v459_v33  ;;  %v461_v42 = vmax.f32 %v429_v34, 0.0  ;;  %v336_v43 = vadd.f32 %v828_v1, %v300_v35  ;;  %v693_v44 = vunpack.c.h.bf16 %v747_v23  ;;  %v632_v45 = vunpack.c.l.bf16 %v733_v32 }
  0x25   : > { %493 = vst.msk [vmem:[%s854_s5 + $0x50] sm:$0xff] %vm482_vm0, %v460_v38  ;;  %v462_v48 = vmax.f32 %v430_v39, 0.0  ;;  %v431_v49 = vadd.f32 %v689_v26, %v335_v40  ;;  %v301_v50 = vmul.f32 %v823_v0, %v629_v41  ;;  %v696_v51 = vunpack.c.l.bf16 %v748_v37  ;;  %v737_v26 = vld [vmem:[%s813_s20 + $0x60] sm:$0xff]   ;;  %v738_v40 = vld [vmem:[%s813_s20 + $0x68] sm:$0xff]  }
  0x26   : > { %494 = vst.msk [vmem:[%s854_s5 + $0x58] sm:$0xff] %vm482_vm0, %v461_v42  ;;  %v432_v52 = vadd.f32 %v692_v36, %v336_v43  ;;  %v302_v53 = vmul.f32 %v823_v0, %v632_v45  ;;  %v633_v54 = vunpack.c.h.bf16 %v733_v32  ;;  %v697_v55 = vunpack.c.h.bf16 %v748_v37  ;;  %v753_v41 = vld [vmem:[%s818_s23 + $0x68] sm:$0xff]  }
  0x27   : > { %495 = vst.msk [vmem:[%s854_s5 + $0x60] sm:$0xff] %vm482_vm0, %v462_v48  ;;  %v463_v57 = vmax.f32 %v431_v49, 0.0  ;;  %v337_v58 = vadd.f32 %v828_v1, %v301_v50  ;;  %v636_v59 = vunpack.c.l.bf16 %v734_v46  ;;  %v700_v60 = vunpack.c.l.bf16 %v749_v47  ;;  %v739_v50 = vld [vmem:[%s813_s20 + $0x70] sm:$0xff]  }
  0x28   : > { %v464_v62 = vmax.f32 %v432_v52, 0.0  ;;  %v338_v63 = vadd.f32 %v828_v1, %v302_v53  ;;  %v303_v2 = vmul.f32 %v823_v0, %v633_v54  ;;  %v637_v3 = vunpack.c.h.bf16 %v734_v46 }
  0x29   : > { %496 = vst.msk [vmem:[%s854_s5 + $0x68] sm:$0xff] %vm482_vm0, %v463_v57  ;;  %v433_v4 = vadd.f32 %v693_v44, %v337_v58  ;;  %v304_v5 = vmul.f32 %v823_v0, %v636_v59  ;;  %v701_v6 = vunpack.c.h.bf16 %v749_v47  ;;  %v640_v7 = vunpack.c.l.bf16 %v735_v56  ;;  %v754_v59 = vld [vmem:[%s818_s23 + $0x70] sm:$0xff]  }
  0x2a   : > { %497 = vst.msk [vmem:[%s854_s5 + $0x70] sm:$0xff] %vm482_vm0, %v464_v62  ;;  %v434_v8 = vadd.f32 %v696_v51, %v338_v63  ;;  %v339_v9 = vadd.f32 %v828_v1, %v303_v2  ;;  %v305_v10 = vmul.f32 %v823_v0, %v637_v3  ;;  %v704_v11 = vunpack.c.l.bf16 %v750_v61 }
  0x2b   : > { %v465_v13 = vmax.f32 %v433_v4, 0.0  ;;  %v340_v14 = vadd.f32 %v828_v1, %v304_v5  ;;  %v306_v15 = vmul.f32 %v823_v0, %v640_v7  ;;  %v641_v16 = vunpack.c.h.bf16 %v735_v56 }
  0x2c   : > { %v466_v18 = vmax.f32 %v434_v8, 0.0  ;;  %v435_v19 = vadd.f32 %v697_v55, %v339_v9  ;;  %v341_v20 = vadd.f32 %v828_v1, %v305_v10  ;;  %v705_v21 = vunpack.c.h.bf16 %v750_v61 }
  0x2d   : > { %498 = vst.msk [vmem:[%s854_s5 + $0x78] sm:$0xff] %vm482_vm0, %v465_v13  ;;  %v436_v22 = vadd.f32 %v700_v60, %v340_v14  ;;  %v342_v23 = vadd.f32 %v828_v1, %v306_v15  ;;  %v307_v24 = vmul.f32 %v823_v0, %v641_v16  ;;  %v644_v25 = vunpack.c.l.bf16 %v736_v12 }
  0x2e   : > { %499 = vst.msk [vmem:[%s854_s5 + $0x80] sm:$0xff] %vm482_vm0, %v466_v18  ;;  %v467_v27 = vmax.f32 %v435_v19, 0.0  ;;  %v437_v28 = vadd.f32 %v701_v6, %v341_v20  ;;  %v708_v29 = vunpack.c.l.bf16 %v751_v17  ;;  %v645_v30 = vunpack.c.h.bf16 %v736_v12  ;;  %v740_v6 = vld [vmem:[%s813_s20 + $0x78] sm:$0xff]  }
  0x2f   : > { %v468_v32 = vmax.f32 %v436_v22, 0.0  ;;  %v438_v33 = vadd.f32 %v704_v11, %v342_v23  ;;  %v343_v34 = vadd.f32 %v828_v1, %v307_v24  ;;  %v308_v35 = vmul.f32 %v823_v0, %v644_v25  ;;  %v755_v11 = vld [vmem:[%s818_s23 + $0x78] sm:$0xff]  }
  0x30   : > { %500 = vst.msk [vmem:[%s854_s5 + $0x88] sm:$0xff] %vm482_vm0, %v467_v27  ;;  %v469_v36 = vmax.f32 %v437_v28, 0.0  ;;  %v309_v37 = vmul.f32 %v823_v0, %v645_v30  ;;  %v709_v38 = vunpack.c.h.bf16 %v751_v17  ;;  %v648_v39 = vunpack.c.l.bf16 %v737_v26 }
  0x31   : > { %501 = vst.msk [vmem:[%s854_s5 + $0x90] sm:$0xff] %vm482_vm0, %v468_v32  ;;  %v470_v42 = vmax.f32 %v438_v33, 0.0  ;;  %v439_v43 = vadd.f32 %v705_v21, %v343_v34  ;;  %v344_v44 = vadd.f32 %v828_v1, %v308_v35  ;;  %v712_v45 = vunpack.c.l.bf16 %v752_v31 }
  0x32   : > { %502 = vst.msk [vmem:[%s854_s5 + $0x98] sm:$0xff] %vm482_vm0, %v469_v36  ;;  %v345_v46 = vadd.f32 %v828_v1, %v309_v37  ;;  %v310_v47 = vmul.f32 %v823_v0, %v648_v39  ;;  %v649_v48 = vunpack.c.h.bf16 %v737_v26  ;;  %v713_v49 = vunpack.c.h.bf16 %v752_v31 }
  0x33   : > { %503 = vst.msk [vmem:[%s854_s5 + $0xa0] sm:$0xff] %vm482_vm0, %v470_v42  ;;  %v471_v51 = vmax.f32 %v439_v43, 0.0  ;;  %v440_v52 = vadd.f32 %v708_v29, %v344_v44  ;;  %v652_v53 = vunpack.c.l.bf16 %v738_v40  ;;  %v716_v54 = vunpack.c.l.bf16 %v753_v41 }
  0x34   : > { %v441_v55 = vadd.f32 %v709_v38, %v345_v46  ;;  %v346_v56 = vadd.f32 %v828_v1, %v310_v47  ;;  %v311_v57 = vmul.f32 %v823_v0, %v649_v48  ;;  %v653_v58 = vunpack.c.h.bf16 %v738_v40 }
  0x35   : > { %504 = vst.msk [vmem:[%s854_s5 + $0xa8] sm:$0xff] %vm482_vm0, %v471_v51  ;;  %v472_v60 = vmax.f32 %v440_v52, 0.0  ;;  %v312_v61 = vmul.f32 %v823_v0, %v652_v53  ;;  %v717_v62 = vunpack.c.h.bf16 %v753_v41  ;;  %v656_v63 = vunpack.c.l.bf16 %v739_v50 }
  0x36   : > { %v473_v2 = vmax.f32 %v441_v55, 0.0  ;;  %v442_v3 = vadd.f32 %v712_v45, %v346_v56  ;;  %v347_v4 = vadd.f32 %v828_v1, %v311_v57  ;;  %v313_v5 = vmul.f32 %v823_v0, %v653_v58 }
  0x37   : > { %505 = vst.msk [vmem:[%s854_s5 + $0xb0] sm:$0xff] %vm482_vm0, %v472_v60  ;;  %v348_v7 = vadd.f32 %v828_v1, %v312_v61  ;;  %v314_v8 = vmul.f32 %v823_v0, %v656_v63  ;;  %v720_v9 = vunpack.c.l.bf16 %v754_v59  ;;  %v657_v10 = vunpack.c.h.bf16 %v739_v50 }
  0x38   : > { %506 = vst.msk [vmem:[%s854_s5 + $0xb8] sm:$0xff] %vm482_vm0, %v473_v2  ;;  %v474_v12 = vmax.f32 %v442_v3, 0.0  ;;  %v443_v13 = vadd.f32 %v713_v49, %v347_v4  ;;  %v349_v14 = vadd.f32 %v828_v1, %v313_v5  ;;  %v721_v15 = vunpack.c.h.bf16 %v754_v59 }
  0x39   : > { %v444_v16 = vadd.f32 %v716_v54, %v348_v7  ;;  %v350_v17 = vadd.f32 %v828_v1, %v314_v8  ;;  %v315_v18 = vmul.f32 %v823_v0, %v657_v10  ;;  %v660_v19 = vunpack.c.l.bf16 %v740_v6 }
  0x3a   : > { %507 = vst.msk [vmem:[%s854_s5 + $0xc0] sm:$0xff] %vm482_vm0, %v474_v12  ;;  %v475_v20 = vmax.f32 %v443_v13, 0.0  ;;  %v445_v21 = vadd.f32 %v717_v62, %v349_v14  ;;  %v724_v22 = vunpack.c.l.bf16 %v755_v11  ;;  %v661_v23 = vunpack.c.h.bf16 %v740_v6 }
  0x3b   : > { %v476_v24 = vmax.f32 %v444_v16, 0.0  ;;  %v446_v25 = vadd.f32 %v720_v9, %v350_v17  ;;  %v351_v26 = vadd.f32 %v828_v1, %v315_v18  ;;  %v316_v27 = vmul.f32 %v823_v0, %v660_v19 }
  0x3c   : > { %508 = vst.msk [vmem:[%s854_s5 + $0xc8] sm:$0xff] %vm482_vm0, %v475_v20  ;;  %v477_v28 = vmax.f32 %v445_v21, 0.0  ;;  %v317_v29 = vmul.f32 %v823_v0, %v661_v23  ;;  %v725_v30 = vunpack.c.h.bf16 %v755_v11 }
  0x3d   : > { %509 = vst.msk [vmem:[%s854_s5 + $0xd0] sm:$0xff] %vm482_vm0, %v476_v24  ;;  %v478_v31 = vmax.f32 %v446_v25, 0.0  ;;  %v447_v32 = vadd.f32 %v721_v15, %v351_v26  ;;  %v352_v33 = vadd.f32 %v828_v1, %v316_v27 }
  0x3e   : > { %510 = vst.msk [vmem:[%s854_s5 + $0xd8] sm:$0xff] %vm482_vm0, %v477_v28  ;;  %v353_v34 = vadd.f32 %v828_v1, %v317_v29 }
  0x3f   : > { %511 = vst.msk [vmem:[%s854_s5 + $0xe0] sm:$0xff] %vm482_vm0, %v478_v31  ;;  %v479_v35 = vmax.f32 %v447_v32, 0.0  ;;  %v448_v36 = vadd.f32 %v724_v22, %v352_v33 }
  0x40   : > { %v449_v37 = vadd.f32 %v725_v30, %v353_v34 }
  0x41   : > { %512 = vst.msk [vmem:[%s854_s5 + $0xe8] sm:$0xff] %vm482_vm0, %v479_v35  ;;  %v480_v0 = vmax.f32 %v448_v36, 0.0 }
  0x42   : > { %v481_v38 = vmax.f32 %v449_v37, 0.0 }
  0x43   : > { %513 = vst.msk [vmem:[%s854_s5 + $0xf0] sm:$0xff] %vm482_vm0, %v480_v0 }
  0x44   : > { %514 = vst.msk [vmem:[%s854_s5 + $0xf8] sm:$0xff] %vm482_vm0, %v481_v38 }
  0x45 PF: > { %s14_s15 = sadd.s32 1, %s772_s15  }
  0x46   : > { %p11_p4 = scmp.ge.s32.totalorder %s14_s15, 4  }
  0x48   :  { %13 = sbr.rel (!%p11_p4) target bundleno = 1 (0x1), region = 69 }

// kernel: resblock_forward.3
= control target key start
LH: loop header
LB: loop body
LE: loop exit
PB: predicated region body
PF: predicated region fallthrough
CT: control target
= control target key end

     0   :  { %s2946_s12 = smov 0   ;;  %s4352_s0 = inlined_call_operand.vmem [shape: bf16[2,16,16,8], index: 0, kind: input, shape index: {}]   ;;  %s4353_s1 = inlined_call_operand.vmem [shape: bf16[3,24,8], index: 1, kind: input, shape index: {}]   ;;  %s4354_s2 = inlined_call_operand.vmem [shape: bf16[2,16,16,8], index: 2, kind: output, shape index: {0}]   ;;  %s4355_s3 = inlined_call_operand.vmem [shape: f32[2,2,8], index: 3, kind: output, shape index: {1}]  }
   0x1 LB: > { %s2575_s13 = sadd.s32 4294967295, %s2921_s12   ;;  %p2579_p0 = scmp.ge.s32.totalorder %s2921_s12, 1  ;;  %s2921_s12 = sphi %s2946_s12, %s14_s12  }
   0x2   : > { %p140_p1 = scmp.lt.s32.totalorder %s2921_s12, 3 }
   0x4   : > { %p141_p2 = pnand %p2579_p0, %p140_p1 }
   0x6   : > { %144 = sbr.rel (%p141_p2) target bundleno = 620 (0x26c), region = 28 }
   0xb   : > { %p168_p3 = scmp.lt.s32.totalorder %s2575_s13, 1  ;;  %vm190_vm0 = vsmask.f32 256  ;;  %vm497_vm1 = vsmask.f32 4368  ;;  %s2923_s18 = smov 8  }
   0xc   : > { %vm855_vm2 = vsmask.f32 3328  ;;  %vm856_vm3 = vsmask.f32 7440  ;;  %vm2981_vm4 = vmor %vm190_vm0, %vm497_vm1  ;;  %s2924_s19 = smov 16   ;;  %vm189_vm6 = vcmask 57344  }
   0xd   : > { %s4383_s13 = smov (!%p168_p3, %s2575_s13), 1  ;;  %vm3013_vm5 = vmor %vm855_vm2, %vm856_vm3  ;;  %vm183_vm8 = vcmask 191488   ;;  %vm1338_vm9 = vcmask 1043456   ;;  %vm246_vm10 = vcmask 191619   ;;  %vm247_vm11 = vsmask.f32 7950 }
   0xe   : > { %s2845_s14 = sshll.u32 %s4383_s13, 7  ;;  %vm3261_vm7 = vmand %vm189_vm6, %vm190_vm0  ;;  %vm1289_vm13 = vcmask 195584   ;;  %vm464_vm14 = vcmask 126016   ;;  %vm787_vm15 = vcmask 60416   ;;  %vm788_vm0 = vsmask.f32 7938 }
   0xf   : > { %s2962_s17 = scalar_lea.vmem %s4352_s0, %s2845_s14  ;;  %vm3293_vm12 = vmand %vm246_vm10, %vm247_vm11  ;;  %vm1098_vm3 = vcmask 191616   ;;  %s3881_s7 = scalar_lea.vmem %s4354_s2, %s2845_s14 }
  0x10   : > { %v305_v0 = vld [vmem:[%s2962_s17 + $0x8] sm:$0xf]  ;;  %v2966_v1 = vld [vmem:[%s2962_s17] sm:$0xf]  ;;  %v306_v2 = vld [vmem:[%s2962_s17 + $0xc] sm:$0xf] }
  0x11   : > { %371 = vrot.lane.b32.xlu1 %v305_v0, %s2923_s18  ;;  %v516_v3 = vshrl.u32 %v305_v0, 16  ;;  %v519_v4 = vshll.u32 %v305_v0, 16  ;;  %367 = vrot.lane.b32.xlu0 %v2966_v1, %s2923_s18  ;;  %v500_v5 = vshrl.u32 %v2966_v1, 16  ;;  %v503_v6 = vshll.u32 %v2966_v1, 16  ;;  %v304_v7 = vld [vmem:[%s2962_s17 + $0x4] sm:$0xf]  ;;  %vm3421_vm1 = vmand %vm787_vm15, %vm788_vm0 }
  0x12   : > { %v524_v8 = vshrl.u32 %v306_v2, 16  ;;  %v527_v9 = vshll.u32 %v306_v2, 16  ;;  %v508_v10 = vshrl.u32 %v304_v7, 16  ;;  %v511_v11 = vshll.u32 %v304_v7, 16  ;;  %v2986_v27 = vld [vmem:[%s2962_s17 + $0x58] sm:$0xf] }
  0x13   : > { %v518_v12 = vrot.slane %v516_v3, 7  ;;  %v867_v13 = vrot.slane %v516_v3, 4  ;;  %v868_v14 = vrot.slane %v519_v4, 5  ;;  %v502_v15 = vrot.slane %v500_v5, 7  ;;  %v308_v31 = vld [vmem:[%s2962_s17 + $0x14] sm:$0xf] }
  0x14   : > { %v526_v16 = vrot.slane %v524_v8, 7  ;;  %v871_v17 = vrot.slane %v527_v9, 5  ;;  %v873_v24 = vrot.slane %v524_v8, 4  ;;  %v510_v25 = vrot.slane %v508_v10, 7  ;;  %v3005_v39 = vld [vmem:[%s2962_s17 + $0x5c] sm:$0xf] }
  0x15   : > { %v2975_v18 = vor.u32 %v519_v4, %v518_v12  ;;  %v522_v19 = vrot.slane %v518_v12, 4  ;;  %v2977_v20 = vor.u32 %v503_v6, %v502_v15  ;;  %v506_v21 = vrot.slane %v502_v15, 4  ;;  %v307_v48 = vld [vmem:[%s2962_s17 + $0x10] sm:$0xf]  ;;  %v3026_v52 = vld [vmem:[%s2962_s17 + $0x18] sm:$0xf] }
  0x16   : > { %v529_v23 = vor.u32 %v527_v9, %v526_v16  ;;  %v869_v26 = vor.u32 %v868_v14, %v867_v13  ;;  %v676_v28 = vshrl.u32 %v2986_v27, 16  ;;  %v2989_v29 = vrot.slane %v511_v11, 5  ;;  %v3042_v0 = vld [vmem:[%s2962_s17 + $0x64] sm:$0xf]  ;;  %s2584_s8 = sshll.u32 %s4383_s13, 1 }
  0x17   : > { %v864_v30 = vrot.slane %v508_v10, 4  ;;  %v513_v33 = vor.u32 %v511_v11, %v510_v25  ;;  %v679_v34 = vshll.u32 %v2986_v27, 16  ;;  %v874_v36 = vor.u32 %v873_v24, %v871_v17  ;;  %s4245_s11 = scalar_lea.vmem %s4355_s3, %s2584_s8 }
  0x18   : > { %v2994_v32 = vsel %vm2981_vm4, %v522_v19, %v529_v23  ;;  %v870_v35 = vrot.slane %v869_v26, 4  ;;  %v3001_v37 = vrot.slane %v676_v28, 7  ;;  %v540_v42 = vshrl.u32 %v308_v31, 16  ;;  %v3080_v23 = vld [vmem:[%s2962_s17 + $0x24] sm:$0xf] }
  0x19   : > { %373 = vrot.lane.b32.xlu1 %v306_v2, %s2923_s18  ;;  %369 = vrot.lane.b32.xlu0 %v304_v7, %s2923_s18  ;;  %v865_v38 = vor.u32 %v864_v30, %v2989_v29  ;;  %v3009_v40 = vsel %vm2981_vm4, %v506_v21, %v513_v33  ;;  %v543_v46 = vshll.u32 %v308_v31, 16  ;;  %v684_v47 = vshrl.u32 %v3005_v39, 16 }
  0x1a   : > { %v3018_v43 = vor.u32 %v679_v34, %v3001_v37  ;;  %v542_v45 = vrot.slane %v540_v42, 7  ;;  %v872_v49 = vsel %vm3013_vm5, %v870_v35, %v871_v17  ;;  %v875_v50 = vrot.slane %v874_v36, 4 }
  0x1b   : > { %v866_v44 = vrot.slane %v865_v38, 4  ;;  %v532_v51 = vshrl.u32 %v307_v48, 16  ;;  %v686_v54 = vrot.slane %v684_v47, 7  ;;  %v687_v55 = vshll.u32 %v3005_v39, 16 }
  0x1c   : > { %v3028_v53 = vor.u32 %v543_v46, %v542_v45  ;;  %v548_v56 = vshrl.u32 %v3026_v52, 16  ;;  %v858_v57 = vrot.slane %v500_v5, 4  ;;  %v859_v58 = vrot.slane %v503_v6, 5  ;;  %v3054_v5 = vld [vmem:[%s2962_s17 + $0x60] sm:$0xf] }
  0x1d   : > { %1004 = vrot.lane.b32.xlu2 %v866_v44, %s2924_s19  ;;  %v3032_v59 = vrot.slane %v532_v51, 7  ;;  %v535_v60 = vshll.u32 %v307_v48, 16  ;;  %v3034_v61 = vor.u32 %v687_v55, %v686_v54  ;;  %v551_v63 = vshll.u32 %v3026_v52, 16  ;;  %v3118_v54 = vld [vmem:[%s2962_s17 + $0x68] sm:$0xf] }
  0x1e   : > { %v3038_v62 = vrot.slane %v548_v56, 7  ;;  %v860_v3 = vor.u32 %v859_v58, %v858_v57  ;;  %v700_v4 = vshrl.u32 %v3042_v0, 16  ;;  %v3056_v6 = vrot.slane %v543_v46, 5  ;;  %v3121_v57 = vld [vmem:[%s2962_s17 + $0x6c] sm:$0xf] }
  0x1f   : > { %v3047_v1 = vor.u32 %v535_v60, %v3032_v59  ;;  %v882_v7 = vrot.slane %v540_v42, 4  ;;  %v692_v8 = vshrl.u32 %v3054_v5, 16  ;;  %v961_v9 = vrot.slane %v687_v55, 5 }
  0x20   : > { %v3050_v2 = vor.u32 %v551_v63, %v3038_v62  ;;  %v963_v10 = vrot.slane %v684_v47, 4  ;;  %v702_v11 = vrot.slane %v700_v4, 7  ;;  %v703_v12 = vshll.u32 %v3042_v0, 16 }
  0x21   : > { %1006 = vrot.lane.b32.xlu1 %v872_v49, %s2924_s19  ;;  %1008 = vrot.lane.b32.xlu0 %v875_v50, %s2924_s19  ;;  %v861_v13 = vrot.slane %v860_v3, 4  ;;  %v3065_v14 = vrot.slane %v692_v8, 7  ;;  %v695_v15 = vshll.u32 %v3054_v5, 16  ;;  %v883_v21 = vor.u32 %v882_v7, %v3056_v6  ;;  %v310_v50 = vld [vmem:[%s2962_s17 + $0x1c] sm:$0xf] }
  0x22   : > { %v3068_v16 = vor.u32 %v703_v12, %v702_v11  ;;  %v964_v19 = vor.u32 %v963_v10, %v961_v9  ;;  %v957_v24 = vrot.slane %v676_v28, 4  ;;  %v958_v25 = vrot.slane %v679_v34, 5 }
  0x23   : > { %v3073_v17 = vor.u32 %v695_v15, %v3065_v14  ;;  %v863_v26 = vsel %vm3013_vm5, %v861_v13, %v2989_v29  ;;  %v572_v30 = vshrl.u32 %v3080_v23, 16  ;;  %v884_v36 = vrot.slane %v883_v21, 4  ;;  %v3097_v29 = vld [vmem:[%s2962_s17 + $0x20] sm:$0xf] }
  0x24   : > { %v965_v35 = vrot.slane %v964_v19, 4  ;;  %v876_v38 = vrot.slane %v532_v51, 4  ;;  %v959_v28 = vor.u32 %v958_v25, %v957_v24  ;;  %v564_v42 = vshrl.u32 %v3097_v29, 16 }
  0x25   : > { %375 = vrot.lane.b32.xlu2 %v307_v48, %s2923_s18  ;;  %v574_v33 = vrot.slane %v572_v30, 7  ;;  %v567_v47 = vshll.u32 %v3097_v29, 16  ;;  %v556_v55 = vshrl.u32 %v310_v50, 16  ;;  %v708_v58 = vshrl.u32 %v3118_v54, 16 }
  0x26   : > { %v960_v44 = vrot.slane %v959_v28, 4  ;;  %v3104_v46 = vrot.slane %v564_v42, 7  ;;  %v716_v3 = vshrl.u32 %v3121_v57, 16  ;;  %v711_v13 = vshll.u32 %v3118_v54, 16 }
  0x27   : > { %v558_v7 = vrot.slane %v556_v55, 7  ;;  %v710_v11 = vrot.slane %v708_v58, 7  ;;  %v970_v25 = vrot.slane %v703_v12, 5 }
  0x28   : > { %v3112_v48 = vor.u32 %v567_v47, %v3104_v46  ;;  %v962_v49 = vsel %vm3013_vm5, %v960_v44, %v961_v9  ;;  %v886_v9 = vrot.slane %v551_v63, 5  ;;  %v972_v63 = vrot.slane %v700_v4, 4 }
  0x29   : > { %411 = vrot.lane.b32.xlu1 %v2986_v27, %s2923_s18  ;;  %377 = vrot.lane.b32.xlu0 %v308_v31, %s2923_s18  ;;  %v575_v31 = vshll.u32 %v3080_v23, 16  ;;  %v877_v27 = vrot.slane %v535_v60, 5  ;;  %v559_v60 = vshll.u32 %v310_v50, 16  ;;  %v714_v21 = vrot.slane %v710_v11, 4 }
  0x2a   : > { %v3139_v24 = vor.u32 %v711_v13, %v710_v11  ;;  %v973_v12 = vor.u32 %v972_v63, %v970_v25  ;;  %v891_v4 = vrot.slane %v556_v55, 4  ;;  %v900_v63 = vrot.slane %v572_v30, 4 }
  0x2b   : > { %v3094_v34 = vor.u32 %v575_v31, %v574_v33  ;;  %v878_v45 = vor.u32 %v877_v27, %v876_v38  ;;  %v3137_v19 = vor.u32 %v559_v60, %v558_v7  ;;  %v889_v38 = vrot.slane %v559_v60, 5  ;;  %v3176_v60 = vld [vmem:[%s2962_s17 + $0x2c] sm:$0xf]  ;;  %v3179_v7 = vld [vmem:[%s2962_s17 + $0x74] sm:$0xf] }
  0x2d   : > { %1002 = vrot.lane.b32.xlu2 %v863_v26, %s2924_s19  ;;  %v879_v51 = vrot.slane %v878_v45, 4  ;;  %v892_v45 = vor.u32 %v891_v4, %v889_v38  ;;  %v894_v4 = vrot.slane %v564_v42, 4 }
  0x2f   : > { %v881_v10 = vsel %vm3013_vm5, %v879_v51, %v3056_v6  ;;  %v967_v51 = vrot.slane %v695_v15, 5  ;;  %v732_v15 = vshrl.u32 %v3179_v7, 16 }
  0x31   : > { %1048 = vrot.lane.b32.xlu1 %v965_v35, %s2924_s19  ;;  %1012 = vrot.lane.b32.xlu0 %v884_v36, %s2924_s19  ;;  %v3155_v35 = vld [vmem:[%s2962_s17 + $0x70] sm:$0xf]  ;;  %v734_v11 = vrot.slane %v732_v15, 7 }
  0x32   : > { %v724_v27 = vshrl.u32 %v3155_v35, 16  ;;  %v727_v44 = vshll.u32 %v3155_v35, 16 }
  0x34   : > { %v3160_v28 = vrot.slane %v724_v27, 7 }
  0x35   : > { %413 = vrot.lane.b32.xlu2 %v3005_v39, %s2923_s18  ;;  %v885_v39 = vrot.slane %v548_v56, 4  ;;  %v718_v56 = vrot.slane %v716_v3, 7 }
  0x37   : > { %v887_v26 = vor.u32 %v886_v9, %v885_v39  ;;  %v3173_v39 = vor.u32 %v727_v44, %v3160_v28 }
  0x39   : > { %379 = vrot.lane.b32.xlu1 %v3026_v52, %s2923_s18  ;;  %1046 = vrot.lane.b32.xlu0 %v962_v49, %s2924_s19  ;;  %v719_v52 = vshll.u32 %v3121_v57, 16  ;;  %v888_v36 = vrot.slane %v887_v26, 4  ;;  %v966_v49 = vrot.slane %v692_v8, 4  ;;  %v893_v8 = vrot.slane %v892_v45, 4 }
  0x3b   : > { %v721_v6 = vor.u32 %v719_v52, %v718_v56  ;;  %v890_v55 = vsel %vm3013_vm5, %v888_v36, %v889_v38  ;;  %v735_v56 = vshll.u32 %v3179_v7, 16  ;;  %v3205_v36 = vld [vmem:[%s2962_s17 + $0x30] sm:$0xf]  ;;  %v975_v38 = vrot.slane %v708_v58, 4 }
  0x3d   : > { %1010 = vrot.lane.b32.xlu2 %v881_v10, %s2924_s19  ;;  %v3148_v33 = vsel %vm2981_vm4, %v714_v21, %v721_v6  ;;  %v591_v10 = vshll.u32 %v3176_v60, 16  ;;  %v898_v21 = vrot.slane %v575_v31, 5  ;;  %v3194_v26 = vor.u32 %v735_v56, %v734_v11 }
  0x3e   : > { %v895_v31 = vrot.slane %v567_v47, 5  ;;  %v599_v47 = vshll.u32 %v3205_v36, 16 }
  0x3f   : > { %v901_v30 = vor.u32 %v900_v63, %v898_v21 }
  0x41   : > { %417 = vrot.lane.b32.xlu1 %v3042_v0, %s2923_s18  ;;  %415 = vrot.lane.b32.xlu0 %v3054_v5, %s2923_s18  ;;  %v974_v0 = vrot.slane %v973_v12, 4  ;;  %v588_v5 = vshrl.u32 %v3176_v60, 16 }
  0x43   : > { %v590_v9 = vrot.slane %v588_v5, 7 }
  0x45   : > { %381 = vrot.lane.b32.xlu2 %v310_v50, %s2923_s18  ;;  %v968_v50 = vor.u32 %v967_v51, %v966_v49  ;;  %v3192_v6 = vor.u32 %v591_v10, %v590_v9  ;;  %v902_v49 = vrot.slane %v901_v30, 4  ;;  %v896_v51 = vor.u32 %v895_v31, %v894_v4 }
  0x46   : > { %v979_v9 = vrot.slane %v719_v52, 5 }
  0x47   : > { %v969_v12 = vrot.slane %v968_v50, 4  ;;  %v897_v63 = vrot.slane %v896_v51, 4  ;;  %v198_v51 = vld [vmem:[#allocation2 + $0x10] sm:$0x1] }
  0x49   : > { %1014 = vrot.lane.b32.xlu1 %v890_v55, %s2924_s19  ;;  %1052 = vrot.lane.b32.xlu0 %v974_v0, %s2924_s19  ;;  %v976_v0 = vrot.slane %v711_v13, 5  ;;  %v971_v45 = vsel %vm3013_vm5, %v969_v12, %v970_v25  ;;  %v3222_v13 = vld [vmem:[%s2962_s17 + $0x28] sm:$0xf]  ;;  %v3225_v25 = vld [vmem:[%s2962_s17 + $0x34] sm:$0xf]  ;;  %v981_v55 = vrot.slane %v716_v3, 4 }
  0x4a   : > { %v604_v50 = vshrl.u32 %v3225_v25, 16  ;;  %v583_v4 = vshll.u32 %v3222_v13, 16  ;;  %v607_v3 = vshll.u32 %v3225_v25, 16 }
  0x4b   : > { %v982_v30 = vor.u32 %v981_v55, %v979_v9  ;;  %v3265_v55 = vrot.slane %v735_v56, 5  ;;  %v2925_v56 = vmov 0  }
  0x4c   : > { %v606_v31 = vrot.slane %v604_v50, 7  ;;  %184 = vst.msk [vmem:[#allocation2] sm:$0xf] %vm183_vm8, %v2925_v56 }
  0x4d   : > { %1016 = vrot.lane.b32.xlu2 %v893_v8, %s2924_s19  ;;  %v580_v8 = vshrl.u32 %v3222_v13, 16  ;;  %185 = vst.msk [vmem:[#allocation2 + $0x4] sm:$0xf] %vm183_vm8, %v2925_v56 }
  0x4e   : > { %187 = vst.msk [vmem:[#allocation2 + $0x88] sm:$0xf] %vm183_vm8, %v2925_v56 }
  0x4f   : > { %v3236_v12 = vrot.slane %v580_v8, 7  ;;  %188 = vst.msk [vmem:[#allocation2 + $0x8c] sm:$0xf] %vm183_vm8, %v2925_v56  ;;  %vm3503_vm8 = vmand %vm1098_vm3, %vm855_vm2  ;;  %vm1431_vm2 = vcmask 64512  }
  0x51   : > { %385 = vrot.lane.b32.xlu1 %v3080_v23, %s2923_s18  ;;  %383 = vrot.lane.b32.xlu0 %v3097_v29, %s2923_s18  ;;  %v596_v23 = vshrl.u32 %v3205_v36, 16  ;;  %v977_v29 = vor.u32 %v976_v0, %v975_v38  ;;  %v3245_v38 = vor.u32 %v583_v4, %v3236_v12  ;;  %v899_v0 = vsel %vm3013_vm5, %v897_v63, %v898_v21 }
  0x52   : > { %v199_v21 = vsel %vm3261_vm7, 0, %v198_v51  ;;  %v586_v41 = vrot.slane %v3236_v12, 4 }
  0x53   : > { %v3212_v42 = vrot.slane %v596_v23, 7  ;;  %v978_v11 = vrot.slane %v977_v29, 4  ;;  %200 = vst [vmem:[#allocation2 + $0x10] sm:$0x1] %v199_v21  ;;  %v255_v21 = vld [vmem:[#allocation2 + $0x14] sm:$0x8] }
  0x55   : > { %1050 = vrot.lane.b32.xlu2 %v971_v45, %s2924_s19  ;;  %v3219_v58 = vor.u32 %v599_v47, %v3212_v42  ;;  %v980_v52 = vsel %vm3013_vm5, %v978_v11, %v979_v9  ;;  %v909_v45 = vrot.slane %v588_v5, 4  ;;  %v195_v9 = vld [vmem:[#allocation2 + $0x8] sm:$0x1]  ;;  %v990_v11 = vrot.slane %v732_v15, 4 }
  0x56   : > { %v196_v5 = vsel %vm3261_vm7, 0, %v195_v9 }
  0x57   : > { %197 = vst [vmem:[#allocation2 + $0x8] sm:$0x1] %v196_v5  ;;  %v991_v15 = vor.u32 %v990_v11, %v3265_v55  ;;  %v903_v5 = vrot.slane %v580_v8, 4  ;;  %v249_v8 = vld [vmem:[#allocation2 + $0x4] sm:$0x8] }
  0x59   : > { %1020 = vrot.lane.b32.xlu1 %v902_v49, %s2924_s19  ;;  %421 = vrot.lane.b32.xlu0 %v3121_v57, %s2923_s18  ;;  %v3249_v57 = vor.u32 %v607_v3, %v606_v31  ;;  %v983_v49 = vrot.slane %v982_v30, 4  ;;  %v992_v9 = vrot.slane %v991_v15, 4 }
  0x5d   : > { %419 = vrot.lane.b32.xlu2 %v3118_v54, %s2923_s18  ;;  %v3257_v54 = vrot.slane %v591_v10, 5  ;;  %v1199_v10 = vld [vmem:[%s4353_s1 + $0x8] sm:$0xf] }
  0x5e   : > { %v1285_v63 = vunpack.c.l.b16 %v1199_v10  ;;  %v252_v10 = vld [vmem:[#allocation2 + $0xc] sm:$0x8] }
  0x5f   : > { %v910_v31 = vor.u32 %v909_v45, %v3257_v54  ;;  %v984_v45 = vrot.slane %v724_v27, 4  ;;  %v192_v27 = vld [vmem:[#allocation2] sm:$0x1] }
  0x60   : > { %v1287_v30 = vpack.c.b16 %v1285_v63, %v1285_v63  ;;  %v193_v56 = vsel %vm3261_vm7, 0, %v192_v27  ;;  %v916_v27 = vrot.slane %v607_v3, 5  ;;  %v2671_v3 = vld [vmem:[%s4353_s1 + $0x14] sm:$0xf] }
  0x61   : > { %1054 = vrot.lane.b32.xlu1 %v980_v52, %s2924_s19  ;;  %1018 = vrot.lane.b32.xlu0 %v899_v0, %s2924_s19  ;;  %v3287_v0 = vld [vmem:[%s2962_s17 + $0x3c] sm:$0xf]  ;;  %v911_v11 = vrot.slane %v910_v31, 4  ;;  %194 = vst [vmem:[#allocation2] sm:$0x1] %v193_v56  ;;  %v918_v56 = vrot.slane %v604_v50, 4 }
  0x62   : > { %v1340_v52 = vsel %vm1338_vm9, %v1287_v30, 0  ;;  %v620_v63 = vshrl.u32 %v3287_v0, 16  ;;  %v623_v15 = vshll.u32 %v3287_v0, 16  ;;  %v2758_v50 = vld [vmem:[%s4353_s1 + $0x20] sm:$0xf] }
  0x63   : > { %1348 = vmatpush.bf16.msra.mxu0 %v1340_v52  ;;  %2898 = vmatpush.bf16.msra.mxu3 %v1340_v52  ;;  %v2863_v52 = vld [vmem:[%s4353_s1] sm:$0xff] }
  0x64   : > { %v622_v30 = vrot.slane %v620_v63, 7 }
  0x65   : > { %1056 = vrot.lane.b32.xlu2 %v983_v49, %s2924_s19  ;;  %v985_v49 = vrot.slane %v727_v44, 5  ;;  %v904_v44 = vrot.slane %v583_v4, 5  ;;  %v250_v4 = vsel %vm3293_vm12, 0, %v249_v8  ;;  %v1947_v8 = vunpack.c.l.b16 %v2758_v50  ;;  %v2880_v50 = vld [vmem:[%s4353_s1 + $0xc] sm:$0xff] }
  0x66   : > { %251 = vst [vmem:[#allocation2 + $0x4] sm:$0x8] %v250_v4 }
  0x67   : > { %v986_v31 = vor.u32 %v985_v49, %v984_v45  ;;  %1349 = vmatpush.bf16.msra.mxu0 %v2863_v52  ;;  %2899 = vmatpush.bf16.msra.mxu3 %v2863_v52  ;;  %v912_v45 = vrot.slane %v596_v23, 4  ;;  %v913_v49 = vrot.slane %v599_v47, 5  ;;  %v1949_v52 = vpack.c.b16 %v1947_v8, %v1947_v8 }
  0x69   : > { %423 = vrot.lane.b32.xlu1 %v3155_v35, %s2923_s18  ;;  %389 = vrot.lane.b32.xlu0 %v3176_v60, %s2923_s18  ;;  %v256_v60 = vsel %vm3293_vm12, 0, %v255_v21  ;;  %v253_v35 = vsel %vm3293_vm12, 0, %v252_v10  ;;  %v201_v21 = vld [vmem:[#allocation2 + $0x18] sm:$0x1]  ;;  %v987_v10 = vrot.slane %v986_v31, 4 }
  0x6a   : > { %257 = vst [vmem:[#allocation2 + $0x14] sm:$0x8] %v256_v60  ;;  %v202_v60 = vsel %vm3261_vm7, 0, %v201_v21  ;;  %v3348_v21 = vld [vmem:[%s2962_s17 + $0x44] sm:$0xf] }
  0x6b   : > { %254 = vst [vmem:[#allocation2 + $0xc] sm:$0x8] %v253_v35  ;;  %v905_v35 = vor.u32 %v904_v44, %v903_v5  ;;  %v989_v23 = vsel %vm3013_vm5, %v987_v10, %v3265_v55  ;;  %v919_v5 = vor.u32 %v918_v56, %v916_v27  ;;  %v1585_v44 = vunpack.c.l.b16 %v2671_v3  ;;  %v258_v3 = vld [vmem:[#allocation2 + $0x1c] sm:$0x8] }
  0x6c   : > { %203 = vst [vmem:[#allocation2 + $0x18] sm:$0x1] %v202_v60  ;;  %v538_v55 = vrot.slane %v3032_v59, 4  ;;  %v3351_v60 = vld [vmem:[%s2962_s17 + $0x40] sm:$0xf]  ;;  %v3353_v10 = vrot.slane %v623_v15, 5 }
  0x6d   : > { %387 = vrot.lane.b32.xlu2 %v3222_v13, %s2923_s18  ;;  %v3312_v13 = vor.u32 %v623_v15, %v622_v30  ;;  %v2847_v47 = vld [vmem:[#allocation2] sm:$0xff]  ;;  %v1587_v30 = vpack.c.b16 %v1585_v44, %v1585_v44  ;;  %v4357_v59 = vshrl.u32 %v3348_v21, 16  ;;  %v4358_v15 = vshll.u32 %v3348_v21, 16 }
  0x6e   : > { %2653 = vmatmul.msk.bf16.vlgmr.msra.gmra.mxu0 %vm1289_vm13, %v2847_v47 }
  0x6f   : > { %v1638_v56 = vsel %vm1338_vm9, %v1587_v30, 0  ;;  %v3396_v30 = vsel %vm2981_vm4, %v538_v55, %v3028_v53 }
  0x70   : > { %1646 = vmatpush.bf16.msra.mxu1 %v1638_v56  ;;  %2900 = vmatpush.bf16.msrb.mxu3 %v1638_v56 }
  0x71   : > { %1060 = vrot.lane.b32.xlu1 %v992_v9, %s2924_s19  ;;  %1024 = vrot.lane.b32.xlu0 %v911_v11, %s2924_s19  ;;  %v914_v9 = vor.u32 %v913_v49, %v912_v45  ;;  %v906_v11 = vrot.slane %v905_v35, 4  ;;  %v228_v45 = vld [vmem:[#allocation2 + $0x60] sm:$0x1]  ;;  %v920_v49 = vrot.slane %v919_v5, 4  ;;  %v927_v35 = vrot.slane %v620_v63, 4  ;;  %v3381_v5 = vld [vmem:[%s4353_s1 + $0x18] sm:$0xff] }
  0x72   : > { %v631_v63 = vshll.u32 %v3351_v60, 16 }
  0x73   : > { %v915_v31 = vrot.slane %v914_v9, 4  ;;  %v908_v4 = vsel %vm3013_vm5, %v906_v11, %v3257_v54  ;;  %v3359_v9 = vsel %vm1338_vm9, %v1949_v52, 0  ;;  %v229_v54 = vsel %vm3261_vm7, 0, %v228_v45  ;;  %v285_v45 = vld [vmem:[#allocation2 + $0x64] sm:$0x8] }
  0x74   : > { %230 = vst [vmem:[#allocation2 + $0x60] sm:$0x1] %v229_v54  ;;  %2008 = vmatpush.bf16.msra.mxu2 %v3359_v9  ;;  %v682_v52 = vrot.slane %v3001_v37, 4  ;;  %1647 = vmatpush.bf16.msra.mxu1 %v2880_v50  ;;  %v286_v55 = vsel %vm3293_vm12, 0, %v285_v45  ;;  %v3407_v37 = vld [vmem:[%s2962_s17 + $0x48] sm:$0xf] }
  0x75   : > { %425 = vrot.lane.b32.xlu2 %v3179_v7, %s2923_s18  ;;  %v917_v47 = vsel %vm3013_vm5, %v915_v31, %v916_v27  ;;  %v259_v31 = vsel %vm3293_vm12, 0, %v258_v3  ;;  %2901 = vmatpush.bf16.msrb.mxu3 %v2880_v50  ;;  %287 = vst [vmem:[#allocation2 + $0x64] sm:$0x8] %v286_v55 }
  0x76   : > { %260 = vst [vmem:[#allocation2 + $0x1c] sm:$0x8] %v259_v31  ;;  %v3416_v54 = vsel %vm2981_vm4, %v682_v52, %v3034_v61  ;;  %v4359_v61 = vshll.u32 %v3407_v37, 16 }
  0x77   : > { %v3337_v7 = vpop.permute.xlu2 %1004 }
  0x78   : > { %2009 = vmatpush.bf16.msra.mxu2 %v3381_v5 }
  0x79   : > { %391 = vrot.lane.b32.xlu1 %v3205_v36, %s2923_s18  ;;  %1058 = vrot.lane.b32.xlu0 %v989_v23, %s2924_s19  ;;  %v628_v36 = vshrl.u32 %v3351_v60, 16  ;;  %v638_v23 = vrot.slane %v4357_v59, 7  ;;  %v3453_v59 = vld [vmem:[%s2962_s17 + $0x78] sm:$0xf] }
  0x7b   : > { %v3369_v11 = vrot.slane %v628_v36, 7  ;;  %v3385_v8 = vor.u32 %v4358_v15, %v638_v23  ;;  %v4356_v23 = vshrl.u32 %v3407_v37, 16 }
  0x7d   : > { %1022 = vrot.lane.b32.xlu2 %v908_v4, %s2924_s19  ;;  %v3388_v27 = vor.u32 %v631_v63, %v3369_v11  ;;  %v928_v4 = vor.u32 %v927_v35, %v3353_v10 }
  0x7f   : > { %v376_v44 = vpop.permute.xlu2 %375  ;;  %4369 = vst [vmem:[#allocation4_spill] sm:$0xff] %v3388_v27  ;;  %v929_v35 = vrot.slane %v928_v4, 4 }
  0x80   : > { %469 = vst.msk [vmem:[#allocation2 + $0x18] sm:$0xf] %vm464_vm14, %v376_v44 }
  0x81   : > { %1028 = vrot.lane.b32.xlu0 %v920_v49, %s2924_s19  ;;  %1026 = vrot.lane.b32.xlu1 %v917_v47, %s2924_s19  ;;  %v317_v49 = vld [vmem:[%s2962_s17 + $0x38] sm:$0xf] }
  0x82   : > { %v612_v47 = vshrl.u32 %v317_v49, 16  ;;  %v615_v3 = vshll.u32 %v317_v49, 16 }
  0x83   : > { %v372_v56 = vpop.permute.xlu1 %371  ;;  %v368_v53 = vpop.permute.xlu0 %367 }
  0x84   : > { %467 = vst.msk [vmem:[#allocation2 + $0x10] sm:$0xf] %vm464_vm14, %v372_v56  ;;  %v3430_v52 = vrot.slane %v612_v47, 7  ;;  %v921_v45 = vrot.slane %v612_v47, 4  ;;  %v922_v56 = vrot.slane %v615_v3, 5  ;;  %v931_v47 = vrot.slane %v631_v63, 5 }
  0x85   : > { %465 = vst.msk [vmem:[#allocation2 + $0x8] sm:$0xf] %vm464_vm14, %v368_v53  ;;  %393 = vrot.lane.b32.xlu2 %v3225_v25, %s2923_s18  ;;  %v3427_v25 = vrot.slane %v4356_v23, 7  ;;  %v3436_v53 = vld [vmem:[%s2962_s17 + $0x7c] sm:$0xf] }
  0x86   : > { %v3447_v23 = vor.u32 %v615_v3, %v3430_v52  ;;  %v923_v27 = vor.u32 %v922_v56, %v921_v45  ;;  %v751_v63 = vshll.u32 %v3436_v53, 16 }
  0x87   : > { %v799_v44 = vld [vmem:[#allocation2 + $0x18] sm:$0xf]  ;;  %v1003_v31 = vpop.permute.xlu2 %1002  ;;  %v3444_v55 = vor.u32 %v4359_v61, %v3427_v25 }
  0x88   : > { %v800_v4 = vsel %vm3421_vm1, %v3047_v1, %v799_v44  ;;  %v930_v1 = vrot.slane %v628_v36, 4  ;;  %v748_v44 = vshrl.u32 %v3436_v53, 16 }
  0x89   : > { %397 = vrot.lane.b32.xlu0 %v3287_v0, %s2923_s18  ;;  %801 = vst [vmem:[#allocation2 + $0x18] sm:$0xf] %v800_v4  ;;  %1032 = vrot.lane.b32.xlu1 %v929_v35, %s2924_s19  ;;  %v740_v35 = vshrl.u32 %v3453_v59, 16 }
  0x8a   : > { %4372 = vst [vmem:[#allocation5_spill] sm:$0xff] %v3444_v55  ;;  %v750_v36 = vrot.slane %v748_v44, 7  ;;  %v932_v56 = vor.u32 %v931_v47, %v930_v1  ;;  %v698_v1 = vrot.slane %v3065_v14, 4  ;;  %v261_v14 = vld [vmem:[#allocation2 + $0x24] sm:$0x8] }
  0x8b   : > { %v795_v0 = vld [vmem:[#allocation2 + $0x10] sm:$0xf]  ;;  %v374_v4 = vpop.permute.xlu1 %373  ;;  %v370_v15 = vpop.permute.xlu0 %369  ;;  %v3469_v45 = vrot.slane %v740_v35, 7 }
  0x8c   : > { %v796_v61 = vsel %vm3421_vm1, %v2975_v18, %v795_v0  ;;  %v790_v3 = vld [vmem:[#allocation2 + $0x8] sm:$0xf]  ;;  %468 = vst.msk [vmem:[#allocation2 + $0x14] sm:$0xf] %vm464_vm14, %v374_v4  ;;  %v743_v18 = vshll.u32 %v3453_v59, 16  ;;  %v3474_v0 = vor.u32 %v751_v63, %v750_v36  ;;  %v924_v4 = vrot.slane %v923_v27, 4 }
  0x8d   : > { %797 = vst [vmem:[#allocation2 + $0x10] sm:$0xf] %v796_v61  ;;  %v791_v55 = vsel %vm3421_vm1, %v2977_v20, %v790_v3  ;;  %395 = vrot.lane.b32.xlu2 %v317_v49, %s2923_s18  ;;  %v204_v49 = vld [vmem:[#allocation2 + $0x20] sm:$0x1]  ;;  %v933_v27 = vrot.slane %v932_v56, 4 }
  0x8e   : > { %792 = vst [vmem:[#allocation2 + $0x8] sm:$0xf] %v791_v55  ;;  %v3481_v20 = vor.u32 %v743_v18, %v3469_v45  ;;  %v554_v55 = vrot.slane %v3038_v62, 4  ;;  %v926_v62 = vsel %vm3013_vm5, %v924_v4, %v3353_v10  ;;  %v262_v10 = vsel %vm3293_vm12, 0, %v261_v14  ;;  %v288_v4 = vld [vmem:[#allocation2 + $0x6c] sm:$0x8] }
  0x8f   : > { %798 = vst.msk [vmem:[#allocation2 + $0x14] sm:$0xf] %vm787_vm15, %v2994_v32  ;;  %v414_v61 = vpop.permute.xlu2 %413  ;;  %v4373_v32 = vshll.u32 %v3348_v21, 16 }
  0x90   : > { %466 = vst.msk [vmem:[#allocation2 + $0xc] sm:$0xf] %vm464_vm14, %v370_v15  ;;  %v562_v56 = vsel %vm2981_vm4, %v554_v55, %v3137_v19  ;;  %v4378_v55 = vshll.u32 %v3407_v37, 16 }
  0x91   : > { %794 = vst.msk [vmem:[#allocation2 + $0xc] sm:$0xf] %vm787_vm15, %v3009_v40  ;;  %401 = vrot.lane.b32.xlu1 %v3348_v21, %s2923_s18  ;;  %399 = vrot.lane.b32.xlu0 %v3351_v60, %s2923_s18  ;;  %v934_v15 = vrot.slane %v4373_v32, 5  ;;  %v205_v40 = vsel %vm3261_vm7, 0, %v204_v49  ;;  %v4377_v32 = vshrl.u32 %v3407_v37, 16 }
  0x92   : > { %1099 = vst.msk [vmem:[#allocation2 + $0x8] sm:$0xf] %vm1098_vm3, %v1003_v31  ;;  %v4376_v31 = vshrl.u32 %v3348_v21, 16 }
  0x93   : > { %v1007_v47 = vpop.permute.xlu1 %1006  ;;  %v1009_v3 = vpop.permute.xlu0 %1008  ;;  %488 = vst.msk [vmem:[#allocation2 + $0x64] sm:$0xf] %vm464_vm14, %v414_v61  ;;  %v3521_v61 = vsel %vm2981_vm4, %v698_v1, %v3068_v16  ;;  %v935_v49 = vsel %vm3013_vm5, %v933_v27, %v934_v15  ;;  %v940_v16 = vrot.slane %v4378_v55, 5  ;;  %v289_v1 = vsel %vm3293_vm12, 0, %v288_v4  ;;  %v3555_v4 = vld [vmem:[%s2962_s17 + $0x50] sm:$0xf] }
  0x94   : > { %1105 = vst.msk [vmem:[#allocation2 + $0x10] sm:$0xf] %vm1098_vm3, %v1007_v47  ;;  %v936_v36 = vrot.slane %v4376_v31, 4 }
  0x95   : > { %838 = vst.msk [vmem:[#allocation2 + $0x64] sm:$0xf] %vm787_vm15, %v3416_v54  ;;  %1030 = vrot.lane.b32.xlu2 %v926_v62, %s2924_s19  ;;  %v939_v62 = vrot.slane %v4377_v32, 4  ;;  %v570_v32 = vrot.slane %v3104_v46, 4 }
  0x96   : > { %v1106_v21 = vld [vmem:[#allocation2 + $0x14] sm:$0xf]  ;;  %206 = vst [vmem:[#allocation2 + $0x20] sm:$0x1] %v205_v40  ;;  %v937_v47 = vor.u32 %v936_v36, %v934_v15  ;;  %v3549_v15 = vrot.slane %v751_v63, 5  ;;  %v999_v36 = vrot.slane %v748_v44, 4 }
  0x97   : > { %v1107_v54 = vsel %vm3503_vm8, %v1009_v3, %v1106_v21  ;;  %v1011_v14 = vpop.permute.xlu2 %1010  ;;  %263 = vst [vmem:[#allocation2 + $0x24] sm:$0x8] %v262_v10  ;;  %v231_v3 = vld [vmem:[#allocation2 + $0x68] sm:$0x1]  ;;  %v3541_v21 = vld [vmem:[%s2962_s17 + $0x4c] sm:$0xf] }
  0x98   : > { %v1102_v19 = vld [vmem:[#allocation2 + $0xc] sm:$0xf]  ;;  %1108 = vst [vmem:[#allocation2 + $0x14] sm:$0xf] %v1107_v54  ;;  %v938_v40 = vrot.slane %v937_v47, 4  ;;  %v660_v54 = vshrl.u32 %v3555_v4, 16  ;;  %v1000_v46 = vor.u32 %v999_v36, %v3549_v15 }
  0x99   : > { %v1103_v27 = vsel %vm3503_vm8, %v3337_v7, %v1102_v19  ;;  %403 = vrot.lane.b32.xlu1 %v3407_v37, %s2923_s18  ;;  %1034 = vrot.lane.b32.xlu0 %v935_v49, %s2924_s19  ;;  %1109 = vst.msk [vmem:[#allocation2 + $0x18] sm:$0xf] %vm1098_vm3, %v1011_v14  ;;  %v941_v7 = vor.u32 %v940_v16, %v939_v62  ;;  %v232_v37 = vsel %vm3261_vm7, 0, %v231_v3  ;;  %v655_v49 = vshll.u32 %v3541_v21, 16  ;;  %v3563_v63 = vld [vmem:[%s2962_s17 + $0x54] sm:$0xf] }
  0x9a   : > { %1104 = vst [vmem:[#allocation2 + $0xc] sm:$0xf] %v1103_v27  ;;  %v668_v19 = vshrl.u32 %v3563_v63, 16  ;;  %v3567_v55 = vrot.slane %v660_v54, 7 }
  0x9b   : > { %v412_v31 = vpop.permute.xlu1 %411  ;;  %v378_v10 = vpop.permute.xlu0 %377  ;;  %290 = vst [vmem:[#allocation2 + $0x6c] sm:$0x8] %v289_v1  ;;  %v942_v44 = vrot.slane %v941_v7, 4  ;;  %v943_v27 = vrot.slane %v655_v49, 5  ;;  %v264_v7 = vld [vmem:[#allocation2 + $0x2c] sm:$0x8] }
  0x9c   : > { %487 = vst.msk [vmem:[#allocation2 + $0x60] sm:$0xf] %vm464_vm14, %v412_v31  ;;  %v1146_v47 = vld [vmem:[#allocation2 + $0x64] sm:$0xf]  ;;  %v670_v3 = vrot.slane %v668_v19, 7 }
  0x9d   : > { %470 = vst.msk [vmem:[#allocation2 + $0x1c] sm:$0xf] %vm464_vm14, %v378_v10  ;;  %1036 = vrot.lane.b32.xlu2 %v938_v40, %s2924_s19  ;;  %v4360_v40 = vshll.u32 %v3563_v63, 16 }
  0x9e   : > { %802 = vst.msk [vmem:[#allocation2 + $0x1c] sm:$0xf] %vm787_vm15, %v3396_v30  ;;  %v663_v30 = vshll.u32 %v3555_v4, 16 }
  0x9f   : > { %v2881_v62 = vld [vmem:[#allocation2 + $0x10] sm:$0xff]  ;;  %v382_v14 = vpop.permute.xlu2 %381  ;;  %233 = vst [vmem:[#allocation2 + $0x68] sm:$0x1] %v232_v37  ;;  %v3590_v37 = vsel %vm2981_vm4, %v570_v32, %v3094_v34  ;;  %v265_v34 = vsel %vm3293_vm12, 0, %v264_v7  ;;  %v652_v32 = vshrl.u32 %v3541_v21, 16 }
  0xa0   : > { %472 = vst.msk [vmem:[#allocation2 + $0x24] sm:$0xf] %vm464_vm14, %v382_v14  ;;  %2827 = vmatmul.msk.bf16.vlgmr.msra.gmra.mxu2 %vm1289_vm13, %v2881_v62  ;;  %v3583_v31 = vor.u32 %v663_v30, %v3567_v55  ;;  %v3599_v14 = vor.u32 %v4360_v40, %v670_v3  ;;  %v207_v3 = vld [vmem:[#allocation2 + $0x28] sm:$0x1] }
  0xa1   : > { %v2848_v16 = vld [vmem:[#allocation2 + $0x8] sm:$0xff]  ;;  %429 = vrot.lane.b32.xlu1 %v3436_v53, %s2923_s18  ;;  %806 = vst.msk [vmem:[#allocation2 + $0x24] sm:$0xf] %vm787_vm15, %v562_v56  ;;  %427 = vrot.lane.b32.xlu0 %v3453_v59, %s2923_s18 }
  0xa2   : > { %v2864_v1 = vld [vmem:[#allocation2 + $0x8] sm:$0xff]  ;;  %2654 = vmatmul.msk.bf16.gmra.mxu0 %vm1289_vm13, %v2848_v16  ;;  %266 = vst [vmem:[#allocation2 + $0x2c] sm:$0x8] %v265_v34  ;;  %v949_v34 = vrot.slane %v663_v30, 5  ;;  %v654_v30 = vrot.slane %v652_v32, 7 }
  0xa3   : > { %v835_v10 = vld [vmem:[#allocation2 + $0x60] sm:$0xf]  ;;  %2740 = vmatmul.msk.bf16.vlgmr.msra.gmra.mxu1 %vm1289_vm13, %v2864_v1  ;;  %v1049_v53 = vpop.permute.xlu1 %1048  ;;  %v1013_v56 = vpop.permute.xlu0 %1012  ;;  %v944_v1 = vsel %vm3013_vm5, %v942_v44, %v943_v27  ;;  %v993_v44 = vrot.slane %v740_v35, 4  ;;  %v291_v35 = vld [vmem:[#allocation2 + $0x74] sm:$0x8] }
  0xa4   : > { %v836_v36 = vsel %vm3421_vm1, %v3018_v43, %v835_v10  ;;  %v1147_v62 = vsel %vm3503_vm8, %v1049_v53, %v1146_v47  ;;  %v1001_v47 = vrot.slane %v1000_v46, 4  ;;  %v208_v53 = vsel %vm3261_vm7, 0, %v207_v3  ;;  %v234_v3 = vld [vmem:[#allocation2 + $0x70] sm:$0x1] }
  0xa5   : > { %837 = vst [vmem:[#allocation2 + $0x60] sm:$0xf] %v836_v36  ;;  %v1110_v16 = vld [vmem:[#allocation2 + $0x1c] sm:$0xf]  ;;  %405 = vrot.lane.b32.xlu2 %v3541_v21, %s2923_s18  ;;  %v945_v36 = vrot.slane %v652_v32, 4  ;;  %v994_v46 = vrot.slane %v743_v18, 5 }
  0xa6   : > { %1148 = vst [vmem:[#allocation2 + $0x64] sm:$0xf] %v1147_v62  ;;  %v1111_v43 = vsel %vm3503_vm8, %v1013_v56, %v1110_v16  ;;  %v292_v59 = vsel %vm3293_vm12, 0, %v291_v35 }
  0xa7   : > { %1112 = vst [vmem:[#allocation2 + $0x1c] sm:$0xf] %v1111_v43  ;;  %v1017_v10 = vpop.permute.xlu2 %1016  ;;  %v946_v56 = vor.u32 %v945_v36, %v943_v27  ;;  %v948_v43 = vrot.slane %v660_v54, 4  ;;  %v235_v27 = vsel %vm3261_vm7, 0, %v234_v3  ;;  %v3632_v36 = vor.u32 %v655_v49, %v654_v30 }
  0xa8   : > { %v1114_v40 = vld [vmem:[#allocation2 + $0x24] sm:$0xf]  ;;  %209 = vst [vmem:[#allocation2 + $0x28] sm:$0x1] %v208_v53  ;;  %v2865_v53 = vld [vmem:[#allocation2 + $0x10] sm:$0xff] }
  0xa9   : > { %1038 = vrot.lane.b32.xlu1 %v944_v1, %s2924_s19  ;;  %v1115_v7 = vsel %vm3503_vm8, %v1017_v10, %v1114_v40  ;;  %1064 = vrot.lane.b32.xlu0 %v1001_v47, %s2924_s19  ;;  %v947_v1 = vrot.slane %v946_v56, 4  ;;  %236 = vst [vmem:[#allocation2 + $0x70] sm:$0x1] %v235_v27  ;;  %v950_v54 = vor.u32 %v949_v34, %v948_v43  ;;  %v2849_v10 = vld [vmem:[#allocation2 + $0x10] sm:$0xff]  ;;  %v954_v56 = vrot.slane %v668_v19, 4 }
  0xaa   : > { %1116 = vst [vmem:[#allocation2 + $0x24] sm:$0xf] %v1115_v7  ;;  %v995_v47 = vor.u32 %v994_v46, %v993_v44  ;;  %v237_v34 = vld [vmem:[#allocation2 + $0x78] sm:$0x1] }
  0xab   : > { %v380_v62 = vpop.permute.xlu1 %379  ;;  %v1047_v16 = vpop.permute.xlu0 %1046  ;;  %293 = vst [vmem:[#allocation2 + $0x74] sm:$0x8] %v292_v59  ;;  %v951_v21 = vrot.slane %v950_v54, 4  ;;  %v267_v59 = vld [vmem:[#allocation2 + $0x34] sm:$0x8] }
  0xac   : > { %471 = vst.msk [vmem:[#allocation2 + $0x20] sm:$0xf] %vm464_vm14, %v380_v62  ;;  %v996_v7 = vrot.slane %v995_v47, 4  ;;  %v4379_v62 = vshll.u32 %v3563_v63, 16 }
  0xad   : > { %1145 = vst.msk [vmem:[#allocation2 + $0x60] sm:$0xf] %vm1098_vm3, %v1047_v16  ;;  %1040 = vrot.lane.b32.xlu2 %v947_v1, %s2924_s19  ;;  %v238_v1 = vsel %vm3261_vm7, 0, %v237_v34 }
  0xae   : > { %v2882_v40 = vld [vmem:[#allocation2 + $0x18] sm:$0xff]  ;;  %v952_v16 = vrot.slane %v4379_v62, 5  ;;  %v998_v49 = vsel %vm3013_vm5, %v996_v7, %v3549_v15  ;;  %239 = vst [vmem:[#allocation2 + $0x78] sm:$0x1] %v238_v1  ;;  %v730_v7 = vrot.slane %v3160_v28, 4 }
  0xaf   : > { %v1051_v18 = vpop.permute.xlu2 %1050  ;;  %v213_v62 = vld [vmem:[#allocation2 + $0x38] sm:$0x1] }
  0xb0   : > { %2828 = vmatmul.msk.bf16.gmra.mxu2 %vm1289_vm13, %v2882_v40  ;;  %v955_v43 = vor.u32 %v954_v56, %v952_v16  ;;  %v953_v15 = vsel %vm3013_vm5, %v951_v21, %v952_v16  ;;  %v2866_v56 = vld [vmem:[#allocation2 + $0x18] sm:$0xff]  ;;  %v738_v28 = vsel %vm2981_vm4, %v730_v7, %v3194_v26  ;;  %v214_v21 = vsel %vm3261_vm7, 0, %v213_v62  ;;  %v219_v62 = vld [vmem:[#allocation2 + $0x48] sm:$0x1] }
  0xb1   : > { %409 = vrot.lane.b32.xlu1 %v3563_v63, %s2923_s18  ;;  %407 = vrot.lane.b32.xlu0 %v3555_v4, %s2923_s18  ;;  %v210_v63 = vld [vmem:[#allocation2 + $0x30] sm:$0x1]  ;;  %215 = vst [vmem:[#allocation2 + $0x38] sm:$0x1] %v214_v21  ;;  %v220_v21 = vsel %vm3261_vm7, 0, %v219_v62 }
  0xb2   : > { %2655 = vmatmul.msk.bf16.gmra.mxu0 %vm1289_vm13, %v2849_v10  ;;  %v211_v3 = vsel %vm3261_vm7, 0, %v210_v63  ;;  %221 = vst [vmem:[#allocation2 + $0x48] sm:$0x1] %v220_v21  ;;  %v282_v62 = vld [vmem:[#allocation2 + $0x5c] sm:$0x8] }
  0xb3   : > { %v803_v32 = vld [vmem:[#allocation2 + $0x20] sm:$0xf]  ;;  %2741 = vmatmul.msk.bf16.gmra.mxu1 %vm1289_vm13, %v2865_v53  ;;  %v418_v44 = vpop.permute.xlu1 %417  ;;  %v416_v46 = vpop.permute.xlu0 %415  ;;  %212 = vst [vmem:[#allocation2 + $0x30] sm:$0x1] %v211_v3  ;;  %v3682_v53 = vsel %vm2981_vm4, %v586_v41, %v3192_v6 }
  0xb4   : > { %v804_v19 = vsel %vm3421_vm1, %v3050_v2, %v803_v32  ;;  %490 = vst.msk [vmem:[#allocation2 + $0x6c] sm:$0xf] %vm464_vm14, %v418_v44  ;;  %v2859_v4 = vld [vmem:[#allocation2 + $0x60] sm:$0xff]  ;;  %v294_v32 = vld [vmem:[#allocation2 + $0x7c] sm:$0x8] }
  0xb5   : > { %805 = vst [vmem:[#allocation2 + $0x20] sm:$0xf] %v804_v19  ;;  %1062 = vrot.lane.b32.xlu2 %v998_v49, %s2924_s19  ;;  %2665 = vmatmul.msk.bf16.vlgmr.msra.gmra.mxu3 %vm1289_vm13, %v2859_v4  ;;  %v295_v6 = vsel %vm3293_vm12, 0, %v294_v32  ;;  %v602_v19 = vrot.slane %v3212_v42, 4 }
  0xb6   : > { %842 = vst.msk [vmem:[#allocation2 + $0x6c] sm:$0xf] %vm787_vm15, %v3521_v61  ;;  %2902 = vmatpush.bf16.msra.mxu3 %v3359_v9  ;;  %v956_v61 = vrot.slane %v955_v43, 4  ;;  %v270_v43 = vld [vmem:[#allocation2 + $0x3c] sm:$0x8] }
  0xb7   : > { %489 = vst.msk [vmem:[#allocation2 + $0x68] sm:$0xf] %vm464_vm14, %v416_v46  ;;  %v420_v2 = vpop.permute.xlu2 %419  ;;  %v271_v3 = vsel %vm3293_vm12, 0, %v270_v43 }
  0xb8   : > { %491 = vst.msk [vmem:[#allocation2 + $0x70] sm:$0xf] %vm464_vm14, %v420_v2 }
  0xb9   : > { %1042 = vrot.lane.b32.xlu0 %v953_v15, %s2924_s19  ;;  %296 = vst [vmem:[#allocation2 + $0x7c] sm:$0x8] %v295_v6 }
  0xba   : > { %2903 = vmatpush.bf16.msra.mxu3 %v3381_v5  ;;  %v268_v5 = vsel %vm3293_vm12, 0, %v267_v59  ;;  %272 = vst [vmem:[#allocation2 + $0x3c] sm:$0x8] %v271_v3 }
  0xbb   : > { %v1015_v27 = vpop.permute.xlu1 %1014  ;;  %v1053_v35 = vpop.permute.xlu0 %1052  ;;  %269 = vst [vmem:[#allocation2 + $0x34] sm:$0x8] %v268_v5 }
  0xbc   : > { %1113 = vst.msk [vmem:[#allocation2 + $0x20] sm:$0xf] %vm1098_vm3, %v1015_v27 }
  0xbd   : > { %v1150_v40 = vld [vmem:[#allocation2 + $0x6c] sm:$0xf]  ;;  %1044 = vrot.lane.b32.xlu2 %v956_v61, %s2924_s19 }
  0xbe   : > { %v839_v9 = vld [vmem:[#allocation2 + $0x68] sm:$0xf]  ;;  %v1151_v54 = vsel %vm3503_vm8, %v1053_v35, %v1150_v40  ;;  %v273_v40 = vld [vmem:[#allocation2 + $0x44] sm:$0x8] }
  0xbf   : > { %v840_v30 = vsel %vm3421_vm1, %v3073_v17, %v839_v9  ;;  %1152 = vst [vmem:[#allocation2 + $0x6c] sm:$0xf] %v1151_v54  ;;  %v843_v47 = vld [vmem:[#allocation2 + $0x70] sm:$0xf]  ;;  %v3672_v10 = vpop.permute.xlu2 %1056  ;;  %v2850_v17 = vld [vmem:[#allocation2 + $0x18] sm:$0xff]  ;;  %v274_v59 = vsel %vm3293_vm12, 0, %v273_v40 }
  0xc0   : > { %841 = vst [vmem:[#allocation2 + $0x68] sm:$0xf] %v840_v30  ;;  %v844_v12 = vsel %vm3421_vm1, %v3139_v24, %v843_v47 }
  0xc1   : > { %1149 = vst.msk [vmem:[#allocation2 + $0x68] sm:$0xf] %vm1098_vm3, %v1051_v18 }
  0xc2   : > { %845 = vst [vmem:[#allocation2 + $0x70] sm:$0xf] %v844_v12  ;;  %2656 = vmatmul.msk.bf16.gmra.mxu0 %vm1289_vm13, %v2850_v17 }
  0xc3   : > { %2742 = vmatmul.msk.bf16.gmra.mxu1 %vm1289_vm13, %v2866_v56  ;;  %v386_v24 = vpop.permute.xlu1 %385  ;;  %v384_v44 = vpop.permute.xlu0 %383  ;;  %v2883_v46 = vld [vmem:[#allocation2 + $0x20] sm:$0xff]  ;;  %275 = vst [vmem:[#allocation2 + $0x44] sm:$0x8] %v274_v59  ;;  %v634_v56 = vrot.slane %v3369_v11, 4 }
  0xc4   : > { %474 = vst.msk [vmem:[#allocation2 + $0x2c] sm:$0xf] %vm464_vm14, %v386_v24  ;;  %2829 = vmatmul.msk.bf16.gmra.mxu2 %vm1289_vm13, %v2883_v46  ;;  %v2851_v1 = vld [vmem:[#allocation2 + $0x20] sm:$0xff] }
  0xc5   : > { %810 = vst.msk [vmem:[#allocation2 + $0x2c] sm:$0xf] %vm787_vm15, %v3590_v37  ;;  %v2867_v61 = vld [vmem:[#allocation2 + $0x20] sm:$0xff] }
  0xc6   : > { %473 = vst.msk [vmem:[#allocation2 + $0x28] sm:$0xf] %vm464_vm14, %v384_v44  ;;  %v240_v59 = vld [vmem:[#allocation2 + $0x80] sm:$0x1] }
  0xc7   : > { %v388_v18 = vpop.permute.xlu2 %387 }
  0xc8   : > { %v2860_v16 = vld [vmem:[#allocation2 + $0x68] sm:$0xff]  ;;  %475 = vst.msk [vmem:[#allocation2 + $0x30] sm:$0xf] %vm464_vm14, %v388_v18  ;;  %v3760_v18 = vsel %vm2981_vm4, %v634_v56, %v3385_v8 }
  0xc9   : > { %2666 = vmatmul.msk.bf16.gmra.mxu3 %vm1289_vm13, %v2860_v16 }
  0xcb   : > { %v1021_v37 = vpop.permute.xlu1 %1020  ;;  %v422_v49 = vpop.permute.xlu0 %421 }
  0xcc   : > { %v1118_v4 = vld [vmem:[#allocation2 + $0x2c] sm:$0xf]  ;;  %492 = vst.msk [vmem:[#allocation2 + $0x74] sm:$0xf] %vm464_vm14, %v422_v49 }
  0xcd   : > { %v807_v26 = vld [vmem:[#allocation2 + $0x28] sm:$0xf]  ;;  %v1119_v63 = vsel %vm3503_vm8, %v1021_v37, %v1118_v4  ;;  %846 = vst.msk [vmem:[#allocation2 + $0x74] sm:$0xf] %vm787_vm15, %v3148_v33  ;;  %v610_v33 = vsel %vm2981_vm4, %v602_v19, %v3249_v57 }
  0xce   : > { %v808_v34 = vsel %vm3421_vm1, %v3112_v48, %v807_v26  ;;  %1120 = vst [vmem:[#allocation2 + $0x2c] sm:$0xf] %v1119_v63  ;;  %v618_v48 = vrot.slane %v3430_v52, 4 }
  0xcf   : > { %809 = vst [vmem:[#allocation2 + $0x28] sm:$0xf] %v808_v34  ;;  %v811_v15 = vld [vmem:[#allocation2 + $0x30] sm:$0xf]  ;;  %v426_v2 = vpop.permute.xlu2 %425 }
  0xd0   : > { %v812_v42 = vsel %vm3421_vm1, %v3245_v38, %v811_v15  ;;  %494 = vst.msk [vmem:[#allocation2 + $0x7c] sm:$0xf] %vm464_vm14, %v426_v2  ;;  %v3732_v52 = vsel %vm2981_vm4, %v618_v48, %v3312_v13  ;;  %v650_v15 = vrot.slane %v3427_v25, 4  ;;  %v746_v2 = vrot.slane %v3469_v45, 4 }
  0xd1   : > { %813 = vst [vmem:[#allocation2 + $0x30] sm:$0xf] %v812_v42 }
  0xd2   : > { %850 = vst.msk [vmem:[#allocation2 + $0x7c] sm:$0xf] %vm787_vm15, %v738_v28  ;;  %2657 = vmatmul.msk.bf16.gmra.mxu0 %vm1289_vm13, %v2851_v1  ;;  %v276_v28 = vld [vmem:[#allocation2 + $0x4c] sm:$0x8]  ;;  %v222_v1 = vld [vmem:[#allocation2 + $0x50] sm:$0x1] }
  0xd3   : > { %2743 = vmatmul.msk.bf16.gmra.mxu1 %vm1289_vm13, %v2867_v61  ;;  %v1055_v38 = vpop.permute.xlu1 %1054  ;;  %v1019_v27 = vpop.permute.xlu0 %1018  ;;  %v223_v48 = vsel %vm3261_vm7, 0, %v222_v1 }
  0xd4   : > { %v1154_v35 = vld [vmem:[#allocation2 + $0x74] sm:$0xf]  ;;  %1153 = vst.msk [vmem:[#allocation2 + $0x70] sm:$0xf] %vm1098_vm3, %v1055_v38 }
  0xd5   : > { %v1155_v57 = vsel %vm3503_vm8, %v3672_v10, %v1154_v35  ;;  %1117 = vst.msk [vmem:[#allocation2 + $0x28] sm:$0xf] %vm1098_vm3, %v1019_v27  ;;  %v216_v10 = vld [vmem:[#allocation2 + $0x40] sm:$0x1]  ;;  %v279_v38 = vld [vmem:[#allocation2 + $0x54] sm:$0x8]  ;;  %v658_v27 = vsel %vm2981_vm4, %v650_v15, %v3632_v36 }
  0xd6   : > { %1156 = vst [vmem:[#allocation2 + $0x74] sm:$0xf] %v1155_v57  ;;  %v217_v13 = vsel %vm3261_vm7, 0, %v216_v10  ;;  %v297_v35 = vld [vmem:[#allocation2 + $0x84] sm:$0x8] }
  0xd7   : > { %v1023_v41 = vpop.permute.xlu2 %1022  ;;  %218 = vst [vmem:[#allocation2 + $0x40] sm:$0x1] %v217_v13  ;;  %v298_v40 = vsel %vm3293_vm12, 0, %v297_v35 }
  0xd8   : > { %1121 = vst.msk [vmem:[#allocation2 + $0x30] sm:$0xf] %vm1098_vm3, %v1023_v41  ;;  %v280_v41 = vsel %vm3293_vm12, 0, %v279_v38 }
  0xd9   : > { %v1158_v17 = vld [vmem:[#allocation2 + $0x7c] sm:$0xf]  ;;  %224 = vst [vmem:[#allocation2 + $0x50] sm:$0x1] %v223_v48 }
  0xda   : > { %281 = vst [vmem:[#allocation2 + $0x54] sm:$0x8] %v280_v41 }
  0xdb   : > { %v424_v9 = vpop.permute.xlu1 %423  ;;  %v390_v54 = vpop.permute.xlu0 %389  ;;  %299 = vst [vmem:[#allocation2 + $0x84] sm:$0x8] %v298_v40 }
  0xdc   : > { %493 = vst.msk [vmem:[#allocation2 + $0x78] sm:$0xf] %vm464_vm14, %v424_v9  ;;  %v2884_v30 = vld [vmem:[#allocation2 + $0x28] sm:$0xff] }
  0xdd   : > { %476 = vst.msk [vmem:[#allocation2 + $0x34] sm:$0xf] %vm464_vm14, %v390_v54  ;;  %v2861_v47 = vld [vmem:[#allocation2 + $0x70] sm:$0xff]  ;;  %2830 = vmatmul.msk.bf16.gmra.mxu2 %vm1289_vm13, %v2884_v30  ;;  %v2852_v5 = vld [vmem:[#allocation2 + $0x28] sm:$0xff] }
  0xde   : > { %814 = vst.msk [vmem:[#allocation2 + $0x34] sm:$0xf] %vm787_vm15, %v3682_v53  ;;  %2667 = vmatmul.msk.bf16.gmra.mxu3 %vm1289_vm13, %v2861_v47  ;;  %v2868_v7 = vld [vmem:[#allocation2 + $0x28] sm:$0xff] }
  0xdf   : > { %v394_v12 = vpop.permute.xlu2 %393 }
  0xe0   : > { %478 = vst.msk [vmem:[#allocation2 + $0x3c] sm:$0xf] %vm464_vm14, %v394_v12 }
  0xe1   : > { %818 = vst.msk [vmem:[#allocation2 + $0x3c] sm:$0xf] %vm787_vm15, %v610_v33 }
  0xe2   : > { %2658 = vmatmul.msk.bf16.gmra.mxu0 %vm1289_vm13, %v2852_v5 }
  0xe3   : > { %v847_v32 = vld [vmem:[#allocation2 + $0x78] sm:$0xf]  ;;  %2744 = vmatmul.msk.bf16.gmra.mxu1 %vm1289_vm13, %v2868_v7  ;;  %v1061_v53 = vpop.permute.xlu1 %1060  ;;  %v1025_v24 = vpop.permute.xlu0 %1024  ;;  %v2876_v7 = vld [vmem:[#allocation2 + $0x68] sm:$0xff] }
  0xe4   : > { %v848_v44 = vsel %vm3421_vm1, %v3173_v39, %v847_v32  ;;  %v1159_v46 = vsel %vm3503_vm8, %v1061_v53, %v1158_v17  ;;  %v277_v39 = vsel %vm3293_vm12, 0, %v276_v28 }
  0xe5   : > { %849 = vst [vmem:[#allocation2 + $0x78] sm:$0xf] %v848_v44  ;;  %v1122_v6 = vld [vmem:[#allocation2 + $0x34] sm:$0xf] }
  0xe6   : > { %1160 = vst [vmem:[#allocation2 + $0x7c] sm:$0xf] %v1159_v46  ;;  %v1123_v11 = vsel %vm3503_vm8, %v1025_v24, %v1122_v6  ;;  %v666_v46 = vrot.slane %v3567_v55, 4  ;;  %v225_v55 = vld [vmem:[#allocation2 + $0x58] sm:$0x1] }
  0xe7   : > { %1124 = vst [vmem:[#allocation2 + $0x34] sm:$0xf] %v1123_v11  ;;  %v396_v16 = vpop.permute.xlu2 %395 }
  0xe8   : > { %479 = vst.msk [vmem:[#allocation2 + $0x40] sm:$0xf] %vm464_vm14, %v396_v16  ;;  %v1126_v34 = vld [vmem:[#allocation2 + $0x3c] sm:$0xf]  ;;  %v4380_v16 = vld [vmem:[#allocation4_spill] sm:$0xff] }
  0xe9   : > { %278 = vst [vmem:[#allocation2 + $0x4c] sm:$0x8] %v277_v39 }
  0xeb   : > { %v392_v37 = vpop.permute.xlu1 %391  ;;  %v1059_v49 = vpop.permute.xlu0 %1058 }
  0xec   : > { %477 = vst.msk [vmem:[#allocation2 + $0x38] sm:$0xf] %vm464_vm14, %v392_v37  ;;  %v1351_v45 = vpop.f32.mrf.mxu0 }
  0xed   : > { %1157 = vst.msk [vmem:[#allocation2 + $0x78] sm:$0xf] %vm1098_vm3, %v1059_v49  ;;  %v283_v49 = vsel %vm3293_vm12, 0, %v282_v62 }
  0xee   : > { %v2885_v8 = vld [vmem:[#allocation2 + $0x30] sm:$0xff]  ;;  %1432 = vst.msk [vmem:[#allocation3] sm:$0xff] %vm1431_vm2, %v1351_v45 }
  0xef   : > { %v2853_v19 = vld [vmem:[#allocation2 + $0x30] sm:$0xff]  ;;  %v819_v26 = vld [vmem:[#allocation2 + $0x40] sm:$0xf]  ;;  %v1031_v63 = vpop.permute.xlu2 %1030  ;;  %2831 = vmatmul.msk.bf16.gmra.mxu2 %vm1289_vm13, %v2885_v8  ;;  %v674_v8 = vsel %vm2981_vm4, %v666_v46, %v3599_v14  ;;  %284 = vst [vmem:[#allocation2 + $0x5c] sm:$0x8] %v283_v49 }
  0xf0   : > { %v2869_v4 = vld [vmem:[#allocation2 + $0x30] sm:$0xff]  ;;  %v820_v43 = vsel %vm3421_vm1, %v3447_v23, %v819_v26 }
  0xf1   : > { %821 = vst [vmem:[#allocation2 + $0x40] sm:$0xf] %v820_v43 }
  0xf2   : > { %1129 = vst.msk [vmem:[#allocation2 + $0x40] sm:$0xf] %vm1098_vm3, %v1031_v63  ;;  %2659 = vmatmul.msk.bf16.gmra.mxu0 %vm1289_vm13, %v2853_v19  ;;  %v226_v19 = vsel %vm3261_vm7, 0, %v225_v55  ;;  %v4381_v63 = vld [vmem:[#allocation5_spill] sm:$0xff] }
  0xf3   : > { %v815_v42 = vld [vmem:[#allocation2 + $0x38] sm:$0xf]  ;;  %2745 = vmatmul.msk.bf16.gmra.mxu1 %vm1289_vm13, %v2869_v4  ;;  %v1029_v3 = vpop.permute.xlu0 %1028  ;;  %v1027_v33 = vpop.permute.xlu1 %1026  ;;  %227 = vst [vmem:[#allocation2 + $0x58] sm:$0x1] %v226_v19 }
  0xf4   : > { %v816_v23 = vsel %vm3421_vm1, %v3219_v58, %v815_v42  ;;  %v1127_v61 = vsel %vm3503_vm8, %v1029_v3, %v1126_v34  ;;  %v2862_v25 = vld [vmem:[#allocation2 + $0x78] sm:$0xff]  ;;  %v3792_v58 = vsel %vm2981_vm4, %v746_v2, %v3474_v0  ;;  %v241_v0 = vsel %vm3261_vm7, 0, %v240_v59  ;;  %v1353_v54 = vpop.f32.mrf.mxu0  ;;  %v2877_v34 = vld [vmem:[#allocation2 + $0x70] sm:$0xff] }
  0xf5   : > { %817 = vst [vmem:[#allocation2 + $0x38] sm:$0xf] %v816_v23  ;;  %2668 = vmatmul.msk.bf16.gmra.mxu3 %vm1289_vm13, %v2862_v25 }
  0xf6   : > { %1128 = vst [vmem:[#allocation2 + $0x3c] sm:$0xf] %v1127_v61 }
  0xf7   : > { %1125 = vst.msk [vmem:[#allocation2 + $0x38] sm:$0xf] %vm1098_vm3, %v1027_v33  ;;  %v1037_v57 = vpop.permute.xlu2 %1036  ;;  %v1729_v33 = vld [vmem:[#allocation3] sm:$0xff] }
  0xf8   : > { %1433 = vst.msk [vmem:[#allocation3 + $0x8] sm:$0xff] %vm1431_vm2, %v1353_v54 }
  0xf9   : > { %242 = vst [vmem:[#allocation2 + $0x80] sm:$0x1] %v241_v0 }
  0xfb   : > { %v398_v36 = vpop.permute.xlu0 %397  ;;  %v1033_v9 = vpop.permute.xlu1 %1032 }
  0xfc   : > { %480 = vst.msk [vmem:[#allocation2 + $0x44] sm:$0xf] %vm464_vm14, %v398_v36 }
  0xfd   : > { %822 = vst.msk [vmem:[#allocation2 + $0x44] sm:$0xf] %vm787_vm15, %v3732_v52 }
  0xfe   : > { %v2886_v30 = vld [vmem:[#allocation2 + $0x38] sm:$0xff] }
  0xff   : > { %v2854_v47 = vld [vmem:[#allocation2 + $0x38] sm:$0xff]  ;;  %v406_v13 = vpop.permute.xlu2 %405  ;;  %2832 = vmatmul.msk.bf16.gmra.mxu2 %vm1289_vm13, %v2886_v30 }
 0x100   : > { %v2870_v10 = vld [vmem:[#allocation2 + $0x38] sm:$0xff]  ;;  %484 = vst.msk [vmem:[#allocation2 + $0x54] sm:$0xf] %vm464_vm14, %v406_v13 }
 0x101   : > { %830 = vst.msk [vmem:[#allocation2 + $0x54] sm:$0xf] %vm787_vm15, %v658_v27  ;;  %v1730_v41 = vld [vmem:[#allocation3 + $0x8] sm:$0xff] }
 0x102   : > { %2660 = vmatmul.msk.bf16.gmra.mxu0 %vm1289_vm13, %v2854_v47 }
 0x103   : > { %2746 = vmatmul.msk.bf16.gmra.mxu1 %vm1289_vm13, %v2870_v10  ;;  %v402_v12 = vpop.permute.xlu1 %401  ;;  %v400_v52 = vpop.permute.xlu0 %399 }
 0x104   : > { %v1130_v5 = vld [vmem:[#allocation2 + $0x44] sm:$0xf]  ;;  %482 = vst.msk [vmem:[#allocation2 + $0x4c] sm:$0xf] %vm464_vm14, %v402_v12 }
 0x105   : > { %v1131_v17 = vsel %vm3503_vm8, %v1033_v9, %v1130_v5  ;;  %826 = vst.msk [vmem:[#allocation2 + $0x4c] sm:$0xf] %vm787_vm15, %v3760_v18  ;;  %2752 = vmatmul.msk.bf16.vlgmr.msrb.gmra.mxu3 %vm1289_vm13, %v2876_v7 }
 0x106   : > { %1132 = vst [vmem:[#allocation2 + $0x44] sm:$0xf] %v1131_v17 }
 0x107   : > { %481 = vst.msk [vmem:[#allocation2 + $0x48] sm:$0xf] %vm464_vm14, %v400_v52  ;;  %v1041_v56 = vpop.permute.xlu2 %1040 }
 0x108   : > { %v1138_v32 = vld [vmem:[#allocation2 + $0x54] sm:$0xf] }
 0x109   : > { %v1139_v53 = vsel %vm3503_vm8, %v1041_v56, %v1138_v32 }
 0x10a   : > { %1140 = vst [vmem:[#allocation2 + $0x54] sm:$0xf] %v1139_v53 }
 0x10b   : > { %v404_v24 = vpop.permute.xlu1 %403  ;;  %v1035_v44 = vpop.permute.xlu0 %1034 }
 0x10c   : > { %v1134_v6 = vld [vmem:[#allocation2 + $0x4c] sm:$0xf]  ;;  %483 = vst.msk [vmem:[#allocation2 + $0x50] sm:$0xf] %vm464_vm14, %v404_v24 }
 0x10d   : > { %v2887_v11 = vld [vmem:[#allocation2 + $0x40] sm:$0xff]  ;;  %v1135_v28 = vsel %vm3503_vm8, %v1037_v57, %v1134_v6 }
 0x10e   : > { %v823_v18 = vld [vmem:[#allocation2 + $0x48] sm:$0xf]  ;;  %1136 = vst [vmem:[#allocation2 + $0x4c] sm:$0xf] %v1135_v28  ;;  %v2855_v21 = vld [vmem:[#allocation2 + $0x40] sm:$0xff] }
 0x10f   : > { %v824_v39 = vsel %vm3421_vm1, %v4380_v16, %v823_v18  ;;  %v2871_v37 = vld [vmem:[#allocation2 + $0x40] sm:$0xff]  ;;  %2833 = vmatmul.msk.bf16.gmra.mxu2 %vm1289_vm13, %v2887_v11  ;;  %v1063_v45 = vpop.permute.xlu2 %1062 }
 0x110   : > { %825 = vst [vmem:[#allocation2 + $0x48] sm:$0xf] %v824_v39 }
 0x111   : > { %1133 = vst.msk [vmem:[#allocation2 + $0x48] sm:$0xf] %vm1098_vm3, %v1035_v44 }
 0x112   : > { %2661 = vmatmul.msk.bf16.gmra.mxu0 %vm1289_vm13, %v2855_v21 }
 0x113   : > { %2747 = vmatmul.msk.bf16.gmra.mxu1 %vm1289_vm13, %v2871_v37  ;;  %v827_v4 = vld [vmem:[#allocation2 + $0x50] sm:$0xf]  ;;  %v430_v26 = vpop.permute.xlu1 %429  ;;  %v428_v22 = vpop.permute.xlu0 %427 }
 0x114   : > { %v828_v43 = vsel %vm3421_vm1, %v4381_v63, %v827_v4  ;;  %496 = vst.msk [vmem:[#allocation2 + $0x84] sm:$0xf] %vm464_vm14, %v430_v26 }
 0x115   : > { %829 = vst [vmem:[#allocation2 + $0x50] sm:$0xf] %v828_v43  ;;  %2753 = vmatmul.msk.bf16.gmra.mxu3 %vm1289_vm13, %v2877_v34 }
 0x116   : > { %854 = vst.msk [vmem:[#allocation2 + $0x84] sm:$0xf] %vm787_vm15, %v3792_v58  ;;  %v2878_v58 = vld [vmem:[#allocation2 + $0x78] sm:$0xff] }
 0x117   : > { %495 = vst.msk [vmem:[#allocation2 + $0x80] sm:$0xf] %vm464_vm14, %v428_v22  ;;  %v1045_v0 = vpop.permute.xlu2 %1044 }
 0x118   : > { %v2888_v15 = vld [vmem:[#allocation2 + $0x48] sm:$0xff] }
 0x119   : > { %v2856_v61 = vld [vmem:[#allocation2 + $0x48] sm:$0xff] }
 0x11a   : > { %v2872_v25 = vld [vmem:[#allocation2 + $0x48] sm:$0xff] }
 0x11b   : > { %v1039_v14 = vpop.permute.xlu1 %1038  ;;  %v1065_v2 = vpop.permute.xlu0 %1064 }
 0x11c   : > { %1137 = vst.msk [vmem:[#allocation2 + $0x50] sm:$0xf] %vm1098_vm3, %v1039_v14 }
 0x11d   : > { %v1162_v42 = vld [vmem:[#allocation2 + $0x84] sm:$0xf] }
 0x11e   : > { %v851_v3 = vld [vmem:[#allocation2 + $0x80] sm:$0xf]  ;;  %v1163_v1 = vsel %vm3503_vm8, %v1065_v2, %v1162_v42  ;;  %v2893_v42 = vld [vmem:[#allocation2 + $0x70] sm:$0xff] }
 0x11f   : > { %v852_v23 = vsel %vm3421_vm1, %v3481_v20, %v851_v3  ;;  %1164 = vst [vmem:[#allocation2 + $0x84] sm:$0xf] %v1163_v1  ;;  %v1356_v48 = vpop.f32.mrf.mxu0  ;;  %2834 = vmatmul.msk.bf16.gmra.mxu2 %vm1289_vm13, %v2888_v15 }
 0x120   : > { %853 = vst [vmem:[#allocation2 + $0x80] sm:$0xf] %v852_v23  ;;  %v1649_v38 = vpop.f32.mrf.mxu1 }
 0x121   : > { %1434 = vst.msk [vmem:[#allocation3 + $0x10] sm:$0xff] %vm1431_vm2, %v1356_v48  ;;  %v1761_v27 = vadd.f32 %v1729_v33, %v1649_v38 }
 0x122   : > { %1161 = vst.msk [vmem:[#allocation2 + $0x80] sm:$0xf] %vm1098_vm3, %v1063_v45  ;;  %2662 = vmatmul.msk.bf16.gmra.mxu0 %vm1289_vm13, %v2856_v61 }
 0x123   : > { %1793 = vst.msk [vmem:[#allocation3] sm:$0xff] %vm1431_vm2, %v1761_v27  ;;  %2748 = vmatmul.msk.bf16.gmra.mxu1 %vm1289_vm13, %v2872_v25  ;;  %v410_v20 = vpop.permute.xlu1 %409  ;;  %v2011_v35 = vpop.f32.mrf.mxu2  ;;  %v2889_v30 = vld [vmem:[#allocation2 + $0x50] sm:$0xff] }
 0x124   : > { %486 = vst.msk [vmem:[#allocation2 + $0x5c] sm:$0xf] %vm464_vm14, %v410_v20  ;;  %v408_v57 = vpop.permute.xlu0 %407  ;;  %v2857_v7 = vld [vmem:[#allocation2 + $0x50] sm:$0xff] }
 0x125   : > { %834 = vst.msk [vmem:[#allocation2 + $0x5c] sm:$0xf] %vm787_vm15, %v674_v8  ;;  %2754 = vmatmul.msk.bf16.gmra.mxu3 %vm1289_vm13, %v2878_v58  ;;  %v2873_v17 = vld [vmem:[#allocation2 + $0x50] sm:$0xff]  ;;  %v243_v58 = vld [vmem:[#allocation2 + $0x88] sm:$0x1] }
 0x126   : > { %485 = vst.msk [vmem:[#allocation2 + $0x58] sm:$0xf] %vm464_vm14, %v408_v57  ;;  %v300_v57 = vld [vmem:[#allocation2 + $0x8c] sm:$0x8] }
 0x127   : > { %v1358_v40 = vpop.f32.mrf.mxu0 }
 0x128   : > { %v1651_v59 = vpop.f32.mrf.mxu1  ;;  %1435 = vst.msk [vmem:[#allocation3 + $0x18] sm:$0xff] %vm1431_vm2, %v1358_v40  ;;  %v1731_v53 = vld [vmem:[#allocation3 + $0x10] sm:$0xff]  ;;  %v301_v40 = vsel %vm3293_vm12, 0, %v300_v57 }
 0x129   : > { %v1762_v36 = vadd.f32 %v1730_v41, %v1651_v59  ;;  %v2879_v44 = vld [vmem:[#allocation2 + $0x80] sm:$0xff]  ;;  %v244_v41 = vsel %vm3261_vm7, 0, %v243_v58  ;;  %302 = vst [vmem:[#allocation2 + $0x8c] sm:$0x8] %v301_v40 }
 0x12a   : > { %v2091_v9 = vld [vmem:[#allocation3] sm:$0xff]  ;;  %245 = vst [vmem:[#allocation2 + $0x88] sm:$0x1] %v244_v41 }
 0x12b   : > { %v2123_v54 = vadd.f32 %v2091_v9, %v2011_v35  ;;  %1794 = vst.msk [vmem:[#allocation3 + $0x8] sm:$0xff] %vm1431_vm2, %v1762_v36  ;;  %v2013_v10 = vpop.f32.mrf.mxu2  ;;  %v2891_v35 = vld [vmem:[#allocation2 + $0x60] sm:$0xff] }
 0x12c   : > { %v1142_v47 = vld [vmem:[#allocation2 + $0x5c] sm:$0xf]  ;;  %v1043_v52 = vpop.permute.xlu0 %1042 }
 0x12d   : > { %2155 = vst.msk [vmem:[#allocation3] sm:$0xff] %vm1431_vm2, %v2123_v54  ;;  %v831_v13 = vld [vmem:[#allocation2 + $0x58] sm:$0xf]  ;;  %v1143_v12 = vsel %vm3503_vm8, %v1045_v0, %v1142_v47  ;;  %v2875_v54 = vld [vmem:[#allocation2 + $0x60] sm:$0xff] }
 0x12e   : > { %v832_v5 = vsel %vm3421_vm1, %v3583_v31, %v831_v13  ;;  %1144 = vst [vmem:[#allocation2 + $0x5c] sm:$0xf] %v1143_v12 }
 0x12f   : > { %833 = vst [vmem:[#allocation2 + $0x58] sm:$0xf] %v832_v5  ;;  %v1361_v56 = vpop.f32.mrf.mxu0  ;;  %2835 = vmatmul.msk.bf16.gmra.mxu2 %vm1289_vm13, %v2889_v30  ;;  %v1732_v18 = vld [vmem:[#allocation3 + $0x18] sm:$0xff] }
 0x130   : > { %v1654_v32 = vpop.f32.mrf.mxu1  ;;  %1141 = vst.msk [vmem:[#allocation2 + $0x58] sm:$0xf] %vm1098_vm3, %v1043_v52 }
 0x131   : > { %1436 = vst.msk [vmem:[#allocation3 + $0x20] sm:$0xff] %vm1431_vm2, %v1361_v56  ;;  %v1763_v60 = vadd.f32 %v1731_v53, %v1654_v32  ;;  %v2892_v53 = vld [vmem:[#allocation2 + $0x68] sm:$0xff] }
 0x132   : > { %v2092_v24 = vld [vmem:[#allocation3 + $0x8] sm:$0xff]  ;;  %2663 = vmatmul.msk.bf16.gmra.mxu0 %vm1289_vm13, %v2857_v7 }
 0x133   : > { %v2124_v46 = vadd.f32 %v2092_v24, %v2013_v10  ;;  %1795 = vst.msk [vmem:[#allocation3 + $0x10] sm:$0xff] %vm1431_vm2, %v1763_v60  ;;  %2749 = vmatmul.msk.bf16.gmra.mxu1 %vm1289_vm13, %v2873_v17  ;;  %v2016_v6 = vpop.f32.mrf.mxu2  ;;  %v2894_v10 = vld [vmem:[#allocation2 + $0x78] sm:$0xff] }
 0x134   : > { %v3883_v50 = vld [vmem:[#allocation3] sm:$0xff] }
 0x135   : > { %v2425_v31 = vpack.c.bf16 %v3883_v50, %v3883_v50  ;;  %2156 = vst.msk [vmem:[#allocation3 + $0x8] sm:$0xff] %vm1431_vm2, %v2124_v46  ;;  %2755 = vmatmul.msk.bf16.gmra.mxu3 %vm1289_vm13, %v2879_v44 }
 0x137   : > { %2457 = vst.msk [vmem:[%s3881_s7] sm:$0xf] %vm787_vm15, %v2425_v31  ;;  %v1363_v11 = vpop.f32.mrf.mxu0  ;;  %v2890_v49 = vld [vmem:[#allocation2 + $0x58] sm:$0xff] }
 0x138   : > { %v1656_v28 = vpop.f32.mrf.mxu1  ;;  %1437 = vst.msk [vmem:[#allocation3 + $0x28] sm:$0xff] %vm1431_vm2, %v1363_v11  ;;  %v1411_v16 = vpop.f32.mrf.mxu3  ;;  %v2858_v8 = vld [vmem:[#allocation2 + $0x58] sm:$0xff]  ;;  %v1733_v63 = vld [vmem:[#allocation3 + $0x20] sm:$0xff] }
 0x139   : > { %v1764_v62 = vadd.f32 %v1732_v18, %v1656_v28  ;;  %1456 = vst.msk [vmem:[#allocation3 + $0xc0] sm:$0xff] %vm1431_vm2, %v1411_v16  ;;  %v2874_v19 = vld [vmem:[#allocation2 + $0x58] sm:$0xff]  ;;  %v2895_v18 = vld [vmem:[#allocation2 + $0x80] sm:$0xff] }
 0x13a   : > { %v2093_v39 = vld [vmem:[#allocation3 + $0x10] sm:$0xff] }
 0x13b   : > { %v2125_v21 = vadd.f32 %v2093_v39, %v2016_v6  ;;  %1796 = vst.msk [vmem:[#allocation3 + $0x18] sm:$0xff] %vm1431_vm2, %v1764_v62  ;;  %v2018_v43 = vpop.f32.mrf.mxu2 }
 0x13c   : > { %v3894_v37 = vld [vmem:[#allocation3 + $0x8] sm:$0xff] }
 0x13d   : > { %v2426_v55 = vpack.c.bf16 %v3894_v37, %v3894_v37  ;;  %2157 = vst.msk [vmem:[#allocation3 + $0x10] sm:$0xff] %vm1431_vm2, %v2125_v21 }
 0x13f   : > { %2458 = vst.msk [vmem:[%s3881_s7 + $0x4] sm:$0xf] %vm787_vm15, %v2426_v55  ;;  %v1366_v4 = vpop.f32.mrf.mxu0  ;;  %2836 = vmatmul.msk.bf16.gmra.mxu2 %vm1289_vm13, %v2890_v49  ;;  %v1734_v23 = vld [vmem:[#allocation3 + $0x28] sm:$0xff] }
 0x140   : > { %v1659_v26 = vpop.f32.mrf.mxu1  ;;  %1438 = vst.msk [vmem:[#allocation3 + $0x30] sm:$0xff] %vm1431_vm2, %v1366_v4  ;;  %v1413_v22 = vpop.f32.mrf.mxu3 }
 0x141   : > { %v1765_v34 = vadd.f32 %v1733_v63, %v1659_v26  ;;  %1457 = vst.msk [vmem:[#allocation3 + $0xc8] sm:$0xff] %vm1431_vm2, %v1413_v22 }
 0x142   : > { %v2094_v14 = vld [vmem:[#allocation3 + $0x18] sm:$0xff]  ;;  %2664 = vmatmul.msk.bf16.gmra.mxu0 %vm1289_vm13, %v2858_v8 }
 0x143   : > { %v2126_v15 = vadd.f32 %v2094_v14, %v2018_v43  ;;  %1797 = vst.msk [vmem:[#allocation3 + $0x20] sm:$0xff] %vm1431_vm2, %v1765_v34  ;;  %2750 = vmatmul.msk.bf16.gmra.mxu1 %vm1289_vm13, %v2874_v19  ;;  %v2896_v14 = vld [vmem:[#allocation2 + $0x88] sm:$0xff] }
 0x144   : > { %v3907_v2 = vld [vmem:[#allocation3 + $0x10] sm:$0xff] }
 0x145   : > { %v2427_v3 = vpack.c.bf16 %v3907_v2, %v3907_v2  ;;  %2158 = vst.msk [vmem:[#allocation3 + $0x18] sm:$0xff] %vm1431_vm2, %v2126_v15  ;;  %2839 = vmatmul.msk.bf16.vlgmr.msra.gmra.mxu3 %vm1289_vm13, %v2893_v42 }
 0x147   : > { %2459 = vst.msk [vmem:[%s3881_s7 + $0x8] sm:$0xf] %vm787_vm15, %v2427_v3  ;;  %v1368_v33 = vpop.f32.mrf.mxu0  ;;  %v2021_v25 = vpop.f32.mrf.mxu2  ;;  %v1735_v9 = vld [vmem:[#allocation3 + $0x30] sm:$0xff] }
 0x148   : > { %v1661_v1 = vpop.f32.mrf.mxu1  ;;  %1439 = vst.msk [vmem:[#allocation3 + $0x38] sm:$0xff] %vm1431_vm2, %v1368_v33 }
 0x149   : > { %v1766_v61 = vadd.f32 %v1734_v23, %v1661_v1 }
 0x14a   : > { %v2095_v45 = vld [vmem:[#allocation3 + $0x20] sm:$0xff] }
 0x14b   : > { %1798 = vst.msk [vmem:[#allocation3 + $0x28] sm:$0xff] %vm1431_vm2, %v1766_v61  ;;  %v2127_v48 = vadd.f32 %v2095_v45, %v2021_v25 }
 0x14c   : > { %v3917_v38 = vld [vmem:[#allocation3 + $0x18] sm:$0xff]  ;;  %v1416_v20 = vpop.f32.mrf.mxu3 }
 0x14d   : > { %v2428_v27 = vpack.c.bf16 %v3917_v38, %v3917_v38  ;;  %2159 = vst.msk [vmem:[#allocation3 + $0x20] sm:$0xff] %vm1431_vm2, %v2127_v48 }
 0x14e   : > { %1458 = vst.msk [vmem:[#allocation3 + $0xd0] sm:$0xff] %vm1431_vm2, %v1416_v20 }
 0x14f   : > { %2460 = vst.msk [vmem:[%s3881_s7 + $0xc] sm:$0xf] %vm787_vm15, %v2428_v27  ;;  %v1371_v59 = vpop.f32.mrf.mxu0  ;;  %2837 = vmatmul.msk.bf16.gmra.mxu2 %vm1289_vm13, %v2891_v35  ;;  %v2023_v30 = vpop.f32.mrf.mxu2  ;;  %v1736_v7 = vld [vmem:[#allocation3 + $0x38] sm:$0xff] }
 0x150   : > { %v1664_v36 = vpop.f32.mrf.mxu1  ;;  %1440 = vst.msk [vmem:[#allocation3 + $0x40] sm:$0xff] %vm1431_vm2, %v1371_v59 }
 0x151   : > { %v1767_v0 = vadd.f32 %v1735_v9, %v1664_v36 }
 0x152   : > { %v2096_v47 = vld [vmem:[#allocation3 + $0x28] sm:$0xff] }
 0x153   : > { %1799 = vst.msk [vmem:[#allocation3 + $0x30] sm:$0xff] %vm1431_vm2, %v1767_v0  ;;  %2751 = vmatmul.msk.bf16.gmra.mxu1 %vm1289_vm13, %v2875_v54  ;;  %v2128_v29 = vadd.f32 %v2096_v47, %v2023_v30 }
 0x154   : > { %v3933_v51 = vld [vmem:[#allocation3 + $0x20] sm:$0xff]  ;;  %v1418_v12 = vpop.f32.mrf.mxu3 }
 0x155   : > { %v2429_v13 = vpack.c.bf16 %v3933_v51, %v3933_v51  ;;  %2160 = vst.msk [vmem:[#allocation3 + $0x28] sm:$0xff] %vm1431_vm2, %v2128_v29  ;;  %2840 = vmatmul.msk.bf16.gmra.mxu3 %vm1289_vm13, %v2894_v10 }
 0x156   : > { %1459 = vst.msk [vmem:[#allocation3 + $0xd8] sm:$0xff] %vm1431_vm2, %v1418_v12 }
 0x157   : > { %2461 = vst.msk [vmem:[%s3881_s7 + $0x10] sm:$0xf] %vm787_vm15, %v2429_v13  ;;  %v1373_v52 = vpop.f32.mrf.mxu0  ;;  %v1737_v44 = vld [vmem:[#allocation3 + $0x40] sm:$0xff] }
 0x158   : > { %v1666_v5 = vpop.f32.mrf.mxu1  ;;  %1441 = vst.msk [vmem:[#allocation3 + $0x48] sm:$0xff] %vm1431_vm2, %v1373_v52 }
 0x159   : > { %v1768_v17 = vadd.f32 %v1736_v7, %v1666_v5  ;;  %v1753_v7 = vld [vmem:[#allocation3 + $0xc0] sm:$0xff] }
 0x15a   : > { %v2097_v6 = vld [vmem:[#allocation3 + $0x30] sm:$0xff] }
 0x15b   : > { %1800 = vst.msk [vmem:[#allocation3 + $0x38] sm:$0xff] %vm1431_vm2, %v1768_v17 }
 0x15c   : > { %v3944_v56 = vld [vmem:[#allocation3 + $0x28] sm:$0xff] }
 0x15d   : > { %v2430_v32 = vpack.c.bf16 %v3944_v56, %v3944_v56 }
 0x15f   : > { %2462 = vst.msk [vmem:[%s3881_s7 + $0x14] sm:$0xf] %vm787_vm15, %v2430_v32  ;;  %v1376_v60 = vpop.f32.mrf.mxu0  ;;  %2838 = vmatmul.msk.bf16.gmra.mxu2 %vm1289_vm13, %v2892_v53  ;;  %v1738_v39 = vld [vmem:[#allocation3 + $0x48] sm:$0xff] }
 0x160   : > { %v1669_v24 = vpop.f32.mrf.mxu1  ;;  %1442 = vst.msk [vmem:[#allocation3 + $0x50] sm:$0xff] %vm1431_vm2, %v1376_v60  ;;  %v2026_v31 = vpop.f32.mrf.mxu2 }
 0x161   : > { %v1769_v46 = vadd.f32 %v1737_v44, %v1669_v24  ;;  %v2129_v11 = vadd.f32 %v2097_v6, %v2026_v31  ;;  %v1421_v28 = vpop.f32.mrf.mxu3 }
 0x162   : > { %1460 = vst.msk [vmem:[#allocation3 + $0xe0] sm:$0xff] %vm1431_vm2, %v1421_v28  ;;  %v2098_v55 = vld [vmem:[#allocation3 + $0x38] sm:$0xff] }
 0x163   : > { %1801 = vst.msk [vmem:[#allocation3 + $0x40] sm:$0xff] %vm1431_vm2, %v1769_v46 }
 0x164   : > { %2161 = vst.msk [vmem:[#allocation3 + $0x30] sm:$0xff] %vm1431_vm2, %v2129_v11 }
 0x165   : > { %2841 = vmatmul.msk.bf16.gmra.mxu3 %vm1289_vm13, %v2895_v18  ;;  %v1754_v18 = vld [vmem:[#allocation3 + $0xc8] sm:$0xff] }
 0x167   : > { %v1378_v62 = vpop.f32.mrf.mxu0  ;;  %v1739_v34 = vld [vmem:[#allocation3 + $0x50] sm:$0xff] }
 0x168   : > { %v1671_v16 = vpop.f32.mrf.mxu1  ;;  %1443 = vst.msk [vmem:[#allocation3 + $0x58] sm:$0xff] %vm1431_vm2, %v1378_v62  ;;  %v2028_v49 = vpop.f32.mrf.mxu2 }
 0x169   : > { %v1770_v21 = vadd.f32 %v1738_v39, %v1671_v16  ;;  %v2130_v8 = vadd.f32 %v2098_v55, %v2028_v49  ;;  %v1423_v19 = vpop.f32.mrf.mxu3 }
 0x16a   : > { %1461 = vst.msk [vmem:[#allocation3 + $0xe8] sm:$0xff] %vm1431_vm2, %v1423_v19  ;;  %v2099_v3 = vld [vmem:[#allocation3 + $0x40] sm:$0xff] }
 0x16b   : > { %v3957_v4 = vld [vmem:[#allocation3 + $0x30] sm:$0xff]  ;;  %1802 = vst.msk [vmem:[#allocation3 + $0x48] sm:$0xff] %vm1431_vm2, %v1770_v21 }
 0x16c   : > { %v2431_v26 = vpack.c.bf16 %v3957_v4, %v3957_v4  ;;  %2162 = vst.msk [vmem:[#allocation3 + $0x38] sm:$0xff] %vm1431_vm2, %v2130_v8 }
 0x16e   : > { %2463 = vst.msk [vmem:[%s3881_s7 + $0x18] sm:$0xf] %vm787_vm15, %v2431_v26 }
 0x16f   : > { %v1381_v63 = vpop.f32.mrf.mxu0  ;;  %v1740_v25 = vld [vmem:[#allocation3 + $0x58] sm:$0xff] }
 0x170   : > { %v1674_v43 = vpop.f32.mrf.mxu1  ;;  %1444 = vst.msk [vmem:[#allocation3 + $0x60] sm:$0xff] %vm1431_vm2, %v1381_v63 }
 0x171   : > { %v1771_v22 = vadd.f32 %v1739_v34, %v1674_v43  ;;  %v1755_v34 = vld [vmem:[#allocation3 + $0xd0] sm:$0xff] }
 0x172   : > { %v2031_v42 = vpop.f32.mrf.mxu2  ;;  %v2100_v20 = vld [vmem:[#allocation3 + $0x48] sm:$0xff] }
 0x173   : > { %v3967_v15 = vld [vmem:[#allocation3 + $0x38] sm:$0xff]  ;;  %1803 = vst.msk [vmem:[#allocation3 + $0x50] sm:$0xff] %vm1431_vm2, %v1771_v22  ;;  %v2131_v1 = vadd.f32 %v2099_v3, %v2031_v42 }
 0x174   : > { %v2432_v33 = vpack.c.bf16 %v3967_v15, %v3967_v15 }
 0x175   : > { %2842 = vmatmul.msk.bf16.gmra.mxu3 %vm1289_vm13, %v2896_v14  ;;  %2163 = vst.msk [vmem:[#allocation3 + $0x40] sm:$0xff] %vm1431_vm2, %v2131_v1 }
 0x176   : > { %2464 = vst.msk [vmem:[%s3881_s7 + $0x1c] sm:$0xf] %vm787_vm15, %v2432_v33 }
 0x177   : > { %v1383_v23 = vpop.f32.mrf.mxu0  ;;  %v1741_v59 = vld [vmem:[#allocation3 + $0x60] sm:$0xff] }
 0x178   : > { %v1676_v61 = vpop.f32.mrf.mxu1  ;;  %1445 = vst.msk [vmem:[#allocation3 + $0x68] sm:$0xff] %vm1431_vm2, %v1383_v23  ;;  %v1426_v48 = vpop.f32.mrf.mxu3 }
 0x179   : > { %v1772_v45 = vadd.f32 %v1740_v25, %v1676_v61  ;;  %1462 = vst.msk [vmem:[#allocation3 + $0xf0] sm:$0xff] %vm1431_vm2, %v1426_v48 }
 0x17a   : > { %v2033_v27 = vpop.f32.mrf.mxu2  ;;  %v2101_v54 = vld [vmem:[#allocation3 + $0x50] sm:$0xff] }
 0x17b   : > { %1804 = vst.msk [vmem:[#allocation3 + $0x58] sm:$0xff] %vm1431_vm2, %v1772_v45  ;;  %v2132_v35 = vadd.f32 %v2100_v20, %v2033_v27  ;;  %v1756_v27 = vld [vmem:[#allocation3 + $0xd8] sm:$0xff] }
 0x17c   : > { %v3979_v58 = vld [vmem:[#allocation3 + $0x40] sm:$0xff] }
 0x17d   : > { %2164 = vst.msk [vmem:[#allocation3 + $0x48] sm:$0xff] %vm1431_vm2, %v2132_v35  ;;  %v2433_v57 = vpack.c.bf16 %v3979_v58, %v3979_v58 }
 0x17f   : > { %v1386_v41 = vpop.f32.mrf.mxu0  ;;  %2465 = vst.msk [vmem:[%s3881_s7 + $0x20] sm:$0xf] %vm787_vm15, %v2433_v57  ;;  %v1742_v12 = vld [vmem:[#allocation3 + $0x68] sm:$0xff] }
 0x180   : > { %v1679_v40 = vpop.f32.mrf.mxu1  ;;  %v1428_v9 = vpop.f32.mrf.mxu3  ;;  %1446 = vst.msk [vmem:[#allocation3 + $0x70] sm:$0xff] %vm1431_vm2, %v1386_v41 }
 0x181   : > { %v1773_v36 = vadd.f32 %v1741_v59, %v1679_v40  ;;  %1463 = vst.msk [vmem:[#allocation3 + $0xf8] sm:$0xff] %vm1431_vm2, %v1428_v9 }
 0x182   : > { %v2036_v0 = vpop.f32.mrf.mxu2  ;;  %v2102_v53 = vld [vmem:[#allocation3 + $0x58] sm:$0xff] }
 0x183   : > { %1805 = vst.msk [vmem:[#allocation3 + $0x60] sm:$0xff] %vm1431_vm2, %v1773_v36  ;;  %v2133_v30 = vadd.f32 %v2101_v54, %v2036_v0 }
 0x184   : > { %v3989_v47 = vld [vmem:[#allocation3 + $0x48] sm:$0xff] }
 0x185   : > { %v2434_v29 = vpack.c.bf16 %v3989_v47, %v3989_v47  ;;  %2165 = vst.msk [vmem:[#allocation3 + $0x50] sm:$0xff] %vm1431_vm2, %v2133_v30 }
 0x187   : > { %2466 = vst.msk [vmem:[%s3881_s7 + $0x24] sm:$0xf] %vm787_vm15, %v2434_v29  ;;  %v1388_v10 = vpop.f32.mrf.mxu0  ;;  %v1743_v6 = vld [vmem:[#allocation3 + $0x70] sm:$0xff]  ;;  %v1757_v29 = vld [vmem:[#allocation3 + $0xe0] sm:$0xff] }
 0x188   : > { %v1681_v13 = vpop.f32.mrf.mxu1  ;;  %1447 = vst.msk [vmem:[#allocation3 + $0x78] sm:$0xff] %vm1431_vm2, %v1388_v10  ;;  %v1709_v5 = vpop.f32.mrf.mxu3 }
 0x189   : > { %v1774_v52 = vadd.f32 %v1742_v12, %v1681_v13  ;;  %v1785_v17 = vadd.f32 %v1753_v7, %v1709_v5 }
 0x18a   : > { %v2038_v32 = vpop.f32.mrf.mxu2  ;;  %v2103_v39 = vld [vmem:[#allocation3 + $0x60] sm:$0xff] }
 0x18b   : > { %1806 = vst.msk [vmem:[#allocation3 + $0x68] sm:$0xff] %vm1431_vm2, %v1774_v52  ;;  %v2134_v60 = vadd.f32 %v2102_v53, %v2038_v32 }
 0x18c   : > { %1817 = vst.msk [vmem:[#allocation3 + $0xc0] sm:$0xff] %vm1431_vm2, %v1785_v17  ;;  %v3999_v24 = vld [vmem:[#allocation3 + $0x50] sm:$0xff] }
 0x18d   : > { %v2435_v44 = vpack.c.bf16 %v3999_v24, %v3999_v24  ;;  %2166 = vst.msk [vmem:[#allocation3 + $0x58] sm:$0xff] %vm1431_vm2, %v2134_v60 }
 0x18f   : > { %2467 = vst.msk [vmem:[%s3881_s7 + $0x28] sm:$0xf] %vm787_vm15, %v2435_v44  ;;  %v1391_v46 = vpop.f32.mrf.mxu0  ;;  %v1744_v26 = vld [vmem:[#allocation3 + $0x78] sm:$0xff] }
 0x190   : > { %v1684_v31 = vpop.f32.mrf.mxu1  ;;  %1448 = vst.msk [vmem:[#allocation3 + $0x80] sm:$0xff] %vm1431_vm2, %v1391_v46  ;;  %v1711_v28 = vpop.f32.mrf.mxu3  ;;  %v1758_v46 = vld [vmem:[#allocation3 + $0xe8] sm:$0xff] }
 0x191   : > { %v1775_v11 = vadd.f32 %v1743_v6, %v1684_v31  ;;  %v1786_v62 = vadd.f32 %v1754_v18, %v1711_v28 }
 0x192   : > { %v2041_v16 = vpop.f32.mrf.mxu2  ;;  %v2104_v42 = vld [vmem:[#allocation3 + $0x68] sm:$0xff] }
 0x193   : > { %1807 = vst.msk [vmem:[#allocation3 + $0x70] sm:$0xff] %vm1431_vm2, %v1775_v11  ;;  %v2135_v21 = vadd.f32 %v2103_v39, %v2041_v16 }
 0x194   : > { %1818 = vst.msk [vmem:[#allocation3 + $0xc8] sm:$0xff] %vm1431_vm2, %v1786_v62  ;;  %v4009_v49 = vld [vmem:[#allocation3 + $0x58] sm:$0xff] }
 0x195   : > { %v2436_v55 = vpack.c.bf16 %v4009_v49, %v4009_v49  ;;  %2167 = vst.msk [vmem:[#allocation3 + $0x60] sm:$0xff] %vm1431_vm2, %v2135_v21 }
 0x197   : > { %2468 = vst.msk [vmem:[%s3881_s7 + $0x2c] sm:$0xf] %vm787_vm15, %v2436_v55  ;;  %v1393_v8 = vpop.f32.mrf.mxu0  ;;  %v1745_v25 = vld [vmem:[#allocation3 + $0x80] sm:$0xff] }
 0x198   : > { %v1686_v19 = vpop.f32.mrf.mxu1  ;;  %1449 = vst.msk [vmem:[#allocation3 + $0x88] sm:$0xff] %vm1431_vm2, %v1393_v8  ;;  %v1714_v43 = vpop.f32.mrf.mxu3 }
 0x199   : > { %v1776_v63 = vadd.f32 %v1744_v26, %v1686_v19  ;;  %v1787_v22 = vadd.f32 %v1755_v34, %v1714_v43  ;;  %v1759_v19 = vld [vmem:[#allocation3 + $0xf0] sm:$0xff] }
 0x19a   : > { %v2043_v14 = vpop.f32.mrf.mxu2  ;;  %v2105_v57 = vld [vmem:[#allocation3 + $0x70] sm:$0xff] }
 0x19b   : > { %1808 = vst.msk [vmem:[#allocation3 + $0x78] sm:$0xff] %vm1431_vm2, %v1776_v63  ;;  %v2136_v3 = vadd.f32 %v2104_v42, %v2043_v14 }
 0x19c   : > { %1819 = vst.msk [vmem:[#allocation3 + $0xd0] sm:$0xff] %vm1431_vm2, %v1787_v22  ;;  %v4019_v33 = vld [vmem:[#allocation3 + $0x60] sm:$0xff] }
 0x19d   : > { %v2437_v1 = vpack.c.bf16 %v4019_v33, %v4019_v33  ;;  %2168 = vst.msk [vmem:[#allocation3 + $0x68] sm:$0xff] %vm1431_vm2, %v2136_v3 }
 0x19f   : > { %2469 = vst.msk [vmem:[%s3881_s7 + $0x30] sm:$0xf] %vm787_vm15, %v2437_v1  ;;  %v1396_v23 = vpop.f32.mrf.mxu0  ;;  %v1746_v0 = vld [vmem:[#allocation3 + $0x88] sm:$0xff] }
 0x1a0   : > { %v1689_v61 = vpop.f32.mrf.mxu1  ;;  %1450 = vst.msk [vmem:[#allocation3 + $0x90] sm:$0xff] %vm1431_vm2, %v1396_v23  ;;  %v1716_v48 = vpop.f32.mrf.mxu3 }
 0x1a1   : > { %v1777_v45 = vadd.f32 %v1745_v25, %v1689_v61  ;;  %v1788_v20 = vadd.f32 %v1756_v27, %v1716_v48  ;;  %v1760_v25 = vld [vmem:[#allocation3 + $0xf8] sm:$0xff] }
 0x1a2   : > { %v2046_v35 = vpop.f32.mrf.mxu2  ;;  %v2106_v12 = vld [vmem:[#allocation3 + $0x78] sm:$0xff] }
 0x1a3   : > { %1809 = vst.msk [vmem:[#allocation3 + $0x80] sm:$0xff] %vm1431_vm2, %v1777_v45  ;;  %v2137_v41 = vadd.f32 %v2105_v57, %v2046_v35 }
 0x1a4   : > { %1820 = vst.msk [vmem:[#allocation3 + $0xd8] sm:$0xff] %vm1431_vm2, %v1788_v20  ;;  %v4029_v40 = vld [vmem:[#allocation3 + $0x68] sm:$0xff] }
 0x1a5   : > { %v2438_v59 = vpack.c.bf16 %v4029_v40, %v4029_v40  ;;  %2169 = vst.msk [vmem:[#allocation3 + $0x70] sm:$0xff] %vm1431_vm2, %v2137_v41 }
 0x1a7   : > { %2470 = vst.msk [vmem:[%s3881_s7 + $0x34] sm:$0xf] %vm787_vm15, %v2438_v59  ;;  %v1398_v36 = vpop.f32.mrf.mxu0  ;;  %v1747_v53 = vld [vmem:[#allocation3 + $0x90] sm:$0xff] }
 0x1a8   : > { %v1691_v9 = vpop.f32.mrf.mxu1  ;;  %1451 = vst.msk [vmem:[#allocation3 + $0x98] sm:$0xff] %vm1431_vm2, %v1398_v36  ;;  %v1719_v30 = vpop.f32.mrf.mxu3 }
 0x1a9   : > { %v1778_v54 = vadd.f32 %v1746_v0, %v1691_v9  ;;  %v1789_v10 = vadd.f32 %v1757_v29, %v1719_v30  ;;  %v2220_v9 = vsel %vm1431_vm2, %v3894_v37, 0.0  ;;  %v2115_v30 = vld [vmem:[#allocation3 + $0xc0] sm:$0xff] }
 0x1aa   : > { %v2048_v13 = vpop.f32.mrf.mxu2  ;;  %v2107_v11 = vld [vmem:[#allocation3 + $0x80] sm:$0xff] }
 0x1ab   : > { %1810 = vst.msk [vmem:[#allocation3 + $0x88] sm:$0xff] %vm1431_vm2, %v1778_v54  ;;  %v2138_v52 = vadd.f32 %v2106_v12, %v2048_v13  ;;  %v2222_v13 = vsel %vm1431_vm2, %v3907_v2, 0.0 }
 0x1ac   : > { %1821 = vst.msk [vmem:[#allocation3 + $0xe0] sm:$0xff] %vm1431_vm2, %v1789_v10  ;;  %v4039_v5 = vld [vmem:[#allocation3 + $0x70] sm:$0xff]  ;;  %v2219_v10 = vsel %vm1431_vm2, %v3883_v50, 0.0 }
 0x1ad   : > { %v2439_v7 = vpack.c.bf16 %v4039_v5, %v4039_v5  ;;  %2170 = vst.msk [vmem:[#allocation3 + $0x78] sm:$0xff] %vm1431_vm2, %v2138_v52 }
 0x1af   : > { %2471 = vst.msk [vmem:[%s3881_s7 + $0x38] sm:$0xf] %vm787_vm15, %v2439_v7  ;;  %v1401_v17 = vpop.f32.mrf.mxu0  ;;  %v1748_v21 = vld [vmem:[#allocation3 + $0x98] sm:$0xff]  ;;  %v2221_v7 = vadd.f32 %v2220_v9, %v2219_v10  ;;  %v2238_v9 = vsel %vm1431_vm2, %v3999_v24, 0.0 }
 0x1b0   : > { %v1694_v32 = vpop.f32.mrf.mxu1  ;;  %1452 = vst.msk [vmem:[#allocation3 + $0xa0] sm:$0xff] %vm1431_vm2, %v1401_v17  ;;  %v1721_v44 = vpop.f32.mrf.mxu3 }
 0x1b1   : > { %v1779_v60 = vadd.f32 %v1747_v53, %v1694_v32  ;;  %v1790_v31 = vadd.f32 %v1758_v46, %v1721_v44  ;;  %v2224_v32 = vsel %vm1431_vm2, %v3917_v38, 0.0  ;;  %v2226_v46 = vsel %vm1431_vm2, %v3933_v51, 0.0 }
 0x1b2   : > { %v2051_v6 = vpop.f32.mrf.mxu2  ;;  %v2108_v43 = vld [vmem:[#allocation3 + $0x88] sm:$0xff] }
 0x1b3   : > { %1811 = vst.msk [vmem:[#allocation3 + $0x90] sm:$0xff] %vm1431_vm2, %v1779_v60  ;;  %v2139_v28 = vadd.f32 %v2107_v11, %v2051_v6  ;;  %v2223_v60 = vadd.f32 %v2222_v13, %v2221_v7 }
 0x1b4   : > { %1822 = vst.msk [vmem:[#allocation3 + $0xe8] sm:$0xff] %vm1431_vm2, %v1790_v31  ;;  %v4049_v18 = vld [vmem:[#allocation3 + $0x78] sm:$0xff] }
 0x1b5   : > { %v2440_v62 = vpack.c.bf16 %v4049_v18, %v4049_v18  ;;  %2171 = vst.msk [vmem:[#allocation3 + $0x80] sm:$0xff] %vm1431_vm2, %v2139_v28  ;;  %v2225_v31 = vadd.f32 %v2224_v32, %v2223_v60  ;;  %v2228_v28 = vsel %vm1431_vm2, %v3944_v56, 0.0 }
 0x1b7   : > { %2472 = vst.msk [vmem:[%s3881_s7 + $0x3c] sm:$0xf] %vm787_vm15, %v2440_v62  ;;  %v1403_v16 = vpop.f32.mrf.mxu0  ;;  %v1749_v1 = vld [vmem:[#allocation3 + $0xa0] sm:$0xff] }
 0x1b8   : > { %v1696_v39 = vpop.f32.mrf.mxu1  ;;  %1453 = vst.msk [vmem:[#allocation3 + $0xa8] sm:$0xff] %vm1431_vm2, %v1403_v16  ;;  %v1724_v8 = vpop.f32.mrf.mxu3 }
 0x1b9   : > { %v1780_v55 = vadd.f32 %v1748_v21, %v1696_v39  ;;  %v1791_v26 = vadd.f32 %v1759_v19, %v1724_v8  ;;  %v2116_v39 = vld [vmem:[#allocation3 + $0xc8] sm:$0xff]  ;;  %v2227_v21 = vadd.f32 %v2226_v46, %v2225_v31  ;;  %v2230_v8 = vsel %vm1431_vm2, %v3957_v4, 0.0  ;;  %v2118_v31 = vld [vmem:[#allocation3 + $0xd8] sm:$0xff] }
 0x1ba   : > { %v2053_v63 = vpop.f32.mrf.mxu2  ;;  %v2109_v27 = vld [vmem:[#allocation3 + $0x90] sm:$0xff] }
 0x1bb   : > { %1812 = vst.msk [vmem:[#allocation3 + $0x98] sm:$0xff] %vm1431_vm2, %v1780_v55  ;;  %v2140_v34 = vadd.f32 %v2108_v43, %v2053_v63  ;;  %v2229_v43 = vadd.f32 %v2228_v28, %v2227_v21  ;;  %v2246_v28 = vsel %vm1431_vm2, %v4039_v5, 0.0 }
 0x1bc   : > { %1823 = vst.msk [vmem:[#allocation3 + $0xf0] sm:$0xff] %vm1431_vm2, %v1791_v26  ;;  %v4059_v22 = vld [vmem:[#allocation3 + $0x80] sm:$0xff] }
 0x1bd   : > { %v2441_v14 = vpack.c.bf16 %v4059_v22, %v4059_v22  ;;  %2172 = vst.msk [vmem:[#allocation3 + $0x88] sm:$0xff] %vm1431_vm2, %v2140_v34 }
 0x1bf   : > { %2473 = vst.msk [vmem:[%s3881_s7 + $0x40] sm:$0xf] %vm787_vm15, %v2441_v14  ;;  %v1406_v42 = vpop.f32.mrf.mxu0  ;;  %v1750_v36 = vld [vmem:[#allocation3 + $0xa8] sm:$0xff] }
 0x1c0   : > { %v1699_v3 = vpop.f32.mrf.mxu1  ;;  %1454 = vst.msk [vmem:[#allocation3 + $0xb0] sm:$0xff] %vm1431_vm2, %v1406_v42  ;;  %v1726_v61 = vpop.f32.mrf.mxu3  ;;  %v2232_v42 = vsel %vm1431_vm2, %v3967_v15, 0.0 }
 0x1c1   : > { %v1781_v23 = vadd.f32 %v1749_v1, %v1699_v3  ;;  %v1792_v45 = vadd.f32 %v1760_v25, %v1726_v61  ;;  %v2231_v1 = vadd.f32 %v2230_v8, %v2229_v43  ;;  %v2234_v61 = vsel %vm1431_vm2, %v3979_v58, 0.0 }
 0x1c2   : > { %v2056_v48 = vpop.f32.mrf.mxu2  ;;  %v2110_v52 = vld [vmem:[#allocation3 + $0x98] sm:$0xff] }
 0x1c3   : > { %1813 = vst.msk [vmem:[#allocation3 + $0xa0] sm:$0xff] %vm1431_vm2, %v1781_v23  ;;  %v2141_v20 = vadd.f32 %v2109_v27, %v2056_v48  ;;  %v2233_v25 = vadd.f32 %v2232_v42, %v2231_v1  ;;  %v2236_v27 = vsel %vm1431_vm2, %v3989_v47, 0.0 }
 0x1c4   : > { %1824 = vst.msk [vmem:[#allocation3 + $0xf8] sm:$0xff] %vm1431_vm2, %v1792_v45  ;;  %v4069_v35 = vld [vmem:[#allocation3 + $0x88] sm:$0xff] }
 0x1c5   : > { %v2442_v57 = vpack.c.bf16 %v4069_v35, %v4069_v35  ;;  %2173 = vst.msk [vmem:[#allocation3 + $0x90] sm:$0xff] %vm1431_vm2, %v2141_v20  ;;  %v2252_v1 = vsel %vm1431_vm2, %v4069_v35, 0.0 }
 0x1c7   : > { %2474 = vst.msk [vmem:[%s3881_s7 + $0x44] sm:$0xf] %vm787_vm15, %v2442_v57  ;;  %v1408_v41 = vpop.f32.mrf.mxu0  ;;  %v1751_v11 = vld [vmem:[#allocation3 + $0xb0] sm:$0xff] }
 0x1c8   : > { %v1701_v59 = vpop.f32.mrf.mxu1  ;;  %1455 = vst.msk [vmem:[#allocation3 + $0xb8] sm:$0xff] %vm1431_vm2, %v1408_v41  ;;  %v2071_v54 = vpop.f32.mrf.mxu3  ;;  %v2117_v41 = vld [vmem:[#allocation3 + $0xd0] sm:$0xff] }
 0x1c9   : > { %v1782_v0 = vadd.f32 %v1750_v36, %v1701_v59  ;;  %v2147_v29 = vadd.f32 %v2115_v30, %v2071_v54  ;;  %v2235_v59 = vadd.f32 %v2234_v61, %v2233_v25  ;;  %v2119_v61 = vld [vmem:[#allocation3 + $0xe0] sm:$0xff] }
 0x1ca   : > { %v2058_v12 = vpop.f32.mrf.mxu2  ;;  %v2111_v63 = vld [vmem:[#allocation3 + $0xa0] sm:$0xff] }
 0x1cb   : > { %1814 = vst.msk [vmem:[#allocation3 + $0xa8] sm:$0xff] %vm1431_vm2, %v1782_v0  ;;  %v2142_v17 = vadd.f32 %v2110_v52, %v2058_v12  ;;  %v2240_v12 = vsel %vm1431_vm2, %v4009_v49, 0.0 }
 0x1cc   : > { %2179 = vst.msk [vmem:[#allocation3 + $0xc0] sm:$0xff] %vm1431_vm2, %v2147_v29  ;;  %v4087_v53 = vld [vmem:[#allocation3 + $0x90] sm:$0xff]  ;;  %v2237_v29 = vadd.f32 %v2236_v27, %v2235_v59 }
 0x1cd   : > { %v2443_v44 = vpack.c.bf16 %v4087_v53, %v4087_v53  ;;  %2174 = vst.msk [vmem:[#allocation3 + $0x98] sm:$0xff] %vm1431_vm2, %v2142_v17  ;;  %v2242_v17 = vsel %vm1431_vm2, %v4019_v33, 0.0 }
 0x1ce   : > { %v2239_v52 = vadd.f32 %v2238_v9, %v2237_v29 }
 0x1cf   : > { %2475 = vst.msk [vmem:[%s3881_s7 + $0x48] sm:$0xf] %vm787_vm15, %v2443_v44  ;;  %v1752_v48 = vld [vmem:[#allocation3 + $0xb8] sm:$0xff]  ;;  %v2244_v44 = vsel %vm1431_vm2, %v4029_v40, 0.0 }
 0x1d0   : > { %v1704_v6 = vpop.f32.mrf.mxu1  ;;  %v2073_v16 = vpop.f32.mrf.mxu3  ;;  %v2241_v60 = vadd.f32 %v2240_v12, %v2239_v52 }
 0x1d1   : > { %v1783_v62 = vadd.f32 %v1751_v11, %v1704_v6  ;;  %v2148_v55 = vadd.f32 %v2116_v39, %v2073_v16 }
 0x1d2   : > { %v2061_v26 = vpop.f32.mrf.mxu2  ;;  %v2112_v30 = vld [vmem:[#allocation3 + $0xa8] sm:$0xff]  ;;  %v2243_v6 = vadd.f32 %v2242_v17, %v2241_v60 }
 0x1d3   : > { %v4100_v19 = vld [vmem:[#allocation3 + $0xc0] sm:$0xff]  ;;  %1815 = vst.msk [vmem:[#allocation3 + $0xb0] sm:$0xff] %vm1431_vm2, %v1783_v62  ;;  %v2143_v14 = vadd.f32 %v2111_v63, %v2061_v26  ;;  %v2248_v26 = vsel %vm1431_vm2, %v4049_v18, 0.0  ;;  %v2120_v17 = vld [vmem:[#allocation3 + $0xe8] sm:$0xff] }
 0x1d4   : > { %v2449_v34 = vpack.c.bf16 %v4100_v19, %v4100_v19  ;;  %2180 = vst.msk [vmem:[#allocation3 + $0xc8] sm:$0xff] %vm1431_vm2, %v2148_v55  ;;  %v4108_v3 = vld [vmem:[#allocation3 + $0x98] sm:$0xff]  ;;  %v2245_v21 = vadd.f32 %v2244_v44, %v2243_v6 }
 0x1d5   : > { %v2444_v23 = vpack.c.bf16 %v4108_v3, %v4108_v3  ;;  %2175 = vst.msk [vmem:[#allocation3 + $0xa0] sm:$0xff] %vm1431_vm2, %v2143_v14  ;;  %v2256_v9 = vsel %vm1431_vm2, %v4108_v3, 0.0 }
 0x1d6   : > { %2481 = vst.msk [vmem:[%s3881_s7 + $0x60] sm:$0xf] %vm787_vm15, %v2449_v34  ;;  %v2247_v63 = vadd.f32 %v2246_v28, %v2245_v21  ;;  %v2250_v34 = vsel %vm1431_vm2, %v4059_v22, 0.0 }
 0x1d7   : > { %2476 = vst.msk [vmem:[%s3881_s7 + $0x4c] sm:$0xf] %vm787_vm15, %v2444_v23 }
 0x1d8   : > { %v1706_v45 = vpop.f32.mrf.mxu1  ;;  %v2076_v57 = vpop.f32.mrf.mxu3  ;;  %v2249_v42 = vadd.f32 %v2248_v26, %v2247_v63  ;;  %v2121_v26 = vld [vmem:[#allocation3 + $0xf0] sm:$0xff] }
 0x1d9   : > { %v1784_v20 = vadd.f32 %v1752_v48, %v1706_v45  ;;  %v2149_v36 = vadd.f32 %v2117_v41, %v2076_v57  ;;  %v2254_v48 = vsel %vm1431_vm2, %v4087_v53, 0.0 }
 0x1da   : > { %v2063_v54 = vpop.f32.mrf.mxu2  ;;  %v2113_v39 = vld [vmem:[#allocation3 + $0xb0] sm:$0xff]  ;;  %v2251_v25 = vadd.f32 %v2250_v34, %v2249_v42 }
 0x1db   : > { %v4123_v0 = vld [vmem:[#allocation3 + $0xc8] sm:$0xff]  ;;  %1816 = vst.msk [vmem:[#allocation3 + $0xb8] sm:$0xff] %vm1431_vm2, %v1784_v20  ;;  %v2144_v13 = vadd.f32 %v2112_v30, %v2063_v54 }
 0x1dc   : > { %v2450_v10 = vpack.c.bf16 %v4123_v0, %v4123_v0  ;;  %2181 = vst.msk [vmem:[#allocation3 + $0xd0] sm:$0xff] %vm1431_vm2, %v2149_v36  ;;  %v4133_v7 = vld [vmem:[#allocation3 + $0xa0] sm:$0xff]  ;;  %v2253_v41 = vadd.f32 %v2252_v1, %v2251_v25 }
 0x1dd   : > { %v2445_v32 = vpack.c.bf16 %v4133_v7, %v4133_v7  ;;  %2176 = vst.msk [vmem:[#allocation3 + $0xa8] sm:$0xff] %vm1431_vm2, %v2144_v13  ;;  %v2258_v29 = vsel %vm1431_vm2, %v4133_v7, 0.0 }
 0x1de   : > { %2482 = vst.msk [vmem:[%s3881_s7 + $0x64] sm:$0xf] %vm787_vm15, %v2450_v10  ;;  %v2255_v54 = vadd.f32 %v2254_v48, %v2253_v41 }
 0x1df   : > { %2477 = vst.msk [vmem:[%s3881_s7 + $0x50] sm:$0xf] %vm787_vm15, %v2445_v32 }
 0x1e0   : > { %v2078_v46 = vpop.f32.mrf.mxu3  ;;  %v2257_v13 = vadd.f32 %v2256_v9, %v2255_v54 }
 0x1e1   : > { %v2150_v11 = vadd.f32 %v2118_v31, %v2078_v46 }
 0x1e2   : > { %v2066_v16 = vpop.f32.mrf.mxu2  ;;  %v2114_v57 = vld [vmem:[#allocation3 + $0xb8] sm:$0xff]  ;;  %v2259_v32 = vadd.f32 %v2258_v29, %v2257_v13 }
 0x1e3   : > { %v4146_v62 = vld [vmem:[#allocation3 + $0xd0] sm:$0xff]  ;;  %2182 = vst.msk [vmem:[#allocation3 + $0xd8] sm:$0xff] %vm1431_vm2, %v2150_v11  ;;  %v2145_v8 = vadd.f32 %v2113_v39, %v2066_v16 }
 0x1e4   : > { %v2451_v55 = vpack.c.bf16 %v4146_v62, %v4146_v62  ;;  %v4155_v43 = vld [vmem:[#allocation3 + $0xa8] sm:$0xff] }
 0x1e5   : > { %v2446_v14 = vpack.c.bf16 %v4155_v43, %v4155_v43  ;;  %2177 = vst.msk [vmem:[#allocation3 + $0xb0] sm:$0xff] %vm1431_vm2, %v2145_v8  ;;  %v2260_v12 = vsel %vm1431_vm2, %v4155_v43, 0.0 }
 0x1e6   : > { %2483 = vst.msk [vmem:[%s3881_s7 + $0x68] sm:$0xf] %vm787_vm15, %v2451_v55  ;;  %v2261_v31 = vadd.f32 %v2260_v12, %v2259_v32  ;;  %v2266_v55 = vsel %vm1431_vm2, %v4100_v19, 0.0 }
 0x1e7   : > { %2478 = vst.msk [vmem:[%s3881_s7 + $0x54] sm:$0xf] %vm787_vm15, %v2446_v14  ;;  %v2268_v14 = vsel %vm1431_vm2, %v4123_v0, 0.0 }
 0x1e8   : > { %v2081_v23 = vpop.f32.mrf.mxu3 }
 0x1e9   : > { %v2151_v45 = vadd.f32 %v2119_v61, %v2081_v23  ;;  %v2270_v61 = vsel %vm1431_vm2, %v4146_v62, 0.0 }
 0x1ea   : > { %v4168_v27 = vld [vmem:[#allocation3 + $0xd8] sm:$0xff]  ;;  %v2068_v20 = vpop.f32.mrf.mxu2 }
 0x1eb   : > { %v2452_v59 = vpack.c.bf16 %v4168_v27, %v4168_v27  ;;  %2183 = vst.msk [vmem:[#allocation3 + $0xe0] sm:$0xff] %vm1431_vm2, %v2151_v45  ;;  %v2146_v36 = vadd.f32 %v2114_v57, %v2068_v20  ;;  %v2272_v45 = vsel %vm1431_vm2, %v4168_v27, 0.0  ;;  %v2122_v57 = vld [vmem:[#allocation3 + $0xf8] sm:$0xff] }
 0x1ec   : > { %v4177_v30 = vld [vmem:[#allocation3 + $0xb0] sm:$0xff] }
 0x1ed   : > { %2484 = vst.msk [vmem:[%s3881_s7 + $0x6c] sm:$0xf] %vm787_vm15, %v2452_v59  ;;  %v2447_v10 = vpack.c.bf16 %v4177_v30, %v4177_v30  ;;  %v2262_v44 = vsel %vm1431_vm2, %v4177_v30, 0.0 }
 0x1ee   : > { %2178 = vst.msk [vmem:[#allocation3 + $0xb8] sm:$0xff] %vm1431_vm2, %v2146_v36  ;;  %v2263_v11 = vadd.f32 %v2262_v44, %v2261_v31 }
 0x1ef   : > { %2479 = vst.msk [vmem:[%s3881_s7 + $0x58] sm:$0xf] %vm787_vm15, %v2447_v10 }
 0x1f0   : > { %v2083_v52 = vpop.f32.mrf.mxu3 }
 0x1f1   : > { %v2152_v60 = vadd.f32 %v2120_v17, %v2083_v52 }
 0x1f2   : > { %v4190_v46 = vld [vmem:[#allocation3 + $0xe0] sm:$0xff] }
 0x1f3   : > { %v2453_v6 = vpack.c.bf16 %v4190_v46, %v4190_v46  ;;  %2184 = vst.msk [vmem:[#allocation3 + $0xe8] sm:$0xff] %vm1431_vm2, %v2152_v60  ;;  %v2274_v41 = vsel %vm1431_vm2, %v4190_v46, 0.0 }
 0x1f5   : > { %2485 = vst.msk [vmem:[%s3881_s7 + $0x70] sm:$0xf] %vm787_vm15, %v2453_v6  ;;  %v4197_v28 = vld [vmem:[#allocation3 + $0xb8] sm:$0xff] }
 0x1f6   : > { %v2264_v16 = vsel %vm1431_vm2, %v4197_v28, 0.0  ;;  %v2448_v39 = vpack.c.bf16 %v4197_v28, %v4197_v28 }
 0x1f7   : > { %v2265_v21 = vadd.f32 %v2264_v16, %v2263_v11 }
 0x1f8   : > { %2480 = vst.msk [vmem:[%s3881_s7 + $0x5c] sm:$0xf] %vm787_vm15, %v2448_v39  ;;  %v2086_v8 = vpop.f32.mrf.mxu3 }
 0x1f9   : > { %v2267_v63 = vadd.f32 %v2266_v55, %v2265_v21  ;;  %v2153_v34 = vadd.f32 %v2121_v26, %v2086_v8 }
 0x1fa   : > { %v4209_v42 = vld [vmem:[#allocation3 + $0xe8] sm:$0xff] }
 0x1fb   : > { %v2269_v1 = vadd.f32 %v2268_v14, %v2267_v63  ;;  %v2454_v23 = vpack.c.bf16 %v4209_v42, %v4209_v42  ;;  %2185 = vst.msk [vmem:[#allocation3 + $0xf0] sm:$0xff] %vm1431_vm2, %v2153_v34  ;;  %v2276_v29 = vsel %vm1431_vm2, %v4209_v42, 0.0 }
 0x1fd   : > { %v2271_v25 = vadd.f32 %v2270_v61, %v2269_v1  ;;  %2486 = vst.msk [vmem:[%s3881_s7 + $0x74] sm:$0xf] %vm787_vm15, %v2454_v23 }
 0x1ff   : > { %v2273_v48 = vadd.f32 %v2272_v45, %v2271_v25 }
 0x200   : > { %v2088_v20 = vpop.f32.mrf.mxu3 }
 0x201   : > { %v2154_v59 = vadd.f32 %v2122_v57, %v2088_v20  ;;  %v2275_v36 = vadd.f32 %v2274_v41, %v2273_v48 }
 0x202   : > { %v4222_v9 = vld [vmem:[#allocation3 + $0xf0] sm:$0xff] }
 0x203   : > { %v2455_v54 = vpack.c.bf16 %v4222_v9, %v4222_v9  ;;  %2186 = vst.msk [vmem:[#allocation3 + $0xf8] sm:$0xff] %vm1431_vm2, %v2154_v59  ;;  %v2277_v10 = vadd.f32 %v2276_v29, %v2275_v36  ;;  %v2278_v13 = vsel %vm1431_vm2, %v4222_v9, 0.0 }
 0x205   : > { %2487 = vst.msk [vmem:[%s3881_s7 + $0x78] sm:$0xf] %vm787_vm15, %v2455_v54  ;;  %v2279_v12 = vadd.f32 %v2278_v13, %v2277_v10 }
 0x20a   : > { %v4233_v52 = vld [vmem:[#allocation3 + $0xf8] sm:$0xff] }
 0x20b   : > { %v2280_v17 = vsel %vm1431_vm2, %v4233_v52, 0.0  ;;  %v2456_v32 = vpack.c.bf16 %v4233_v52, %v4233_v52 }
 0x20c   : > { %v2281_v60 = vadd.f32 %v2280_v17, %v2279_v12 }
 0x20d   : > { %2488 = vst.msk [vmem:[%s3881_s7 + $0x7c] sm:$0xf] %vm787_vm15, %v2456_v32 }
 0x20e   : > { %v2282_v44 = vrot.slane %v2281_v60, 4 }
 0x210   : > { %v2283_v31 = vadd.f32 %v2282_v44, %v2281_v60 }
 0x212   : > { %v2284_v6 = vrot.slane %v2283_v31, 2 }
 0x214   : > { %v2285_v11 = vadd.f32 %v2284_v6, %v2283_v31 }
 0x216   : > { %v2286_v16 = vrot.slane %v2285_v11, 1 }
 0x218   : > { %v2287_v39 = vadd.f32 %v2286_v16, %v2285_v11 }
 0x21a   : > { %2423 = vst.msk [vmem:[%s4245_s11] sm:$0x1] %vm189_vm6, %v2287_v39  ;;  %v4249_v21 = vmul.f32 0.00390625, %v2287_v39 }
 0x21c   : > { %v2289_v55 = vsub.f32 %v3883_v50, %v4249_v21  ;;  %v2290_v8 = vsub.f32 %v3894_v37, %v4249_v21  ;;  %v2291_v26 = vsub.f32 %v3907_v2, %v4249_v21  ;;  %v2292_v63 = vsub.f32 %v3917_v38, %v4249_v21 }
 0x21d   : > { %v2293_v1 = vsub.f32 %v3933_v51, %v4249_v21  ;;  %v2294_v61 = vsub.f32 %v3944_v56, %v4249_v21  ;;  %v2295_v2 = vsub.f32 %v3957_v4, %v4249_v21  ;;  %v2296_v51 = vsub.f32 %v3967_v15, %v4249_v21 }
 0x21e   : > { %v2321_v34 = vmul.f32 %v2289_v55, %v2289_v55  ;;  %v2322_v14 = vmul.f32 %v2290_v8, %v2290_v8  ;;  %v2323_v23 = vmul.f32 %v2291_v26, %v2291_v26  ;;  %v2324_v25 = vmul.f32 %v2292_v63, %v2292_v63 }
 0x21f   : > { %v2325_v48 = vmul.f32 %v2293_v1, %v2293_v1  ;;  %v2326_v57 = vmul.f32 %v2294_v61, %v2294_v61  ;;  %v2297_v59 = vsub.f32 %v3979_v58, %v4249_v21  ;;  %v2327_v36 = vmul.f32 %v2295_v2, %v2295_v2 }
 0x220   : > { %v2353_v50 = vsel %vm1431_vm2, %v2321_v34, 0.0  ;;  %v2354_v37 = vsel %vm1431_vm2, %v2322_v14, 0.0  ;;  %v2356_v38 = vsel %vm1431_vm2, %v2323_v23, 0.0  ;;  %v2358_v41 = vsel %vm1431_vm2, %v2324_v25, 0.0 }
 0x221   : > { %v2355_v45 = vadd.f32 %v2354_v37, %v2353_v50  ;;  %v2360_v54 = vsel %vm1431_vm2, %v2325_v48, 0.0  ;;  %v2298_v4 = vsub.f32 %v3989_v47, %v4249_v21  ;;  %v2328_v10 = vmul.f32 %v2296_v51, %v2296_v51 }
 0x222   : > { %v2362_v13 = vsel %vm1431_vm2, %v2326_v57, 0.0  ;;  %v2299_v15 = vsub.f32 %v3999_v24, %v4249_v21  ;;  %v2329_v17 = vmul.f32 %v2297_v59, %v2297_v59  ;;  %v2364_v32 = vsel %vm1431_vm2, %v2327_v36, 0.0 }
 0x223   : > { %v2357_v20 = vadd.f32 %v2356_v38, %v2355_v45  ;;  %v2300_v58 = vsub.f32 %v4009_v49, %v4249_v21  ;;  %v2330_v44 = vmul.f32 %v2298_v4, %v2298_v4  ;;  %v2366_v31 = vsel %vm1431_vm2, %v2328_v10, 0.0 }
 0x224   : > { %v2301_v47 = vsub.f32 %v4019_v33, %v4249_v21  ;;  %v2331_v11 = vmul.f32 %v2299_v15, %v2299_v15  ;;  %v2368_v16 = vsel %vm1431_vm2, %v2329_v17, 0.0  ;;  %v2302_v24 = vsub.f32 %v4029_v40, %v4249_v21 }
 0x225   : > { %v2359_v56 = vadd.f32 %v2358_v41, %v2357_v20  ;;  %v2332_v55 = vmul.f32 %v2300_v58, %v2300_v58  ;;  %v2370_v8 = vsel %vm1431_vm2, %v2330_v44, 0.0  ;;  %v2303_v49 = vsub.f32 %v4039_v5, %v4249_v21 }
 0x226   : > { %v2333_v63 = vmul.f32 %v2301_v47, %v2301_v47  ;;  %v2372_v34 = vsel %vm1431_vm2, %v2331_v11, 0.0  ;;  %v2304_v33 = vsub.f32 %v4049_v18, %v4249_v21  ;;  %v2334_v1 = vmul.f32 %v2302_v24, %v2302_v24 }
 0x227   : > { %v2361_v29 = vadd.f32 %v2360_v54, %v2359_v56  ;;  %v2374_v23 = vsel %vm1431_vm2, %v2332_v55, 0.0  ;;  %v2305_v40 = vsub.f32 %v4059_v22, %v4249_v21  ;;  %v2335_v25 = vmul.f32 %v2303_v49, %v2303_v49 }
 0x228   : > { %v2376_v50 = vsel %vm1431_vm2, %v2333_v63, 0.0  ;;  %v2306_v5 = vsub.f32 %v4069_v35, %v4249_v21  ;;  %v2336_v45 = vmul.f32 %v2304_v33, %v2304_v33  ;;  %v2378_v2 = vsel %vm1431_vm2, %v2334_v1, 0.0 }
 0x229   : > { %v2363_v12 = vadd.f32 %v2362_v13, %v2361_v29  ;;  %v2307_v18 = vsub.f32 %v4087_v53, %v4249_v21  ;;  %v2337_v38 = vmul.f32 %v2305_v40, %v2305_v40  ;;  %v2380_v20 = vsel %vm1431_vm2, %v2335_v25, 0.0 }
 0x22a   : > { %v2308_v22 = vsub.f32 %v4108_v3, %v4249_v21  ;;  %v2338_v57 = vmul.f32 %v2306_v5, %v2306_v5  ;;  %v2382_v41 = vsel %vm1431_vm2, %v2336_v45, 0.0  ;;  %v2309_v35 = vsub.f32 %v4133_v7, %v4249_v21 }
 0x22b   : > { %v2365_v60 = vadd.f32 %v2364_v32, %v2363_v12  ;;  %v2339_v59 = vmul.f32 %v2307_v18, %v2307_v18  ;;  %v2384_v36 = vsel %vm1431_vm2, %v2337_v38, 0.0  ;;  %v2310_v53 = vsub.f32 %v4155_v43, %v4249_v21 }
 0x22c   : > { %v2340_v29 = vmul.f32 %v2308_v22, %v2308_v22  ;;  %v2386_v4 = vsel %vm1431_vm2, %v2338_v57, 0.0  ;;  %v2311_v3 = vsub.f32 %v4177_v30, %v4249_v21  ;;  %v2341_v13 = vmul.f32 %v2309_v35, %v2309_v35 }
 0x22d   : > { %v2367_v6 = vadd.f32 %v2366_v31, %v2365_v60  ;;  %v2388_v12 = vsel %vm1431_vm2, %v2339_v59, 0.0  ;;  %v2312_v7 = vsub.f32 %v4197_v28, %v4249_v21  ;;  %v2342_v17 = vmul.f32 %v2310_v53, %v2310_v53 }
 0x22e   : > { %v2390_v32 = vsel %vm1431_vm2, %v2340_v29, 0.0  ;;  %v2313_v43 = vsub.f32 %v4100_v19, %v4249_v21  ;;  %v2343_v58 = vmul.f32 %v2311_v3, %v2311_v3  ;;  %v2392_v44 = vsel %vm1431_vm2, %v2341_v13, 0.0 }
 0x22f   : > { %v2369_v39 = vadd.f32 %v2368_v16, %v2367_v6  ;;  %v2314_v30 = vsub.f32 %v4123_v0, %v4249_v21  ;;  %v2344_v6 = vmul.f32 %v2312_v7, %v2312_v7  ;;  %v2394_v47 = vsel %vm1431_vm2, %v2342_v17, 0.0 }
 0x230   : > { %v2315_v28 = vsub.f32 %v4146_v62, %v4249_v21  ;;  %v2345_v16 = vmul.f32 %v2313_v43, %v2313_v43  ;;  %v2316_v19 = vsub.f32 %v4168_v27, %v4249_v21  ;;  %v2317_v0 = vsub.f32 %v4190_v46, %v4249_v21 }
 0x231   : > { %v2371_v26 = vadd.f32 %v2370_v8, %v2369_v39  ;;  %v2396_v39 = vsel %vm1431_vm2, %v2343_v58, 0.0  ;;  %v2346_v55 = vmul.f32 %v2314_v30, %v2314_v30  ;;  %v2398_v8 = vsel %vm1431_vm2, %v2344_v6, 0.0 }
 0x232   : > { %v2347_v49 = vmul.f32 %v2315_v28, %v2315_v28  ;;  %v2400_v63 = vsel %vm1431_vm2, %v2345_v16, 0.0  ;;  %v2318_v62 = vsub.f32 %v4209_v42, %v4249_v21  ;;  %v2319_v27 = vsub.f32 %v4222_v9, %v4249_v21 }
 0x233   : > { %v2373_v14 = vadd.f32 %v2372_v34, %v2371_v26  ;;  %v2402_v33 = vsel %vm1431_vm2, %v2346_v55, 0.0  ;;  %v2320_v46 = vsub.f32 %v4233_v52, %v4249_v21 }
 0x234   : > { %v2350_v25 = vmul.f32 %v2318_v62, %v2318_v62  ;;  %v2351_v5 = vmul.f32 %v2319_v27, %v2319_v27 }
 0x235   : > { %v2375_v61 = vadd.f32 %v2374_v23, %v2373_v14  ;;  %v2348_v14 = vmul.f32 %v2316_v19, %v2316_v19  ;;  %v2349_v23 = vmul.f32 %v2317_v0, %v2317_v0 }
 0x236   : > { %v2412_v18 = vsel %vm1431_vm2, %v2351_v5, 0.0 }
 0x237   : > { %v2377_v37 = vadd.f32 %v2376_v50, %v2375_v61  ;;  %v2404_v61 = vsel %vm1431_vm2, %v2347_v49, 0.0  ;;  %v2406_v50 = vsel %vm1431_vm2, %v2348_v14, 0.0  ;;  %v2408_v42 = vsel %vm1431_vm2, %v2349_v23, 0.0 }
 0x239   : > { %v2379_v48 = vadd.f32 %v2378_v2, %v2377_v37  ;;  %v2352_v2 = vmul.f32 %v2320_v46, %v2320_v46 }
 0x23b   : > { %v2381_v51 = vadd.f32 %v2380_v20, %v2379_v48  ;;  %v2410_v48 = vsel %vm1431_vm2, %v2350_v25, 0.0  ;;  %v2414_v20 = vsel %vm1431_vm2, %v2352_v2, 0.0 }
 0x23d   : > { %v2383_v56 = vadd.f32 %v2382_v41, %v2381_v51 }
 0x23f   : > { %v2385_v54 = vadd.f32 %v2384_v36, %v2383_v56 }
 0x241   : > { %v2387_v10 = vadd.f32 %v2386_v4, %v2385_v54 }
 0x243   : > { %v2389_v15 = vadd.f32 %v2388_v12, %v2387_v10 }
 0x245   : > { %v2391_v60 = vadd.f32 %v2390_v32, %v2389_v15 }
 0x247   : > { %v2393_v31 = vadd.f32 %v2392_v44, %v2391_v60 }
 0x249   : > { %v2395_v11 = vadd.f32 %v2394_v47, %v2393_v31 }
 0x24b   : > { %v2397_v24 = vadd.f32 %v2396_v39, %v2395_v11 }
 0x24d   : > { %v2399_v26 = vadd.f32 %v2398_v8, %v2397_v24 }
 0x24f   : > { %v2401_v34 = vadd.f32 %v2400_v63, %v2399_v26 }
 0x251   : > { %v2403_v1 = vadd.f32 %v2402_v33, %v2401_v34 }
 0x253   : > { %v2405_v40 = vadd.f32 %v2404_v61, %v2403_v1 }
 0x255   : > { %v2407_v37 = vadd.f32 %v2406_v50, %v2405_v40 }
 0x257   : > { %v2409_v45 = vadd.f32 %v2408_v42, %v2407_v37 }
 0x259   : > { %v2411_v9 = vadd.f32 %v2410_v48, %v2409_v45 }
 0x25b   : > { %v2413_v38 = vadd.f32 %v2412_v18, %v2411_v9 }
 0x25d   : > { %v2415_v51 = vadd.f32 %v2414_v20, %v2413_v38 }
 0x25f   : > { %v2416_v52 = vrot.slane %v2415_v51, 4 }
 0x261   : > { %v2417_v21 = vadd.f32 %v2416_v52, %v2415_v51 }
 0x263   : > { %v2418_v22 = vrot.slane %v2417_v21, 2 }
 0x265   : > { %v2419_v57 = vadd.f32 %v2418_v22, %v2417_v21 }
 0x267   : > { %v2420_v41 = vrot.slane %v2419_v57, 1 }
 0x269   : > { %v2421_v56 = vadd.f32 %v2420_v41, %v2419_v57 }
 0x26b   : > { %2424 = vst.msk [vmem:[%s4245_s11 + $0x1] sm:$0x1] %vm189_vm6, %v2421_v56 }
 0x26c PF: > { %s14_s12 = sadd.s32 1, %s2921_s12  }
 0x26d   : > { %p11_p4 = scmp.ge.s32.totalorder %s14_s12, 4  }
 0x26f   :  { %13 = sbr.rel (!%p11_p4) target bundleno = 1 (0x1), region = 75 }

// kernel: resblock_forward.4
= control target key start
LH: loop header
LB: loop body
LE: loop exit
PB: predicated region body
PF: predicated region fallthrough
CT: control target
= control target key end

     0   :  { %s3261_s18 = smov 0   ;;  %s4755_s0 = inlined_call_operand.vmem [shape: bf16[2,16,16,8], index: 0, kind: input, shape index: {}]   ;;  %s4756_s1 = inlined_call_operand.vmem [shape: f32[1,8], index: 1, kind: input, shape index: {}]   ;;  %s4757_s2 = inlined_call_operand.vmem [shape: f32[1,8], index: 2, kind: input, shape index: {}]   ;;  %s4758_s3 = inlined_call_operand.vmem [shape: bf16[3,24,8], index: 3, kind: input, shape index: {}]   ;;  %s4759_s4 = inlined_call_operand.vmem [shape: bf16[2,16,16,8], index: 4, kind: output, shape index: {0}]   ;;  %s4760_s5 = inlined_call_operand.vmem [shape: f32[2,2,8], index: 5, kind: output, shape index: {1}]  }
   0x1 LB: > { %s2797_s19 = sadd.s32 4294967295, %s3226_s18   ;;  %p2801_p0 = scmp.ge.s32.totalorder %s3226_s18, 1  ;;  %s3226_s18 = sphi %s3261_s18, %s16_s18  }
   0x2   : > { %p190_p1 = scmp.lt.s32.totalorder %s3226_s18, 3 }
   0x4   : > { %p191_p2 = pnand %p2801_p0, %p190_p1 }
   0x6   : > { %194 = sbr.rel (%p191_p2) target bundleno = 630 (0x276), region = 36 }
   0xb   : > { %p222_p3 = scmp.lt.s32.totalorder %s2797_s19, 1  ;;  %v3282_v0 = vld [vmem:[%s4756_s1] ss:$0 sm:$0xff]  ;;  %s3228_s28 = smov 8   ;;  %vm1077_vm0 = vsmask.f32 3328 }
   0xc   : > { %v3290_v5 = vld [vmem:[%s4757_s2] ss:$0 sm:$0xff]  ;;  %vm1078_vm1 = vsmask.f32 7440  ;;  %s3229_s29 = smov 16   ;;  %vm243_vm3 = vcmask 57344  }
   0xd   : > { %s4796_s19 = smov (!%p222_p3, %s2797_s19), 1  ;;  %vm3378_vm2 = vmor %vm1077_vm0, %vm1078_vm1  ;;  %vm244_vm4 = vsmask.f32 256  ;;  %vm237_vm6 = vcmask 191488   ;;  %vm300_vm7 = vcmask 191619   ;;  %vm1560_vm10 = vcmask 1043456  }
   0xe   : > { %s3067_s20 = sshll.u32 %s4796_s19, 7  ;;  %vm3591_vm5 = vmand %vm243_vm3, %vm244_vm4  ;;  %vm301_vm8 = vsmask.f32 7950  ;;  %vm719_vm11 = vsmask.f32 4368  ;;  %vm686_vm12 = vcmask 126016  }
   0xf   : > { %s3277_s23 = scalar_lea.vmem %s4755_s0, %s3067_s20  ;;  %vm3657_vm9 = vmand %vm300_vm7, %vm301_vm8  ;;  %vm1009_vm14 = vcmask 60416   ;;  %vm1010_vm15 = vsmask.f32 7938  ;;  %vm1511_vm1 = vcmask 195584   ;;  %s4284_s26 = scalar_lea.vmem %s4759_s4, %s3067_s20 }
  0x10   : > { %v3184_v1 = vld [vmem:[%s3277_s23 + $0x8] sm:$0xff]   ;;  %v3121_v2 = vld [vmem:[%s3277_s23] sm:$0xff]   ;;  %v3194_v3 = vld [vmem:[%s3277_s23 + $0x58] sm:$0xff]   ;;  %s2806_s20 = sshll.u32 %s4796_s19, 1 }
  0x11   : > { %v3126_v4 = vunpack.c.l.bf16 %v3184_v1  ;;  %v3122_v6 = vunpack.c.l.bf16 %v3121_v2  ;;  %v3127_v7 = vunpack.c.h.bf16 %v3184_v1  ;;  %v3123_v8 = vunpack.c.h.bf16 %v3121_v2  ;;  %v3185_v9 = vld [vmem:[%s3277_s23 + $0x10] sm:$0xff]   ;;  %vm3686_vm13 = vmor %vm244_vm4, %vm719_vm11 }
  0x12   : > { %v3166_v10 = vunpack.c.l.bf16 %v3194_v3  ;;  %v3131_v11 = vunpack.c.h.bf16 %v3185_v9  ;;  %v3130_v12 = vunpack.c.l.bf16 %v3185_v9  ;;  %v3167_v13 = vunpack.c.h.bf16 %v3194_v3  ;;  %vm3724_vm4 = vmand %vm1009_vm14, %vm1010_vm15 }
  0x13   : > { %v427_v14 = vmul.f32 %v3282_v0, %v3126_v4  ;;  %v425_v15 = vmul.f32 %v3282_v0, %v3122_v6  ;;  %v428_v16 = vmul.f32 %v3282_v0, %v3127_v7  ;;  %v426_v17 = vmul.f32 %v3282_v0, %v3123_v8 }
  0x14   : > { %v447_v18 = vmul.f32 %v3282_v0, %v3166_v10  ;;  %v430_v19 = vmul.f32 %v3282_v0, %v3131_v11  ;;  %v429_v20 = vmul.f32 %v3282_v0, %v3130_v12  ;;  %v448_v21 = vmul.f32 %v3282_v0, %v3167_v13  ;;  %v3186_v13 = vld [vmem:[%s3277_s23 + $0x18] sm:$0xff]  }
  0x15   : > { %v463_v22 = vadd.f32 %v3290_v5, %v427_v14  ;;  %v461_v23 = vadd.f32 %v3290_v5, %v425_v15  ;;  %v464_v24 = vadd.f32 %v3290_v5, %v428_v16  ;;  %v462_v30 = vadd.f32 %v3290_v5, %v426_v17 }
  0x16   : > { %v483_v25 = vadd.f32 %v3290_v5, %v447_v18  ;;  %v465_v26 = vadd.f32 %v3290_v5, %v429_v20  ;;  %v484_v27 = vadd.f32 %v3290_v5, %v448_v21  ;;  %v466_v31 = vadd.f32 %v3290_v5, %v430_v19 }
  0x17   : > { %v495_v28 = vmax.f32 %v463_v22, 0.0  ;;  %v493_v29 = vmax.f32 %v461_v23, 0.0  ;;  %v496_v32 = vmax.f32 %v464_v24, 0.0  ;;  %v494_v42 = vmax.f32 %v462_v30, 0.0  ;;  %v3195_v24 = vld [vmem:[%s3277_s23 + $0x60] sm:$0xff]  }
  0x18   : > { %v515_v33 = vmax.f32 %v483_v25, 0.0  ;;  %v497_v34 = vmax.f32 %v465_v26, 0.0  ;;  %v516_v35 = vmax.f32 %v484_v27, 0.0  ;;  %v498_v43 = vmax.f32 %v466_v31, 0.0 }
  0x19   : > { %v527_v36 = vpack.c.bf16 %v495_v28, %v495_v28  ;;  %v3309_v37 = vpack.c.bf16 %v493_v29, %v493_v29  ;;  %v528_v44 = vpack.c.bf16 %v496_v32, %v496_v32  ;;  %v526_v58 = vpack.c.bf16 %v494_v42, %v494_v42 }
  0x1a   : > { %v3311_v38 = vpack.c.bf16 %v515_v33, %v515_v33  ;;  %v3313_v39 = vpack.c.bf16 %v497_v34, %v497_v34  ;;  %v548_v47 = vpack.c.bf16 %v516_v35, %v516_v35  ;;  %v530_v61 = vpack.c.bf16 %v498_v43, %v498_v43 }
  0x1b   : > { %593 = vrot.lane.b32.xlu1 %v527_v36, %s3228_s28  ;;  %v738_v40 = vshrl.u32 %v527_v36, 16  ;;  %589 = vrot.lane.b32.xlu0 %v3309_v37, %s3228_s28  ;;  %v722_v41 = vshrl.u32 %v3309_v37, 16  ;;  %v741_v49 = vshll.u32 %v527_v36, 16  ;;  %v725_v51 = vshll.u32 %v3309_v37, 16 }
  0x1c   : > { %v898_v45 = vshrl.u32 %v3311_v38, 16  ;;  %597 = vrot.lane.b32.xlu2 %v3313_v39, %s3228_s28  ;;  %v754_v46 = vshrl.u32 %v3313_v39, 16  ;;  %v901_v53 = vshll.u32 %v3311_v38, 16  ;;  %v757_v55 = vshll.u32 %v3313_v39, 16 }
  0x1d   : > { %v3323_v48 = vrot.slane %v738_v40, 7  ;;  %v3325_v50 = vrot.slane %v722_v41, 7  ;;  %v746_v59 = vshrl.u32 %v528_v44, 16  ;;  %v749_v63 = vshll.u32 %v528_v44, 16 }
  0x1e   : > { %v3330_v52 = vrot.slane %v898_v45, 7  ;;  %v3335_v54 = vrot.slane %v754_v46, 7  ;;  %v1089_v1 = vrot.slane %v738_v40, 4  ;;  %v1090_v2 = vrot.slane %v741_v49, 5 }
  0x1f   : > { %v3339_v56 = vor.u32 %v741_v49, %v3323_v48  ;;  %v3342_v57 = vor.u32 %v725_v51, %v3325_v50  ;;  %v748_v3 = vrot.slane %v746_v59, 7  ;;  %v906_v4 = vshrl.u32 %v548_v47, 16 }
  0x20   : > { %v3347_v60 = vor.u32 %v901_v53, %v3330_v52  ;;  %v3352_v62 = vor.u32 %v757_v55, %v3335_v54  ;;  %v762_v6 = vshrl.u32 %v530_v61, 16  ;;  %v730_v8 = vshrl.u32 %v526_v58, 16 }
  0x21   : > { %v3356_v7 = vor.u32 %v749_v63, %v748_v3  ;;  %v908_v9 = vrot.slane %v906_v4, 7  ;;  %v909_v10 = vshll.u32 %v548_v47, 16  ;;  %v765_v12 = vshll.u32 %v530_v61, 16 }
  0x22   : > { %v764_v11 = vrot.slane %v762_v6, 7  ;;  %v1091_v14 = vor.u32 %v1090_v2, %v1089_v1  ;;  %v1093_v15 = vrot.slane %v749_v63, 5  ;;  %v1095_v16 = vrot.slane %v746_v59, 4 }
  0x23   : > { %595 = vrot.lane.b32.xlu1 %v528_v44, %s3228_s28  ;;  %591 = vrot.lane.b32.xlu0 %v526_v58, %s3228_s28  ;;  %v3360_v17 = vor.u32 %v909_v10, %v908_v9  ;;  %v733_v19 = vshll.u32 %v526_v58, 16  ;;  %v1086_v20 = vrot.slane %v730_v8, 4  ;;  %v732_v21 = vrot.slane %v730_v8, 7  ;;  %v3187_v9 = vld [vmem:[%s3277_s23 + $0x20] sm:$0xff]  }
  0x24   : > { %635 = vrot.lane.b32.xlu2 %v548_v47, %s3228_s28  ;;  %v3362_v18 = vor.u32 %v765_v12, %v764_v11  ;;  %v3134_v22 = vunpack.c.l.bf16 %v3186_v13  ;;  %v1092_v25 = vrot.slane %v1091_v14, 4  ;;  %v1096_v26 = vor.u32 %v1095_v16, %v1093_v15 }
  0x25   : > { %v1084_v23 = vrot.slane %v733_v19, 5  ;;  %v3365_v27 = vor.u32 %v733_v19, %v732_v21  ;;  %v3368_v29 = vrot.slane %v909_v10, 5  ;;  %v1080_v31 = vrot.slane %v722_v41, 4  ;;  %v291_v41 = vld [vmem:[#allocation2 + $0x78] sm:$0x1] }
  0x26   : > { %v431_v28 = vmul.f32 %v3282_v0, %v3134_v22  ;;  %v1081_v32 = vrot.slane %v725_v51, 5  ;;  %v1185_v33 = vrot.slane %v906_v4, 4  ;;  %v3171_v35 = vunpack.c.h.bf16 %v3195_v24 }
  0x27   : > { %v1087_v30 = vor.u32 %v1086_v20, %v1084_v23  ;;  %v3170_v36 = vunpack.c.l.bf16 %v3195_v24  ;;  %v3374_v37 = vrot.slane %v765_v12, 5  ;;  %v3135_v42 = vunpack.c.h.bf16 %v3186_v13 }
  0x28   : > { %v467_v34 = vadd.f32 %v3290_v5, %v431_v28  ;;  %v1082_v43 = vor.u32 %v1081_v32, %v1080_v31  ;;  %v1104_v44 = vrot.slane %v762_v6, 4  ;;  %v450_v49 = vmul.f32 %v3282_v0, %v3171_v35 }
  0x29   : > { %v1088_v40 = vrot.slane %v1087_v30, 4  ;;  %v449_v51 = vmul.f32 %v3282_v0, %v3170_v36  ;;  %v1098_v59 = vrot.slane %v754_v46, 4  ;;  %v1097_v63 = vrot.slane %v1096_v26, 4 }
  0x2a   : > { %v499_v47 = vmax.f32 %v467_v34, 0.0  ;;  %v1083_v58 = vrot.slane %v1082_v43, 4  ;;  %v486_v2 = vadd.f32 %v3290_v5, %v450_v49  ;;  %v1094_v4 = vsel %vm3378_vm2, %v1092_v25, %v1093_v15  ;;  %v3196_v34 = vld [vmem:[%s3277_s23 + $0x68] sm:$0xff]  }
  0x2b   : > { %633 = vrot.lane.b32.xlu1 %v3311_v38, %s3228_s28  ;;  %599 = vrot.lane.b32.xlu0 %v530_v61, %s3228_s28  ;;  %v1099_v61 = vrot.slane %v757_v55, 5  ;;  %v485_v3 = vadd.f32 %v3290_v5, %v449_v51  ;;  %v1186_v6 = vor.u32 %v1185_v33, %v3368_v29  ;;  %v432_v8 = vmul.f32 %v3282_v0, %v3135_v42 }
  0x2c   : > { %1226 = vrot.lane.b32.xlu2 %v1088_v40, %s3229_s29  ;;  %v3389_v1 = vpack.c.bf16 %v499_v47, %v499_v47  ;;  %v1105_v46 = vor.u32 %v1104_v44, %v3374_v37  ;;  %v518_v55 = vmax.f32 %v486_v2, 0.0  ;;  %v1085_v12 = vsel %vm3378_vm2, %v1083_v58, %v1084_v23 }
  0x2d   : > { %v517_v10 = vmax.f32 %v485_v3, 0.0  ;;  %v1100_v13 = vor.u32 %v1099_v61, %v1098_v59  ;;  %v3139_v14 = vunpack.c.h.bf16 %v3187_v9  ;;  %v3138_v20 = vunpack.c.l.bf16 %v3187_v9 }
  0x2e   : > { %v770_v39 = vshrl.u32 %v3389_v1, 16  ;;  %v773_v11 = vshll.u32 %v3389_v1, 16  ;;  %v3409_v16 = vpack.c.bf16 %v518_v55, %v518_v55  ;;  %v1179_v21 = vrot.slane %v898_v45, 4 }
  0x2f   : > { %v3411_v19 = vpack.c.bf16 %v517_v10, %v517_v10  ;;  %v1180_v22 = vrot.slane %v901_v53, 5  ;;  %v468_v23 = vadd.f32 %v3290_v5, %v432_v8  ;;  %v434_v24 = vmul.f32 %v3282_v0, %v3139_v14 }
  0x30   : > { %v3407_v15 = vrot.slane %v770_v39, 7  ;;  %v1187_v28 = vrot.slane %v1186_v6, 4  ;;  %v1106_v30 = vrot.slane %v1105_v46, 4  ;;  %v922_v45 = vshrl.u32 %v3409_v16, 16 }
  0x31   : > { %v914_v26 = vshrl.u32 %v3411_v19, 16  ;;  %v470_v38 = vadd.f32 %v3290_v5, %v434_v24  ;;  %v917_v31 = vshll.u32 %v3411_v19, 16  ;;  %v1101_v32 = vrot.slane %v1100_v13, 4 }
  0x32   : > { %v3422_v25 = vor.u32 %v773_v11, %v3407_v15  ;;  %v433_v33 = vmul.f32 %v3282_v0, %v3138_v20  ;;  %v1181_v35 = vor.u32 %v1180_v22, %v1179_v21  ;;  %v500_v36 = vmax.f32 %v468_v23, 0.0 }
  0x33   : > { %1228 = vrot.lane.b32.xlu1 %v1094_v4, %s3229_s29  ;;  %1230 = vrot.lane.b32.xlu0 %v1097_v63, %s3229_s29  ;;  %v3428_v53 = vrot.slane %v914_v26, 7  ;;  %v924_v40 = vrot.slane %v922_v45, 7  ;;  %v925_v42 = vshll.u32 %v3409_v16, 16  ;;  %v502_v44 = vmax.f32 %v470_v38, 0.0 }
  0x34   : > { %1224 = vrot.lane.b32.xlu2 %v1085_v12, %s3229_s29  ;;  %v469_v47 = vadd.f32 %v3290_v5, %v433_v33  ;;  %v3174_v51 = vunpack.c.l.bf16 %v3196_v34  ;;  %v1103_v58 = vsel %vm3378_vm2, %v1101_v32, %v3374_v37  ;;  %v1182_v63 = vrot.slane %v1181_v35, 4 }
  0x35   : > { %v3435_v43 = vor.u32 %v917_v31, %v3428_v53  ;;  %v3438_v49 = vor.u32 %v925_v42, %v924_v40  ;;  %v3445_v59 = vpack.c.bf16 %v502_v44, %v502_v44  ;;  %v532_v2 = vpack.c.bf16 %v500_v36, %v500_v36 }
  0x36   : > { %v501_v61 = vmax.f32 %v469_v47, 0.0  ;;  %v451_v3 = vmul.f32 %v3282_v0, %v3174_v51  ;;  %v1184_v10 = vsel %vm3378_vm2, %v1182_v63, %v3368_v29  ;;  %v1107_v29 = vrot.slane %v770_v39, 4 }
  0x37   : > { %v794_v6 = vshrl.u32 %v3445_v59, 16  ;;  %v778_v9 = vshrl.u32 %v532_v2, 16  ;;  %v797_v55 = vshll.u32 %v3445_v59, 16  ;;  %v781_v12 = vshll.u32 %v532_v2, 16 }
  0x38   : > { %v3448_v4 = vpack.c.bf16 %v501_v61, %v501_v61  ;;  %v487_v8 = vadd.f32 %v3290_v5, %v451_v3  ;;  %v3175_v32 = vunpack.c.h.bf16 %v3196_v34  ;;  %v1192_v35 = vrot.slane %v925_v42, 5 }
  0x39   : > { %v796_v37 = vrot.slane %v794_v6, 7  ;;  %v1113_v22 = vrot.slane %v778_v9, 4  ;;  %v1111_v38 = vrot.slane %v781_v12, 5  ;;  %v1194_v40 = vrot.slane %v922_v45, 4  ;;  %v3197_v45 = vld [vmem:[%s3277_s23 + $0x70] sm:$0xff]  }
  0x3a   : > { %v786_v46 = vshrl.u32 %v3448_v4, 16  ;;  %v519_v13 = vmax.f32 %v487_v8, 0.0  ;;  %v789_v20 = vshll.u32 %v3448_v4, 16  ;;  %v1189_v47 = vrot.slane %v917_v31, 5 }
  0x3b   : > { %1270 = vrot.lane.b32.xlu1 %v1187_v28, %s3229_s29  ;;  %1234 = vrot.lane.b32.xlu0 %v1106_v30, %s3229_s29  ;;  %v3465_v21 = vor.u32 %v797_v55, %v796_v37  ;;  %v780_v28 = vrot.slane %v778_v9, 7  ;;  %v1108_v30 = vrot.slane %v773_v11, 5  ;;  %v1114_v39 = vor.u32 %v1113_v22, %v1111_v38 }
  0x3c   : > { %1232 = vrot.lane.b32.xlu2 %v1103_v58, %s3229_s29  ;;  %v3462_v14 = vrot.slane %v786_v46, 7  ;;  %v3467_v23 = vpack.c.bf16 %v519_v13, %v519_v13  ;;  %v1188_v11 = vrot.slane %v914_v26, 4  ;;  %v452_v34 = vmul.f32 %v3282_v0, %v3175_v32  ;;  %v3498_v58 = vld [vmem:[%s3277_s23 + $0x28] sm:$0xff]  }
  0x3d   : > { %v3482_v36 = vor.u32 %v781_v12, %v780_v28  ;;  %v1109_v51 = vor.u32 %v1108_v30, %v1107_v29  ;;  %v3178_v61 = vunpack.c.l.bf16 %v3197_v45  ;;  %v3179_v63 = vunpack.c.h.bf16 %v3197_v45 }
  0x3e   : > { %v3477_v24 = vor.u32 %v789_v20, %v3462_v14  ;;  %v930_v33 = vshrl.u32 %v3467_v23, 16  ;;  %v1115_v3 = vrot.slane %v1114_v39, 4  ;;  %v3143_v8 = vunpack.c.h.bf16 %v3498_v58 }
  0x3f   : > { %v1190_v26 = vor.u32 %v1189_v47, %v1188_v11  ;;  %v453_v31 = vmul.f32 %v3282_v0, %v3178_v61  ;;  %v454_v9 = vmul.f32 %v3282_v0, %v3179_v63  ;;  %v1110_v37 = vrot.slane %v1109_v51, 4 }
  0x40   : > { %v3487_v44 = vrot.slane %v930_v33, 7  ;;  %v436_v12 = vmul.f32 %v3282_v0, %v3143_v8  ;;  %v3525_v61 = vrot.slane %v797_v55, 5 }
  0x41   : > { %v489_v13 = vadd.f32 %v3290_v5, %v453_v31  ;;  %v490_v22 = vadd.f32 %v3290_v5, %v454_v9  ;;  %v1112_v32 = vsel %vm3378_vm2, %v1110_v37, %v1111_v38  ;;  %v1122_v38 = vrot.slane %v794_v6, 4 }
  0x43   : > { %601 = vrot.lane.b32.xlu1 %v3389_v1, %s3228_s28  ;;  %1268 = vrot.lane.b32.xlu0 %v1184_v10, %s3229_s29  ;;  %v933_v1 = vshll.u32 %v3467_v23, 16  ;;  %v488_v10 = vadd.f32 %v3290_v5, %v452_v34  ;;  %v521_v28 = vmax.f32 %v489_v13, 0.0  ;;  %v522_v30 = vmax.f32 %v490_v22, 0.0 }
  0x44   : > { %603 = vrot.lane.b32.xlu2 %v532_v2, %s3228_s28  ;;  %v1195_v2 = vor.u32 %v1194_v40, %v1192_v35  ;;  %v1123_v9 = vor.u32 %v1122_v38, %v3525_v61 }
  0x45   : > { %v3494_v42 = vor.u32 %v933_v1, %v3487_v44  ;;  %v520_v40 = vmax.f32 %v488_v10, 0.0  ;;  %v3515_v11 = vpack.c.bf16 %v521_v28, %v521_v28  ;;  %v3517_v47 = vpack.c.bf16 %v522_v30, %v522_v30  ;;  %v3189_v10 = vld [vmem:[%s3277_s23 + $0x30] sm:$0xff]  }
  0x46   : > { %v1196_v29 = vrot.slane %v1195_v2, 4  ;;  %v3146_v13 = vunpack.c.l.bf16 %v3189_v10  ;;  %v3147_v22 = vunpack.c.h.bf16 %v3189_v10 }
  0x47   : > { %v4762_v34 = vshrl.u32 %v3515_v11, 16  ;;  %v954_v45 = vshrl.u32 %v3517_v47, 16  ;;  %v552_v63 = vpack.c.bf16 %v520_v40, %v520_v40  ;;  %v4761_v8 = vshll.u32 %v3515_v11, 16 }
  0x49   : > { %v938_v55 = vshrl.u32 %v552_v63, 16  ;;  %v941_v37 = vshll.u32 %v552_v63, 16 }
  0x4b   : > { %639 = vrot.lane.b32.xlu1 %v3409_v16, %s3228_s28  ;;  %637 = vrot.lane.b32.xlu0 %v3411_v19, %s3228_s28  ;;  %v472_v16 = vadd.f32 %v3290_v5, %v436_v12  ;;  %v1191_v19 = vrot.slane %v1190_v26, 4  ;;  %v957_v26 = vshll.u32 %v3517_v47, 16  ;;  %v1203_v30 = vrot.slane %v938_v55, 4 }
  0x4c   : > { %1238 = vrot.lane.b32.xlu2 %v1115_v3, %s3229_s29  ;;  %v3533_v3 = vrot.slane %v4762_v34, 7  ;;  %v940_v40 = vrot.slane %v938_v55, 7 }
  0x4d   : > { %v504_v39 = vmax.f32 %v472_v16, 0.0  ;;  %v1193_v51 = vsel %vm3378_vm2, %v1191_v19, %v1192_v35  ;;  %v956_v35 = vrot.slane %v954_v45, 7  ;;  %v3142_v16 = vunpack.c.l.bf16 %v3498_v58 }
  0x4e   : > { %v3543_v6 = vor.u32 %v4761_v8, %v3533_v3  ;;  %v1117_v19 = vrot.slane %v789_v20, 5  ;;  %v437_v58 = vmul.f32 %v3282_v0, %v3146_v13  ;;  %v1197_v20 = vrot.slane %v930_v33, 4 }
  0x4f   : > { %v3529_v2 = vpack.c.bf16 %v504_v39, %v504_v39  ;;  %v3547_v31 = vor.u32 %v957_v26, %v956_v35  ;;  %v1198_v39 = vrot.slane %v933_v1, 5  ;;  %v3575_v38 = vor.u32 %v941_v37, %v940_v40 }
  0x50   : > { %4771 = vst [vmem:[#allocation4_spill] sm:$0xff] %v3543_v6  ;;  %v473_v35 = vadd.f32 %v3290_v5, %v437_v58  ;;  %v1124_v1 = vrot.slane %v1123_v9, 4 }
  0x51   : > { %v810_v12 = vshrl.u32 %v3529_v2, 16  ;;  %v813_v28 = vshll.u32 %v3529_v2, 16 }
  0x52   : > { %v505_v13 = vmax.f32 %v473_v35, 0.0 }
  0x53   : > { %1236 = vrot.lane.b32.xlu1 %v1112_v32, %s3229_s29  ;;  %1274 = vrot.lane.b32.xlu0 %v1196_v29, %s3229_s29  ;;  %v1116_v29 = vrot.slane %v786_v46, 4  ;;  %v812_v32 = vrot.slane %v810_v12, 7  ;;  %v438_v46 = vmul.f32 %v3282_v0, %v3147_v22 }
  0x54   : > { %1272 = vrot.lane.b32.xlu2 %v1193_v51, %s3229_s29  ;;  %v1201_v51 = vrot.slane %v941_v37, 5 }
  0x55   : > { %v474_v55 = vadd.f32 %v3290_v5, %v438_v46  ;;  %v1118_v8 = vor.u32 %v1117_v19, %v1116_v29  ;;  %v255_v19 = vld [vmem:[#allocation2 + $0x18] sm:$0x1] }
  0x56   : > { %v1204_v33 = vor.u32 %v1203_v30, %v1201_v51 }
  0x57   : > { %v506_v22 = vmax.f32 %v474_v55, 0.0  ;;  %v1119_v30 = vrot.slane %v1118_v8, 4 }
  0x58   : > { %v1205_v40 = vrot.slane %v1204_v33, 4 }
  0x59   : > { %v3584_v37 = vpack.c.bf16 %v506_v22, %v506_v22 }
  0x5b   : > { %607 = vrot.lane.b32.xlu1 %v3445_v59, %s3228_s28  ;;  %605 = vrot.lane.b32.xlu0 %v3448_v4, %s3228_s28  ;;  %v435_v59 = vmul.f32 %v3282_v0, %v3142_v16  ;;  %v3573_v4 = vor.u32 %v813_v28, %v812_v32  ;;  %v1199_v16 = vor.u32 %v1198_v39, %v1197_v20  ;;  %v256_v20 = vsel %vm3591_vm5, 0, %v255_v19 }
  0x5c   : > { %641 = vrot.lane.b32.xlu2 %v3467_v23, %s3228_s28  ;;  %v3582_v32 = vpack.c.bf16 %v505_v13, %v505_v13  ;;  %v4763_v8 = vshrl.u32 %v3584_v37, 16  ;;  %257 = vst [vmem:[#allocation2 + $0x18] sm:$0x1] %v256_v20  ;;  %v4764_v33 = vshll.u32 %v3584_v37, 16  ;;  %v3639_v19 = vrot.slane %v957_v26, 5 }
  0x5d   : > { %v471_v10 = vadd.f32 %v3290_v5, %v435_v59  ;;  %v1200_v9 = vrot.slane %v1199_v16, 4  ;;  %v3627_v16 = vld [vmem:[%s3277_s23 + $0x38] sm:$0xff]   ;;  %v1212_v20 = vrot.slane %v954_v45, 4  ;;  %v3650_v26 = vrot.slane %v813_v28, 5 }
  0x5e   : > { %v818_v23 = vshrl.u32 %v3582_v32, 16  ;;  %v828_v55 = vrot.slane %v4763_v8, 7  ;;  %v1131_v45 = vrot.slane %v810_v12, 4  ;;  %v4777_v28 = vshrl.u32 %v3515_v11, 16 }
  0x5f   : > { %v503_v34 = vmax.f32 %v471_v10, 0.0  ;;  %v1202_v10 = vsel %vm3378_vm2, %v1200_v9, %v1201_v51  ;;  %v249_v51 = vld [vmem:[#allocation2 + $0x8] sm:$0x1]  ;;  %v3230_v9 = vmov 0   ;;  %v4778_v8 = vshll.u32 %v3515_v11, 16 }
  0x60   : > { %v3624_v22 = vor.u32 %v4764_v33, %v828_v55  ;;  %238 = vst.msk [vmem:[#allocation2] sm:$0xf] %vm237_vm6, %v3230_v9  ;;  %v1421_v55 = vld [vmem:[%s4758_s3 + $0x8] sm:$0xf] }
  0x61   : > { %v535_v58 = vpack.c.bf16 %v503_v34, %v503_v34  ;;  %v3597_v34 = vrot.slane %v818_v23, 7  ;;  %239 = vst.msk [vmem:[#allocation2 + $0x4] sm:$0xf] %vm237_vm6, %v3230_v9  ;;  %v1207_v12 = vrot.slane %v4778_v8, 5 }
  0x62   : > { %241 = vst.msk [vmem:[#allocation2 + $0x88] sm:$0xf] %vm237_vm6, %v3230_v9 }
  0x63   : > { %1242 = vrot.lane.b32.xlu1 %v1124_v1, %s3229_s29  ;;  %643 = vrot.lane.b32.xlu0 %v552_v63, %s3228_s28  ;;  %v802_v46 = vshrl.u32 %v535_v58, 16  ;;  %v821_v63 = vshll.u32 %v3582_v32, 16  ;;  %v805_v59 = vshll.u32 %v535_v58, 16  ;;  %v1121_v1 = vsel %vm3378_vm2, %v1119_v30, %v3525_v61  ;;  %242 = vst.msk [vmem:[#allocation2 + $0x8c] sm:$0xf] %vm237_vm6, %v3230_v9 }
  0x64   : > { %1278 = vrot.lane.b32.xlu2 %v1205_v40, %s3229_s29  ;;  %v252_v40 = vld [vmem:[#allocation2 + $0x10] sm:$0x1]  ;;  %v250_v30 = vsel %vm3591_vm5, 0, %v249_v51  ;;  %v1132_v9 = vor.u32 %v1131_v45, %v3650_v26  ;;  %vm1320_vm6 = vcmask 191616  }
  0x65   : > { %v3604_v39 = vrot.slane %v802_v46, 7  ;;  %v3609_v35 = vor.u32 %v821_v63, %v3597_v34  ;;  %v253_v61 = vsel %vm3591_vm5, 0, %v252_v40  ;;  %251 = vst [vmem:[#allocation2 + $0x8] sm:$0x1] %v250_v30  ;;  %v1125_v40 = vrot.slane %v802_v46, 4  ;;  %vm3920_vm7 = vmand %vm1320_vm6, %vm1077_vm0 }
  0x66   : > { %254 = vst [vmem:[#allocation2 + $0x10] sm:$0x1] %v253_v61  ;;  %v1126_v51 = vrot.slane %v805_v59, 5  ;;  %vm1653_vm0 = vcmask 64512  }
  0x67   : > { %4774 = vst [vmem:[#allocation5_spill] sm:$0xff] %v3609_v35  ;;  %v3620_v13 = vor.u32 %v805_v59, %v3604_v39 }
  0x68   : > { %v1127_v33 = vor.u32 %v1126_v51, %v1125_v40  ;;  %v303_v8 = vld [vmem:[#allocation2 + $0x4] sm:$0x8] }
  0x6b   : > { %1276 = vrot.lane.b32.xlu1 %v1202_v10, %s3229_s29  ;;  %1240 = vrot.lane.b32.xlu0 %v1121_v1, %s3229_s29  ;;  %v1507_v10 = vunpack.c.l.b16 %v1421_v55  ;;  %v3151_v1 = vunpack.c.h.bf16 %v3627_v16  ;;  %v1206_v55 = vrot.slane %v4777_v28, 4 }
  0x6c   : > { %609 = vrot.lane.b32.xlu2 %v535_v58, %s3228_s28  ;;  %v744_v58 = vrot.slane %v3323_v48, 4  ;;  %v1213_v48 = vor.u32 %v1212_v20, %v3639_v19  ;;  %v728_v20 = vrot.slane %v3325_v50, 4  ;;  %v339_v50 = vld [vmem:[#allocation2 + $0x64] sm:$0x8] }
  0x6d   : > { %v1509_v61 = vpack.c.b16 %v1507_v10, %v1507_v10  ;;  %v440_v59 = vmul.f32 %v3282_v0, %v3151_v1  ;;  %v246_v10 = vld [vmem:[#allocation2] sm:$0x1]  ;;  %v306_v1 = vld [vmem:[#allocation2 + $0xc] sm:$0x8]  ;;  %v1208_v45 = vor.u32 %v1207_v12, %v1206_v55  ;;  %v309_v12 = vld [vmem:[#allocation2 + $0x14] sm:$0x8] }
  0x6e   : > { %v247_v28 = vsel %vm3591_vm5, 0, %v246_v10  ;;  %v1214_v51 = vrot.slane %v1213_v48, 4  ;;  %v1133_v10 = vrot.slane %v1132_v9, 4  ;;  %v340_v48 = vsel %vm3657_vm9, 0, %v339_v50 }
  0x6f   : > { %v1562_v46 = vsel %vm1560_vm10, %v1509_v61, 0  ;;  %v904_v61 = vrot.slane %v3330_v52, 4  ;;  %248 = vst [vmem:[#allocation2] sm:$0x1] %v247_v28  ;;  %v476_v52 = vadd.f32 %v3290_v5, %v440_v59  ;;  %v1128_v28 = vrot.slane %v1127_v33, 4  ;;  %v3085_v59 = vld [vmem:[%s4758_s3] sm:$0xff] }
  0x70   : > { %1570 = vmatpush.bf16.msra.mxu0 %v1562_v46  ;;  %3199 = vmatpush.bf16.msra.mxu3 %v1562_v46  ;;  %v310_v33 = vsel %vm3657_vm9, 0, %v309_v12  ;;  %v1209_v9 = vrot.slane %v1208_v45, 4  ;;  %341 = vst [vmem:[#allocation2 + $0x64] sm:$0x8] %v340_v48 }
  0x71   : > { %v912_v55 = vsel %vm3686_vm13, %v904_v61, %v3360_v17  ;;  %v508_v17 = vmax.f32 %v476_v52, 0.0  ;;  %311 = vst [vmem:[#allocation2 + $0x14] sm:$0x8] %v310_v33  ;;  %v1134_v61 = vrot.slane %v818_v23, 4  ;;  %v2893_v33 = vld [vmem:[%s4758_s3 + $0x14] sm:$0xf] }
  0x72   : > { %v1211_v50 = vsel %vm3378_vm2, %v1209_v9, %v3639_v19 }
  0x73   : > { %645 = vrot.lane.b32.xlu1 %v3515_v11, %s3228_s28  ;;  %611 = vrot.lane.b32.xlu0 %v3529_v2, %s3228_s28  ;;  %v304_v11 = vsel %vm3657_vm9, 0, %v303_v8  ;;  %v307_v2 = vsel %vm3657_vm9, 0, %v306_v1  ;;  %v3708_v8 = vsel %vm3686_vm13, %v728_v20, %v3365_v27  ;;  %v1135_v27 = vrot.slane %v821_v63, 5 }
  0x74   : > { %305 = vst [vmem:[#allocation2 + $0x4] sm:$0x8] %v304_v11  ;;  %647 = vrot.lane.b32.xlu2 %v3517_v47, %s3228_s28  ;;  %v3696_v47 = vsel %vm3686_vm13, %v744_v58, %v3356_v7  ;;  %1571 = vmatpush.bf16.msra.mxu0 %v3085_v59  ;;  %v1130_v7 = vsel %vm3378_vm2, %v1128_v28, %v3650_v26  ;;  %v3716_v58 = vld [vmem:[%s3277_s23 + $0x40] sm:$0xff]   ;;  %v4783_v26 = vshll.u32 %v3584_v37, 16  ;;  %v312_v28 = vld [vmem:[#allocation2 + $0x1c] sm:$0x8] }
  0x75   : > { %308 = vst [vmem:[#allocation2 + $0xc] sm:$0x8] %v307_v2  ;;  %3200 = vmatpush.bf16.msra.mxu3 %v3085_v59  ;;  %v3154_v11 = vunpack.c.l.bf16 %v3716_v58  ;;  %v1136_v12 = vor.u32 %v1135_v27, %v1134_v61  ;;  %v313_v59 = vsel %vm3657_vm9, 0, %v312_v28  ;;  %v760_v61 = vrot.slane %v3335_v54, 4 }
  0x76   : > { %v598_v40 = vpop.permute.xlu2 %597  ;;  %v3730_v45 = vrot.slane %v4783_v26, 5  ;;  %314 = vst [vmem:[#allocation2 + $0x1c] sm:$0x8] %v313_v59 }
  0x77   : > { %691 = vst.msk [vmem:[#allocation2 + $0x18] sm:$0xf] %vm686_vm12, %v598_v40  ;;  %v4784_v40 = vshrl.u32 %v3584_v37, 16  ;;  %v441_v63 = vmul.f32 %v3282_v0, %v3154_v11  ;;  %v282_v11 = vld [vmem:[#allocation2 + $0x60] sm:$0x1] }
  0x79   : > { %v1140_v23 = vrot.slane %v4784_v40, 4  ;;  %v477_v48 = vadd.f32 %v3290_v5, %v441_v63  ;;  %v3764_v40 = vld [vmem:[%s3277_s23 + $0x48] sm:$0xff]  }
  0x7b   : > { %1282 = vrot.lane.b32.xlu1 %v1214_v51, %s3229_s29  ;;  %1246 = vrot.lane.b32.xlu0 %v1133_v10, %s3229_s29  ;;  %v3069_v1 = vld [vmem:[#allocation2] sm:$0xff]  ;;  %v3734_v51 = vpack.c.bf16 %v508_v17, %v508_v17  ;;  %v1141_v17 = vor.u32 %v1140_v23, %v3730_v45  ;;  %v509_v9 = vmax.f32 %v477_v48, 0.0  ;;  %v283_v23 = vsel %vm3591_vm5, 0, %v282_v11 }
  0x7c   : > { %1244 = vrot.lane.b32.xlu2 %v1130_v7, %s3229_s29  ;;  %2875 = vmatmul.msk.bf16.vlgmr.msra.gmra.mxu0 %vm1511_vm1, %v3069_v1  ;;  %v1137_v1 = vrot.slane %v1136_v12, 4  ;;  %284 = vst [vmem:[#allocation2 + $0x60] sm:$0x1] %v283_v23  ;;  %v3781_v12 = vsel %vm3686_vm13, %v760_v61, %v3362_v18 }
  0x7d   : > { %v842_v7 = vshrl.u32 %v3734_v51, 16  ;;  %v845_v19 = vshll.u32 %v3734_v51, 16  ;;  %v3761_v26 = vpack.c.bf16 %v509_v9, %v509_v9  ;;  %v1142_v63 = vrot.slane %v1141_v17, 4  ;;  %v3102_v17 = vld [vmem:[%s4758_s3 + $0xc] sm:$0xff] }
  0x7e   : > { %v1021_v20 = vld [vmem:[#allocation2 + $0x18] sm:$0xf]  ;;  %v636_v52 = vpop.permute.xlu2 %635 }
  0x7f   : > { %v1022_v10 = vsel %vm3724_vm4, %v3352_v62, %v1021_v20  ;;  %710 = vst.msk [vmem:[#allocation2 + $0x64] sm:$0xf] %vm686_vm12, %v636_v52  ;;  %v1807_v62 = vunpack.c.l.b16 %v2893_v33  ;;  %v3155_v20 = vunpack.c.h.bf16 %v3716_v58  ;;  %v3158_v52 = vunpack.c.l.bf16 %v3764_v40 }
  0x80   : > { %1023 = vst [vmem:[#allocation2 + $0x18] sm:$0xf] %v1022_v10  ;;  %v3773_v28 = vrot.slane %v845_v19, 5  ;;  %v850_v58 = vshrl.u32 %v3761_v26, 16  ;;  %v853_v18 = vshll.u32 %v3761_v26, 16 }
  0x81   : > { %1060 = vst.msk [vmem:[#allocation2 + $0x64] sm:$0xf] %vm1009_vm14, %v912_v55  ;;  %v1809_v27 = vpack.c.b16 %v1807_v62, %v1807_v62  ;;  %v844_v55 = vrot.slane %v842_v7, 7  ;;  %v443_v59 = vmul.f32 %v3282_v0, %v3158_v52 }
  0x82   : > { %v3793_v62 = vrot.slane %v850_v58, 7 }
  0x83   : > { %613 = vrot.lane.b32.xlu1 %v3582_v32, %s3228_s28  ;;  %1280 = vrot.lane.b32.xlu0 %v1211_v50, %s3229_s29  ;;  %v1860_v54 = vsel %vm1560_vm10, %v1809_v27, 0  ;;  %v3150_v32 = vunpack.c.l.bf16 %v3627_v16  ;;  %v3771_v10 = vor.u32 %v845_v19, %v844_v55  ;;  %v1149_v50 = vrot.slane %v842_v7, 4  ;;  %v2980_v16 = vld [vmem:[%s4758_s3 + $0x20] sm:$0xf] }
  0x84   : > { %615 = vrot.lane.b32.xlu2 %v3584_v37, %s3228_s28  ;;  %1868 = vmatpush.bf16.msra.mxu1 %v1860_v54  ;;  %v1139_v37 = vsel %vm3378_vm2, %v1137_v1, %v3730_v45  ;;  %v2169_v7 = vunpack.c.l.b16 %v2980_v16  ;;  %v442_v19 = vmul.f32 %v3282_v0, %v3155_v20  ;;  %v479_v9 = vadd.f32 %v3290_v5, %v443_v59  ;;  %v3198_v20 = vld [vmem:[%s3277_s23 + $0x78] sm:$0xff]  }
  0x85   : > { %v439_v48 = vmul.f32 %v3282_v0, %v3150_v32  ;;  %3201 = vmatpush.bf16.msrb.mxu3 %v1860_v54  ;;  %v3803_v45 = vor.u32 %v853_v18, %v3793_v62  ;;  %v1150_v1 = vor.u32 %v1149_v50, %v3773_v28  ;;  %v3183_v59 = vunpack.c.h.bf16 %v3198_v20 }
  0x86   : > { %v3791_v33 = vpop.permute.xlu2 %1226  ;;  %v2171_v27 = vpack.c.b16 %v2169_v7, %v2169_v7  ;;  %v511_v55 = vmax.f32 %v479_v9, 0.0  ;;  %v478_v32 = vadd.f32 %v3290_v5, %v442_v19  ;;  %v3182_v50 = vunpack.c.l.bf16 %v3198_v20  ;;  %v258_v20 = vld [vmem:[#allocation2 + $0x20] sm:$0x1] }
  0x87   : > { %v475_v61 = vadd.f32 %v3290_v5, %v439_v48  ;;  %4785 = vst [vmem:[#allocation6_spill] sm:$0xff] %v3803_v45  ;;  %v1151_v48 = vrot.slane %v1150_v1, 4 }
  0x88   : > { %1869 = vmatpush.bf16.msra.mxu1 %v3102_v17  ;;  %v3809_v23 = vsel %vm1560_vm10, %v2171_v27, 0  ;;  %v3814_v16 = vpack.c.bf16 %v511_v55, %v511_v55  ;;  %v455_v27 = vmul.f32 %v3282_v0, %v3182_v50  ;;  %v510_v55 = vmax.f32 %v478_v32, 0.0 }
  0x89   : > { %v507_v11 = vmax.f32 %v475_v61, 0.0  ;;  %3202 = vmatpush.bf16.msrb.mxu3 %v3102_v17  ;;  %2230 = vmatpush.bf16.msra.mxu2 %v3809_v23  ;;  %v3823_v17 = vld [vmem:[%s4758_s3 + $0x18] sm:$0xff]  ;;  %v456_v61 = vmul.f32 %v3282_v0, %v3183_v59  ;;  %v259_v59 = vsel %vm3591_vm5, 0, %v258_v20  ;;  %v1152_v32 = vrot.slane %v850_v58, 4 }
  0x8a   : > { %260 = vst [vmem:[#allocation2 + $0x20] sm:$0x1] %v259_v59 }
  0x8b   : > { %1250 = vrot.lane.b32.xlu0 %v1142_v63, %s3229_s29  ;;  %1248 = vrot.lane.b32.xlu1 %v1139_v37, %s3229_s29  ;;  %v539_v63 = vpack.c.bf16 %v507_v11, %v507_v11  ;;  %v4765_v37 = vshrl.u32 %v3814_v16, 16  ;;  %v4766_v11 = vshll.u32 %v3814_v16, 16 }
  0x8d   : > { %v594_v54 = vpop.permute.xlu1 %593  ;;  %v590_v52 = vpop.permute.xlu0 %589  ;;  %617 = vrot.lane.b32.xlu2 %v539_v63, %s3228_s28  ;;  %v834_v19 = vshrl.u32 %v539_v63, 16  ;;  %v837_v9 = vshll.u32 %v539_v63, 16  ;;  %v3829_v1 = vrot.slane %v4765_v37, 7  ;;  %2231 = vmatpush.bf16.msra.mxu2 %v3823_v17  ;;  %v491_v63 = vadd.f32 %v3290_v5, %v455_v27 }
  0x8e   : > { %689 = vst.msk [vmem:[#allocation2 + $0x10] sm:$0xf] %vm686_vm12, %v594_v54  ;;  %v1225_v7 = vpop.permute.xlu2 %1224 }
  0x8f   : > { %687 = vst.msk [vmem:[#allocation2 + $0x8] sm:$0xf] %vm686_vm12, %v590_v52  ;;  %v3833_v54 = vrot.slane %v834_v19, 7  ;;  %v492_v52 = vadd.f32 %v3290_v5, %v456_v61  ;;  %v3845_v0 = vor.u32 %v4766_v11, %v3829_v1  ;;  %v1143_v50 = vrot.slane %v834_v19, 4 }
  0x90   : > { %v1144_v37 = vrot.slane %v837_v9, 5  ;;  %v3159_v61 = vunpack.c.h.bf16 %v3764_v40  ;;  %v1153_v5 = vrot.slane %v853_v18, 5  ;;  %v523_v20 = vmax.f32 %v491_v63, 0.0 }
  0x91   : > { %v3849_v27 = vor.u32 %v837_v9, %v3833_v54  ;;  %v3855_v19 = vpack.c.bf16 %v510_v55, %v510_v55 }
  0x92   : > { %v1145_v6 = vor.u32 %v1144_v37, %v1143_v50  ;;  %v3857_v40 = vpack.c.bf16 %v523_v20, %v523_v20  ;;  %v3865_v37 = vld [vmem:[%s4756_s1] ss:$0 sm:$0xff]  ;;  %v1154_v55 = vor.u32 %v1153_v5, %v1152_v32  ;;  %v776_v32 = vrot.slane %v3407_v15, 4  ;;  %v3193_v5 = vld [vmem:[%s3277_s23 + $0x50] sm:$0xff]  }
  0x93   : > { %619 = vrot.lane.b32.xlu0 %v3734_v51, %s3228_s28  ;;  %1254 = vrot.lane.b32.xlu1 %v1151_v48, %s3229_s29  ;;  %v524_v48 = vmax.f32 %v492_v52, 0.0 }
  0x94   : > { %v1146_v9 = vrot.slane %v1145_v6, 4  ;;  %v4768_v63 = vshrl.u32 %v3857_v40, 16  ;;  %v4767_v59 = vshll.u32 %v3857_v40, 16 }
  0x95   : > { %v1017_v45 = vld [vmem:[#allocation2 + $0x10] sm:$0xf]  ;;  %v596_v51 = vpop.permute.xlu1 %595  ;;  %v592_v35 = vpop.permute.xlu0 %591 }
  0x96   : > { %v1018_v11 = vsel %vm3724_vm4, %v3339_v56, %v1017_v45  ;;  %v1012_v58 = vld [vmem:[#allocation2 + $0x8] sm:$0xf]  ;;  %690 = vst.msk [vmem:[#allocation2 + $0x14] sm:$0xf] %vm686_vm12, %v596_v51  ;;  %v444_v56 = vmul.f32 %v3865_v37, %v3159_v61  ;;  %v861_v45 = vshll.u32 %v3855_v19, 16  ;;  %v1233_v52 = vpop.permute.xlu2 %1232  ;;  %v3880_v6 = vrot.slane %v4768_v63, 7 }
  0x97   : > { %1019 = vst [vmem:[#allocation2 + $0x10] sm:$0xf] %v1018_v11  ;;  %v1013_v18 = vsel %vm3724_vm4, %v3342_v57, %v1012_v58  ;;  %v3872_v11 = vpack.c.bf16 %v524_v48, %v524_v48  ;;  %v1148_v57 = vsel %vm3378_vm2, %v1146_v9, %v3773_v28  ;;  %v858_v51 = vshrl.u32 %v3855_v19, 16 }
  0x98   : > { %1014 = vst [vmem:[#allocation2 + $0x8] sm:$0xf] %v1013_v18  ;;  %1252 = vrot.lane.b32.xlu2 %v1148_v57, %s3229_s29  ;;  %v1156_v28 = vrot.slane %v861_v45, 5  ;;  %v3898_v15 = vor.u32 %v4767_v59, %v3880_v6  ;;  %v3162_v48 = vunpack.c.l.bf16 %v3193_v5  ;;  %v784_v58 = vsel %vm3686_vm13, %v776_v32, %v3482_v36 }
  0x99   : > { %1020 = vst.msk [vmem:[#allocation2 + $0x14] sm:$0xf] %vm1009_vm14, %v3696_v47  ;;  %v920_v47 = vrot.slane %v3428_v53, 4  ;;  %v315_v53 = vld [vmem:[#allocation2 + $0x24] sm:$0x8]  ;;  %v973_v9 = vshll.u32 %v3872_v11, 16 }
  0x9a   : > { %688 = vst.msk [vmem:[#allocation2 + $0xc] sm:$0xf] %vm686_vm12, %v592_v35  ;;  %v1155_v35 = vrot.slane %v1154_v55, 4  ;;  %v316_v20 = vsel %vm3657_vm9, 0, %v315_v53  ;;  %v1158_v32 = vrot.slane %v858_v51, 4 }
  0x9b   : > { %1016 = vst.msk [vmem:[#allocation2 + $0xc] sm:$0xf] %vm1009_vm14, %v3708_v8  ;;  %623 = vrot.lane.b32.xlu1 %v3855_v19, %s3228_s28  ;;  %621 = vrot.lane.b32.xlu0 %v3761_v26, %s3228_s28  ;;  %v3903_v8 = vld [vmem:[%s4757_s2] ss:$0 sm:$0xff]  ;;  %v3931_v36 = vsel %vm3686_vm13, %v920_v47, %v3438_v49  ;;  %v285_v49 = vld [vmem:[#allocation2 + $0x68] sm:$0x1] }
  0x9c   : > { %1321 = vst.msk [vmem:[#allocation2 + $0x8] sm:$0xf] %vm1320_vm6, %v1225_v7  ;;  %v480_v50 = vadd.f32 %v3903_v8, %v444_v56  ;;  %v970_v7 = vshrl.u32 %v3872_v11, 16  ;;  %v342_v56 = vld [vmem:[#allocation2 + $0x6c] sm:$0x8] }
  0x9d   : > { %v634_v26 = vpop.permute.xlu1 %633  ;;  %v600_v61 = vpop.permute.xlu0 %599  ;;  %1331 = vst.msk [vmem:[#allocation2 + $0x18] sm:$0xf] %vm1320_vm6, %v1233_v52  ;;  %v1157_v52 = vsel %vm3378_vm2, %v1155_v35, %v1156_v28  ;;  %v1159_v35 = vor.u32 %v1158_v32, %v1156_v28  ;;  %v4788_v28 = vshrl.u32 %v3814_v16, 16 }
  0x9e   : > { %709 = vst.msk [vmem:[#allocation2 + $0x60] sm:$0xf] %vm686_vm12, %v634_v26  ;;  %v972_v18 = vrot.slane %v970_v7, 7  ;;  %v604_v57 = vpop.permute.xlu2 %603  ;;  %v512_v53 = vmax.f32 %v480_v50, 0.0 }
  0x9f   : > { %692 = vst.msk [vmem:[#allocation2 + $0x1c] sm:$0xf] %vm686_vm12, %v600_v61  ;;  %v445_v61 = vmul.f32 %v3865_v37, %v3162_v48  ;;  %v1161_v48 = vrot.slane %v4788_v28, 4 }
  0xa0   : > { %1024 = vst.msk [vmem:[#allocation2 + $0x1c] sm:$0xf] %vm1009_vm14, %v3781_v12  ;;  %v3933_v26 = vor.u32 %v973_v9, %v972_v18  ;;  %v343_v12 = vsel %vm3657_vm9, 0, %v342_v56  ;;  %v1328_v63 = vld [vmem:[#allocation2 + $0x14] sm:$0xf]  ;;  %v4789_v18 = vshll.u32 %v3814_v16, 16 }
  0xa1   : > { %317 = vst [vmem:[#allocation2 + $0x24] sm:$0x8] %v316_v20  ;;  %v481_v47 = vadd.f32 %v3903_v8, %v445_v61  ;;  %v3947_v20 = vpack.c.bf16 %v512_v53, %v512_v53  ;;  %v286_v61 = vsel %vm3591_vm5, 0, %v285_v49  ;;  %v1368_v49 = vld [vmem:[#allocation2 + $0x64] sm:$0xf] }
  0xa2   : > { %v1324_v59 = vld [vmem:[#allocation2 + $0xc] sm:$0xf]  ;;  %694 = vst.msk [vmem:[#allocation2 + $0x24] sm:$0xf] %vm686_vm12, %v604_v57 }
  0xa3   : > { %v1325_v50 = vsel %vm3920_vm7, %v3791_v33, %v1324_v59  ;;  %625 = vrot.lane.b32.xlu1 %v3814_v16, %s3228_s28  ;;  %1256 = vrot.lane.b32.xlu0 %v1157_v52, %s3229_s29  ;;  %1028 = vst.msk [vmem:[#allocation2 + $0x24] sm:$0xf] %vm1009_vm14, %v784_v58  ;;  %v1162_v33 = vrot.slane %v4789_v18, 5  ;;  %v1160_v59 = vrot.slane %v1159_v35, 4  ;;  %v513_v52 = vmax.f32 %v481_v47, 0.0 }
  0xa4   : > { %1326 = vst [vmem:[#allocation2 + $0xc] sm:$0xf] %v1325_v50  ;;  %v3163_v16 = vunpack.c.h.bf16 %v3193_v5  ;;  %v3962_v35 = vrot.slane %v973_v9, 5  ;;  %v792_v18 = vrot.slane %v3462_v14, 4 }
  0xa5   : > { %v1057_v56 = vld [vmem:[#allocation2 + $0x60] sm:$0xf]  ;;  %v1229_v57 = vpop.permute.xlu1 %1228  ;;  %v1231_v32 = vpop.permute.xlu0 %1230  ;;  %344 = vst [vmem:[#allocation2 + $0x6c] sm:$0x8] %v343_v12  ;;  %1258 = vrot.lane.b32.xlu2 %v1160_v59, %s3229_s29  ;;  %v1221_v12 = vrot.slane %v970_v7, 4  ;;  %v3964_v50 = vpack.c.bf16 %v513_v52, %v513_v52  ;;  %v1163_v47 = vor.u32 %v1162_v33, %v1161_v48  ;;  %v860_v59 = vrot.slane %v858_v51, 7 }
  0xa6   : > { %v1058_v58 = vsel %vm3724_vm4, %v3347_v60, %v1057_v56  ;;  %1327 = vst.msk [vmem:[#allocation2 + $0x10] sm:$0xf] %vm1320_vm6, %v1229_v57  ;;  %v1329_v53 = vsel %vm3920_vm7, %v1231_v32, %v1328_v63  ;;  %v877_v60 = vshll.u32 %v3947_v20, 16  ;;  %v1239_v28 = vpop.permute.xlu2 %1238  ;;  %v446_v5 = vmul.f32 %v3865_v37, %v3163_v16 }
  0xa7   : > { %1059 = vst [vmem:[#allocation2 + $0x60] sm:$0xf] %v1058_v58  ;;  %v882_v63 = vshrl.u32 %v3964_v50, 16  ;;  %v1332_v7 = vld [vmem:[#allocation2 + $0x1c] sm:$0xf]  ;;  %v1222_v48 = vor.u32 %v1221_v12, %v3962_v35  ;;  %v885_v51 = vshll.u32 %v3964_v50, 16  ;;  %v3994_v16 = vsel %vm3686_vm13, %v792_v18, %v3465_v21 }
  0xa8   : > { %1330 = vst [vmem:[#allocation2 + $0x14] sm:$0xf] %v1329_v53  ;;  %v1164_v32 = vrot.slane %v1163_v47, 4  ;;  %v1165_v37 = vrot.slane %v877_v60, 5  ;;  %v482_v12 = vadd.f32 %v3903_v8, %v446_v5 }
  0xa9   : > { %287 = vst [vmem:[#allocation2 + $0x68] sm:$0x1] %v286_v61  ;;  %v3977_v33 = vrot.slane %v882_v63, 7  ;;  %v318_v61 = vld [vmem:[#allocation2 + $0x2c] sm:$0x8] }
  0xaa   : > { %v1336_v56 = vld [vmem:[#allocation2 + $0x24] sm:$0xf]  ;;  %v319_v47 = vsel %vm3657_vm9, 0, %v318_v61  ;;  %v1166_v21 = vsel %vm3378_vm2, %v1164_v32, %v1165_v37  ;;  %v514_v5 = vmax.f32 %v482_v12, 0.0  ;;  %v4790_v12 = vshrl.u32 %v3857_v40, 16 }
  0xab   : > { %v3070_v9 = vld [vmem:[#allocation2 + $0x8] sm:$0xff]  ;;  %651 = vrot.lane.b32.xlu1 %v3872_v11, %s3228_s28  ;;  %649 = vrot.lane.b32.xlu0 %v3857_v40, %s3228_s28  ;;  %v1337_v14 = vsel %vm3920_vm7, %v1239_v28, %v1336_v56  ;;  %v3984_v11 = vor.u32 %v861_v45, %v860_v59  ;;  %v3989_v53 = vor.u32 %v885_v51, %v3977_v33  ;;  %v1223_v56 = vrot.slane %v1222_v48, 4 }
  0xac   : > { %v3086_v57 = vld [vmem:[#allocation2 + $0x8] sm:$0xff]  ;;  %1338 = vst [vmem:[#allocation2 + $0x24] sm:$0xf] %v1337_v14  ;;  %2876 = vmatmul.msk.bf16.gmra.mxu0 %vm1511_vm1, %v3070_v9  ;;  %v874_v59 = vshrl.u32 %v3947_v20, 16  ;;  %v936_v14 = vrot.slane %v3487_v44, 4  ;;  %v546_v61 = vpack.c.bf16 %v514_v5, %v514_v5 }
  0xad   : > { %2962 = vmatmul.msk.bf16.vlgmr.msra.gmra.mxu1 %vm1511_vm1, %v3086_v57  ;;  %v1271_v52 = vpop.permute.xlu1 %1270  ;;  %v1235_v58 = vpop.permute.xlu0 %1234  ;;  %627 = vrot.lane.b32.xlu2 %v3947_v20, %s3228_s28  ;;  %320 = vst [vmem:[#allocation2 + $0x2c] sm:$0x8] %v319_v47  ;;  %v1170_v57 = vrot.slane %v882_v63, 4  ;;  %v1215_v47 = vrot.slane %v4790_v12, 4  ;;  %v345_v44 = vld [vmem:[#allocation2 + $0x74] sm:$0x8] }
  0xae   : > { %v1369_v19 = vsel %vm3920_vm7, %v1271_v52, %v1368_v49  ;;  %v1333_v45 = vsel %vm3920_vm7, %v1235_v58, %v1332_v7  ;;  %v4007_v18 = vpop.permute.xlu2 %1272  ;;  %v261_v49 = vld [vmem:[#allocation2 + $0x28] sm:$0x1]  ;;  %v1167_v9 = vrot.slane %v874_v59, 4  ;;  %v1171_v7 = vrot.slane %v885_v51, 5  ;;  %v288_v58 = vld [vmem:[#allocation2 + $0x70] sm:$0x1] }
  0xaf   : > { %1370 = vst [vmem:[#allocation2 + $0x64] sm:$0xf] %v1369_v19  ;;  %v3103_v28 = vld [vmem:[#allocation2 + $0x10] sm:$0xff]  ;;  %v262_v8 = vsel %vm3591_vm5, 0, %v261_v49  ;;  %v289_v19 = vsel %vm3591_vm5, 0, %v288_v58  ;;  %v893_v63 = vshll.u32 %v546_v61, 16 }
  0xb0   : > { %1334 = vst [vmem:[#allocation2 + $0x1c] sm:$0xf] %v1333_v45  ;;  %3049 = vmatmul.msk.bf16.vlgmr.msra.gmra.mxu2 %vm1511_vm1, %v3103_v28  ;;  %v1168_v48 = vor.u32 %v1167_v9, %v1165_v37  ;;  %v1172_v51 = vor.u32 %v1171_v7, %v1170_v57  ;;  %v4791_v28 = vshll.u32 %v3857_v40, 16  ;;  %v346_v49 = vsel %vm3657_vm9, 0, %v345_v44  ;;  %v3071_v9 = vld [vmem:[#allocation2 + $0x10] sm:$0xff] }
  0xb1   : > { %263 = vst [vmem:[#allocation2 + $0x28] sm:$0x1] %v262_v8  ;;  %v4031_v8 = vsel %vm3686_vm13, %v936_v14, %v3575_v38  ;;  %v3087_v57 = vld [vmem:[#allocation2 + $0x10] sm:$0xff]  ;;  %v1174_v7 = vrot.slane %v893_v63, 5  ;;  %v890_v12 = vshrl.u32 %v546_v61, 16 }
  0xb2   : > { %v1169_v45 = vrot.slane %v1168_v48, 4  ;;  %290 = vst [vmem:[#allocation2 + $0x70] sm:$0x1] %v289_v19 }
  0xb3   : > { %1260 = vrot.lane.b32.xlu1 %v1166_v21, %s3229_s29  ;;  %1286 = vrot.lane.b32.xlu0 %v1223_v56, %s3229_s29  ;;  %v1216_v56 = vrot.slane %v4791_v28, 5  ;;  %v876_v21 = vrot.slane %v874_v59, 7  ;;  %347 = vst [vmem:[#allocation2 + $0x74] sm:$0x8] %v346_v49  ;;  %v1173_v59 = vrot.slane %v1172_v51, 4  ;;  %v892_v51 = vrot.slane %v890_v12, 7 }
  0xb4   : > { %v321_v49 = vld [vmem:[#allocation2 + $0x34] sm:$0x8] }
  0xb5   : > { %v602_v32 = vpop.permute.xlu1 %601  ;;  %v1269_v52 = vpop.permute.xlu0 %1268  ;;  %1262 = vrot.lane.b32.xlu2 %v1169_v45, %s3229_s29  ;;  %v1217_v5 = vor.u32 %v1216_v56, %v1215_v47  ;;  %v4038_v40 = vor.u32 %v877_v60, %v876_v21  ;;  %v1175_v58 = vsel %vm3378_vm2, %v1173_v59, %v1174_v7  ;;  %v292_v47 = vsel %vm3591_vm5, 0, %v291_v41 }
  0xb6   : > { %693 = vst.msk [vmem:[#allocation2 + $0x20] sm:$0xf] %vm686_vm12, %v602_v32  ;;  %v642_v37 = vpop.permute.xlu2 %641  ;;  %v952_v59 = vrot.slane %v3533_v3, 4 }
  0xb7   : > { %1367 = vst.msk [vmem:[#allocation2 + $0x60] sm:$0xf] %vm1320_vm6, %v1269_v52  ;;  %v1218_v48 = vrot.slane %v1217_v5, 4  ;;  %v3104_v60 = vld [vmem:[#allocation2 + $0x18] sm:$0xff] }
  0xb8   : > { %713 = vst.msk [vmem:[#allocation2 + $0x70] sm:$0xf] %vm686_vm12, %v642_v37  ;;  %v1176_v37 = vrot.slane %v890_v12, 4  ;;  %v324_v12 = vld [vmem:[#allocation2 + $0x3c] sm:$0x8] }
  0xb9   : > { %v1220_v20 = vsel %vm3378_vm2, %v1218_v48, %v3962_v35  ;;  %293 = vst [vmem:[#allocation2 + $0x78] sm:$0x1] %v292_v47  ;;  %v3088_v48 = vld [vmem:[#allocation2 + $0x18] sm:$0xff] }
  0xba   : > { %v1177_v56 = vor.u32 %v1176_v37, %v1174_v7  ;;  %v3072_v7 = vld [vmem:[#allocation2 + $0x18] sm:$0xff] }
  0xbb   : > { %631 = vrot.lane.b32.xlu1 %v546_v61, %s3228_s28  ;;  %629 = vrot.lane.b32.xlu0 %v3964_v50, %s3228_s28  ;;  %v808_v61 = vrot.slane %v3604_v39, 4  ;;  %v322_v39 = vsel %vm3657_vm9, 0, %v321_v49 }
  0xbc   : > { %2877 = vmatmul.msk.bf16.gmra.mxu0 %vm1511_vm1, %v3071_v9  ;;  %v1178_v21 = vrot.slane %v1177_v56, 4  ;;  %323 = vst [vmem:[#allocation2 + $0x34] sm:$0x8] %v322_v39 }
  0xbd   : > { %v1025_v32 = vld [vmem:[#allocation2 + $0x20] sm:$0xf]  ;;  %2963 = vmatmul.msk.bf16.gmra.mxu1 %vm1511_vm1, %v3087_v57  ;;  %v640_v38 = vpop.permute.xlu1 %639  ;;  %v638_v14 = vpop.permute.xlu0 %637  ;;  %1284 = vrot.lane.b32.xlu2 %v1220_v20, %s3229_s29 }
  0xbe   : > { %v1026_v52 = vsel %vm3724_vm4, %v3422_v25, %v1025_v32  ;;  %712 = vst.msk [vmem:[#allocation2 + $0x6c] sm:$0xf] %vm686_vm12, %v640_v38  ;;  %v3081_v50 = vld [vmem:[#allocation2 + $0x60] sm:$0xff]  ;;  %v4054_v45 = vpop.permute.xlu2 %1278  ;;  %v264_v25 = vld [vmem:[#allocation2 + $0x30] sm:$0x1] }
  0xbf   : > { %1027 = vst [vmem:[#allocation2 + $0x20] sm:$0xf] %v1026_v52  ;;  %2887 = vmatmul.msk.bf16.vlgmr.msra.gmra.mxu3 %vm1511_vm1, %v3081_v50  ;;  %v1065_v19 = vld [vmem:[#allocation2 + $0x70] sm:$0xf]  ;;  %v267_v52 = vld [vmem:[#allocation2 + $0x38] sm:$0x1] }
  0xc0   : > { %1064 = vst.msk [vmem:[#allocation2 + $0x6c] sm:$0xf] %vm1009_vm14, %v3931_v36  ;;  %3050 = vmatmul.msk.bf16.gmra.mxu2 %vm1511_vm1, %v3104_v60  ;;  %v1066_v35 = vsel %vm3724_vm4, %v3494_v42, %v1065_v19  ;;  %v265_v36 = vsel %vm3591_vm5, 0, %v264_v25  ;;  %3203 = vmatpush.bf16.msra.mxu3 %v3809_v23  ;;  %v4068_v42 = vor.u32 %v893_v63, %v892_v51  ;;  %v268_v20 = vsel %vm3591_vm5, 0, %v267_v52  ;;  %v273_v52 = vld [vmem:[#allocation2 + $0x48] sm:$0x1] }
  0xc1   : > { %711 = vst.msk [vmem:[#allocation2 + $0x68] sm:$0xf] %vm686_vm12, %v638_v14  ;;  %v824_v19 = vrot.slane %v3597_v34, 4  ;;  %v325_v34 = vsel %vm3657_vm9, 0, %v324_v12  ;;  %v872_v12 = vrot.slane %v3829_v1, 4 }
  0xc2   : > { %1067 = vst [vmem:[#allocation2 + $0x70] sm:$0xf] %v1066_v35 }
  0xc3   : > { %1264 = vrot.lane.b32.xlu0 %v1175_v58, %s3229_s29  ;;  %266 = vst [vmem:[#allocation2 + $0x30] sm:$0x1] %v265_v36  ;;  %v832_v47 = vsel %vm3686_vm13, %v824_v19, %v3624_v22 }
  0xc4   : > { %3204 = vmatpush.bf16.msra.mxu3 %v3823_v17  ;;  %v4084_v17 = vsel %vm3686_vm13, %v808_v61, %v3573_v4  ;;  %v960_v4 = vsel %vm3686_vm13, %v952_v59, %v3547_v31  ;;  %269 = vst [vmem:[#allocation2 + $0x38] sm:$0x1] %v268_v20 }
  0xc5   : > { %v1237_v44 = vpop.permute.xlu1 %1236  ;;  %v1275_v28 = vpop.permute.xlu0 %1274  ;;  %1266 = vrot.lane.b32.xlu2 %v1178_v21, %s3229_s29  ;;  %326 = vst [vmem:[#allocation2 + $0x3c] sm:$0x8] %v325_v34  ;;  %s4648_s29 = scalar_lea.vmem %s4760_s5, %s2806_s20 }
  0xc6   : > { %1335 = vst.msk [vmem:[#allocation2 + $0x20] sm:$0xf] %vm1320_vm6, %v1237_v44  ;;  %v610_v57 = vpop.permute.xlu2 %609 }
  0xc7   : > { %v1372_v23 = vld [vmem:[#allocation2 + $0x6c] sm:$0xf]  ;;  %697 = vst.msk [vmem:[#allocation2 + $0x30] sm:$0xf] %vm686_vm12, %v610_v57 }
  0xc8   : > { %v1061_v5 = vld [vmem:[#allocation2 + $0x68] sm:$0xf]  ;;  %v1373_v9 = vsel %vm3920_vm7, %v1275_v28, %v1372_v23 }
  0xc9   : > { %v1062_v63 = vsel %vm3724_vm4, %v3435_v43, %v1061_v5  ;;  %1374 = vst [vmem:[#allocation2 + $0x6c] sm:$0xf] %v1373_v9  ;;  %v348_v43 = vld [vmem:[#allocation2 + $0x7c] sm:$0x8]  ;;  %v270_v9 = vld [vmem:[#allocation2 + $0x40] sm:$0x1] }
  0xca   : > { %1063 = vst [vmem:[#allocation2 + $0x68] sm:$0xf] %v1062_v63  ;;  %v349_v3 = vsel %vm3657_vm9, 0, %v348_v43 }
  0xcb   : > { %1371 = vst.msk [vmem:[#allocation2 + $0x68] sm:$0xf] %vm1320_vm6, %v4007_v18 }
  0xcc   : > { %2878 = vmatmul.msk.bf16.gmra.mxu0 %vm1511_vm1, %v3072_v7  ;;  %350 = vst [vmem:[#allocation2 + $0x7c] sm:$0x8] %v349_v3  ;;  %v856_v7 = vrot.slane %v3793_v62, 4 }
  0xcd   : > { %2964 = vmatmul.msk.bf16.gmra.mxu1 %vm1511_vm1, %v3088_v48  ;;  %v608_v32 = vpop.permute.xlu1 %607  ;;  %v606_v38 = vpop.permute.xlu0 %605  ;;  %v3105_v14 = vld [vmem:[#allocation2 + $0x20] sm:$0xff] }
  0xce   : > { %696 = vst.msk [vmem:[#allocation2 + $0x2c] sm:$0xf] %vm686_vm12, %v608_v32  ;;  %v648_v18 = vpop.permute.xlu2 %647  ;;  %v1033_v60 = vld [vmem:[#allocation2 + $0x30] sm:$0xf]  ;;  %v3073_v51 = vld [vmem:[#allocation2 + $0x20] sm:$0xff] }
  0xcf   : > { %1032 = vst.msk [vmem:[#allocation2 + $0x2c] sm:$0xf] %vm1009_vm14, %v3994_v16  ;;  %v1034_v31 = vsel %vm3724_vm4, %v3620_v13, %v1033_v60  ;;  %v3089_v37 = vld [vmem:[#allocation2 + $0x20] sm:$0xff]  ;;  %v4792_v32 = vld [vmem:[#allocation4_spill] sm:$0xff]  ;;  %v274_v60 = vsel %vm3591_vm5, 0, %v273_v52 }
  0xd0   : > { %695 = vst.msk [vmem:[#allocation2 + $0x28] sm:$0xf] %vm686_vm12, %v606_v38  ;;  %3051 = vmatmul.msk.bf16.gmra.mxu2 %vm1511_vm1, %v3105_v14 }
  0xd1   : > { %716 = vst.msk [vmem:[#allocation2 + $0x7c] sm:$0xf] %vm686_vm12, %v648_v18  ;;  %v4164_v18 = vsel %vm3686_vm13, %v856_v7, %v3984_v11 }
  0xd2   : > { %v3082_v50 = vld [vmem:[#allocation2 + $0x68] sm:$0xff]  ;;  %1072 = vst.msk [vmem:[#allocation2 + $0x7c] sm:$0xf] %vm1009_vm14, %v960_v4 }
  0xd3   : > { %2888 = vmatmul.msk.bf16.gmra.mxu3 %vm1511_vm1, %v3082_v50  ;;  %1035 = vst [vmem:[#allocation2 + $0x30] sm:$0xf] %v1034_v31  ;;  %v330_v4 = vld [vmem:[#allocation2 + $0x4c] sm:$0x8] }
  0xd4   : > { %v331_v20 = vsel %vm3657_vm9, 0, %v330_v4  ;;  %275 = vst [vmem:[#allocation2 + $0x48] sm:$0x1] %v274_v60 }
  0xd5   : > { %v1243_v16 = vpop.permute.xlu1 %1242  ;;  %v644_v58 = vpop.permute.xlu0 %643  ;;  %332 = vst [vmem:[#allocation2 + $0x4c] sm:$0x8] %v331_v20  ;;  %v4794_v20 = vld [vmem:[#allocation6_spill] sm:$0xff] }
  0xd6   : > { %v1340_v25 = vld [vmem:[#allocation2 + $0x2c] sm:$0xf]  ;;  %714 = vst.msk [vmem:[#allocation2 + $0x74] sm:$0xf] %vm686_vm12, %v644_v58  ;;  %v1245_v41 = vpop.permute.xlu2 %1244 }
  0xd7   : > { %v1029_v35 = vld [vmem:[#allocation2 + $0x28] sm:$0xf]  ;;  %v1341_v36 = vsel %vm3920_vm7, %v1243_v16, %v1340_v25  ;;  %1068 = vst.msk [vmem:[#allocation2 + $0x74] sm:$0xf] %vm1009_vm14, %v4031_v8  ;;  %v840_v8 = vrot.slane %v3833_v54, 4 }
  0xd8   : > { %v1030_v13 = vsel %vm3724_vm4, %v3477_v24, %v1029_v35  ;;  %1342 = vst [vmem:[#allocation2 + $0x2c] sm:$0xf] %v1341_v36  ;;  %v327_v54 = vld [vmem:[#allocation2 + $0x44] sm:$0x8] }
  0xd9   : > { %1031 = vst [vmem:[#allocation2 + $0x28] sm:$0xf] %v1030_v13  ;;  %v4137_v61 = vsel %vm3686_vm13, %v840_v8, %v3771_v10  ;;  %v328_v23 = vsel %vm3657_vm9, 0, %v327_v54  ;;  %v271_v10 = vsel %vm3591_vm5, 0, %v270_v9  ;;  %v1380_v59 = vld [vmem:[#allocation2 + $0x7c] sm:$0xf] }
  0xda   : > { %1343 = vst.msk [vmem:[#allocation2 + $0x30] sm:$0xf] %vm1320_vm6, %v1245_v41  ;;  %v968_v13 = vrot.slane %v3880_v6, 4 }
  0xdb   : > { %329 = vst [vmem:[#allocation2 + $0x44] sm:$0x8] %v328_v23 }
  0xdc   : > { %2879 = vmatmul.msk.bf16.gmra.mxu0 %vm1511_vm1, %v3073_v51  ;;  %272 = vst [vmem:[#allocation2 + $0x40] sm:$0x1] %v271_v10  ;;  %v276_v51 = vld [vmem:[#allocation2 + $0x50] sm:$0x1]  ;;  %v4196_v54 = vsel %vm3686_vm13, %v968_v13, %v3933_v26 }
  0xdd   : > { %2965 = vmatmul.msk.bf16.gmra.mxu1 %vm1511_vm1, %v3089_v37  ;;  %v1277_v24 = vpop.permute.xlu1 %1276  ;;  %v1241_v44 = vpop.permute.xlu0 %1240  ;;  %v4793_v37 = vld [vmem:[#allocation5_spill] sm:$0xff]  ;;  %v277_v6 = vsel %vm3591_vm5, 0, %v276_v51 }
  0xde   : > { %v1376_v28 = vld [vmem:[#allocation2 + $0x74] sm:$0xf]  ;;  %1375 = vst.msk [vmem:[#allocation2 + $0x70] sm:$0xf] %vm1320_vm6, %v1277_v24  ;;  %v616_v22 = vpop.permute.xlu2 %615 }
  0xdf   : > { %v1377_v56 = vsel %vm3920_vm7, %v4054_v45, %v1376_v28  ;;  %1339 = vst.msk [vmem:[#allocation2 + $0x28] sm:$0xf] %vm1320_vm6, %v1241_v44  ;;  %v333_v28 = vld [vmem:[#allocation2 + $0x54] sm:$0x8] }
  0xe0   : > { %1378 = vst [vmem:[#allocation2 + $0x74] sm:$0xf] %v1377_v56  ;;  %v880_v56 = vsel %vm3686_vm13, %v872_v12, %v4038_v40  ;;  %v334_v23 = vsel %vm3657_vm9, 0, %v333_v28 }
  0xe1   : > { %700 = vst.msk [vmem:[#allocation2 + $0x3c] sm:$0xf] %vm686_vm12, %v616_v22  ;;  %v351_v22 = vld [vmem:[#allocation2 + $0x84] sm:$0x8] }
  0xe2   : > { %1040 = vst.msk [vmem:[#allocation2 + $0x3c] sm:$0xf] %vm1009_vm14, %v832_v47 }
  0xe3   : > { %278 = vst [vmem:[#allocation2 + $0x50] sm:$0x1] %v277_v6 }
  0xe4   : > { %335 = vst [vmem:[#allocation2 + $0x54] sm:$0x8] %v334_v23 }
  0xe5   : > { %v646_v21 = vpop.permute.xlu1 %645  ;;  %v612_v45 = vpop.permute.xlu0 %611 }
  0xe6   : > { %715 = vst.msk [vmem:[#allocation2 + $0x78] sm:$0xf] %vm686_vm12, %v646_v21  ;;  %v3106_v49 = vld [vmem:[#allocation2 + $0x28] sm:$0xff]  ;;  %v352_v21 = vsel %vm3657_vm9, 0, %v351_v22 }
  0xe7   : > { %698 = vst.msk [vmem:[#allocation2 + $0x34] sm:$0xf] %vm686_vm12, %v612_v45  ;;  %v3083_v5 = vld [vmem:[#allocation2 + $0x70] sm:$0xff]  ;;  %3052 = vmatmul.msk.bf16.gmra.mxu2 %vm1511_vm1, %v3106_v49  ;;  %v618_v57 = vpop.permute.xlu2 %617  ;;  %v3074_v63 = vld [vmem:[#allocation2 + $0x28] sm:$0xff]  ;;  %v294_v45 = vld [vmem:[#allocation2 + $0x80] sm:$0x1] }
  0xe8   : > { %1036 = vst.msk [vmem:[#allocation2 + $0x34] sm:$0xf] %vm1009_vm14, %v4084_v17  ;;  %2889 = vmatmul.msk.bf16.gmra.mxu3 %vm1511_vm1, %v3083_v5  ;;  %v3090_v39 = vld [vmem:[#allocation2 + $0x28] sm:$0xff]  ;;  %v295_v26 = vsel %vm3591_vm5, 0, %v294_v45  ;;  %v3099_v46 = vld [vmem:[#allocation2 + $0x70] sm:$0xff] }
  0xe9   : > { %701 = vst.msk [vmem:[#allocation2 + $0x40] sm:$0xf] %vm686_vm12, %v618_v57  ;;  %v1348_v36 = vld [vmem:[#allocation2 + $0x3c] sm:$0xf] }
  0xea   : > { %353 = vst [vmem:[#allocation2 + $0x84] sm:$0x8] %v352_v21 }
  0xeb   : > { %296 = vst [vmem:[#allocation2 + $0x80] sm:$0x1] %v295_v26 }
  0xec   : > { %2880 = vmatmul.msk.bf16.gmra.mxu0 %vm1511_vm1, %v3074_v63 }
  0xed   : > { %v1069_v48 = vld [vmem:[#allocation2 + $0x78] sm:$0xf]  ;;  %2966 = vmatmul.msk.bf16.gmra.mxu1 %vm1511_vm1, %v3090_v39  ;;  %v1283_v17 = vpop.permute.xlu1 %1282  ;;  %v1247_v43 = vpop.permute.xlu0 %1246 }
  0xee   : > { %v1070_v38 = vsel %vm3724_vm4, %v4792_v32, %v1069_v48  ;;  %v1381_v14 = vsel %vm3920_vm7, %v1283_v17, %v1380_v59  ;;  %v3098_v48 = vld [vmem:[#allocation2 + $0x68] sm:$0xff] }
  0xef   : > { %1071 = vst [vmem:[#allocation2 + $0x78] sm:$0xf] %v1070_v38  ;;  %v1344_v3 = vld [vmem:[#allocation2 + $0x34] sm:$0xf] }
  0xf0   : > { %1382 = vst [vmem:[#allocation2 + $0x7c] sm:$0xf] %v1381_v14  ;;  %v1345_v62 = vsel %vm3920_vm7, %v1247_v43, %v1344_v3  ;;  %v1041_v50 = vld [vmem:[#allocation2 + $0x40] sm:$0xf]  ;;  %v888_v3 = vrot.slane %v3977_v33, 4 }
  0xf1   : > { %1346 = vst [vmem:[#allocation2 + $0x34] sm:$0xf] %v1345_v62  ;;  %v1042_v31 = vsel %vm3724_vm4, %v3849_v27, %v1041_v50  ;;  %v336_v50 = vld [vmem:[#allocation2 + $0x5c] sm:$0x8]  ;;  %v279_v33 = vld [vmem:[#allocation2 + $0x58] sm:$0x1] }
  0xf2   : > { %1043 = vst [vmem:[#allocation2 + $0x40] sm:$0xf] %v1042_v31  ;;  %v1253_v16 = vpop.permute.xlu2 %1252 }
  0xf3   : > { %1351 = vst.msk [vmem:[#allocation2 + $0x40] sm:$0xf] %vm1320_vm6, %v1253_v16 }
  0xf5   : > { %v614_v58 = vpop.permute.xlu1 %613  ;;  %v1281_v11 = vpop.permute.xlu0 %1280 }
  0xf6   : > { %699 = vst.msk [vmem:[#allocation2 + $0x38] sm:$0xf] %vm686_vm12, %v614_v58  ;;  %v337_v58 = vsel %vm3657_vm9, 0, %v336_v50 }
  0xf7   : > { %1379 = vst.msk [vmem:[#allocation2 + $0x78] sm:$0xf] %vm1320_vm6, %v1281_v11  ;;  %v896_v11 = vsel %vm3686_vm13, %v888_v3, %v4068_v42 }
  0xf8   : > { %v3107_v19 = vld [vmem:[#allocation2 + $0x30] sm:$0xff]  ;;  %338 = vst [vmem:[#allocation2 + $0x5c] sm:$0x8] %v337_v58 }
  0xf9   : > { %v3075_v25 = vld [vmem:[#allocation2 + $0x30] sm:$0xff]  ;;  %3053 = vmatmul.msk.bf16.gmra.mxu2 %vm1511_vm1, %v3107_v19  ;;  %v1573_v27 = vpop.f32.mrf.mxu0  ;;  %v280_v19 = vsel %vm3591_vm5, 0, %v279_v33 }
  0xfa   : > { %v3091_v35 = vld [vmem:[#allocation2 + $0x30] sm:$0xff]  ;;  %1654 = vst.msk [vmem:[#allocation3] sm:$0xff] %vm1653_vm0, %v1573_v27 }
  0xfb   : > { %281 = vst [vmem:[#allocation2 + $0x58] sm:$0x1] %v280_v19 }
  0xfc   : > { %2881 = vmatmul.msk.bf16.gmra.mxu0 %vm1511_vm1, %v3075_v25 }
  0xfd   : > { %v1037_v41 = vld [vmem:[#allocation2 + $0x38] sm:$0xf]  ;;  %2967 = vmatmul.msk.bf16.gmra.mxu1 %vm1511_vm1, %v3091_v35  ;;  %v1251_v34 = vpop.permute.xlu0 %1250  ;;  %v1249_v47 = vpop.permute.xlu1 %1248 }
  0xfe   : > { %v1038_v8 = vsel %vm3724_vm4, %v4793_v37, %v1037_v41  ;;  %v1349_v24 = vsel %vm3920_vm7, %v1251_v34, %v1348_v36  ;;  %v3084_v1 = vld [vmem:[#allocation2 + $0x78] sm:$0xff] }
  0xff   : > { %1039 = vst [vmem:[#allocation2 + $0x38] sm:$0xf] %v1038_v8  ;;  %2890 = vmatmul.msk.bf16.gmra.mxu3 %vm1511_vm1, %v3084_v1  ;;  %v1259_v44 = vpop.permute.xlu2 %1258 }
 0x100   : > { %1350 = vst [vmem:[#allocation2 + $0x3c] sm:$0xf] %v1349_v24 }
 0x101   : > { %1347 = vst.msk [vmem:[#allocation2 + $0x38] sm:$0xf] %vm1320_vm6, %v1249_v47  ;;  %v1575_v49 = vpop.f32.mrf.mxu0  ;;  %v1951_v47 = vld [vmem:[#allocation3] sm:$0xff] }
 0x102   : > { %1655 = vst.msk [vmem:[#allocation3 + $0x8] sm:$0xff] %vm1653_vm0, %v1575_v49 }
 0x105   : > { %v620_v40 = vpop.permute.xlu0 %619  ;;  %v1255_v5 = vpop.permute.xlu1 %1254 }
 0x106   : > { %702 = vst.msk [vmem:[#allocation2 + $0x44] sm:$0xf] %vm686_vm12, %v620_v40 }
 0x107   : > { %1044 = vst.msk [vmem:[#allocation2 + $0x44] sm:$0xf] %vm1009_vm14, %v4137_v61  ;;  %v628_v10 = vpop.permute.xlu2 %627 }
 0x108   : > { %v3108_v9 = vld [vmem:[#allocation2 + $0x38] sm:$0xff]  ;;  %706 = vst.msk [vmem:[#allocation2 + $0x54] sm:$0xf] %vm686_vm12, %v628_v10 }
 0x109   : > { %v3076_v57 = vld [vmem:[#allocation2 + $0x38] sm:$0xff]  ;;  %3054 = vmatmul.msk.bf16.gmra.mxu2 %vm1511_vm1, %v3108_v9  ;;  %1052 = vst.msk [vmem:[#allocation2 + $0x54] sm:$0xf] %vm1009_vm14, %v880_v56 }
 0x10a   : > { %v3092_v63 = vld [vmem:[#allocation2 + $0x38] sm:$0xff] }
 0x10b   : > { %v3100_v56 = vld [vmem:[#allocation2 + $0x78] sm:$0xff] }
 0x10c   : > { %2882 = vmatmul.msk.bf16.gmra.mxu0 %vm1511_vm1, %v3076_v57  ;;  %v1952_v22 = vld [vmem:[#allocation3 + $0x8] sm:$0xff] }
 0x10d   : > { %2968 = vmatmul.msk.bf16.gmra.mxu1 %vm1511_vm1, %v3092_v63  ;;  %v624_v39 = vpop.permute.xlu1 %623  ;;  %v622_v59 = vpop.permute.xlu0 %621 }
 0x10e   : > { %v1352_v7 = vld [vmem:[#allocation2 + $0x44] sm:$0xf]  ;;  %704 = vst.msk [vmem:[#allocation2 + $0x4c] sm:$0xf] %vm686_vm12, %v624_v39 }
 0x10f   : > { %v1353_v61 = vsel %vm3920_vm7, %v1255_v5, %v1352_v7  ;;  %1048 = vst.msk [vmem:[#allocation2 + $0x4c] sm:$0xf] %vm1009_vm14, %v4164_v18  ;;  %2974 = vmatmul.msk.bf16.vlgmr.msrb.gmra.mxu3 %vm1511_vm1, %v3098_v48  ;;  %v1263_v43 = vpop.permute.xlu2 %1262 }
 0x110   : > { %1354 = vst [vmem:[#allocation2 + $0x44] sm:$0xf] %v1353_v61  ;;  %v1360_v17 = vld [vmem:[#allocation2 + $0x54] sm:$0xf] }
 0x111   : > { %703 = vst.msk [vmem:[#allocation2 + $0x48] sm:$0xf] %vm686_vm12, %v622_v59  ;;  %v1361_v32 = vsel %vm3920_vm7, %v1263_v43, %v1360_v17 }
 0x112   : > { %1362 = vst [vmem:[#allocation2 + $0x54] sm:$0xf] %v1361_v32 }
 0x115   : > { %v626_v38 = vpop.permute.xlu1 %625  ;;  %v1257_v14 = vpop.permute.xlu0 %1256 }
 0x116   : > { %v1356_v62 = vld [vmem:[#allocation2 + $0x4c] sm:$0xf]  ;;  %705 = vst.msk [vmem:[#allocation2 + $0x50] sm:$0xf] %vm686_vm12, %v626_v38 }
 0x117   : > { %v3109_v4 = vld [vmem:[#allocation2 + $0x40] sm:$0xff]  ;;  %v1357_v18 = vsel %vm3920_vm7, %v1259_v44, %v1356_v62  ;;  %v1285_v24 = vpop.permute.xlu2 %1284 }
 0x118   : > { %v1045_v52 = vld [vmem:[#allocation2 + $0x48] sm:$0xf]  ;;  %1358 = vst [vmem:[#allocation2 + $0x4c] sm:$0xf] %v1357_v18  ;;  %v3077_v31 = vld [vmem:[#allocation2 + $0x40] sm:$0xff] }
 0x119   : > { %v1046_v60 = vsel %vm3724_vm4, %v4794_v20, %v1045_v52  ;;  %v3093_v16 = vld [vmem:[#allocation2 + $0x40] sm:$0xff]  ;;  %3055 = vmatmul.msk.bf16.gmra.mxu2 %vm1511_vm1, %v3109_v4 }
 0x11a   : > { %1047 = vst [vmem:[#allocation2 + $0x48] sm:$0xf] %v1046_v60 }
 0x11b   : > { %1355 = vst.msk [vmem:[#allocation2 + $0x48] sm:$0xf] %vm1320_vm6, %v1257_v14 }
 0x11c   : > { %2883 = vmatmul.msk.bf16.gmra.mxu0 %vm1511_vm1, %v3077_v31 }
 0x11d   : > { %2969 = vmatmul.msk.bf16.gmra.mxu1 %vm1511_vm1, %v3093_v16  ;;  %v1049_v25 = vld [vmem:[#allocation2 + $0x50] sm:$0xf]  ;;  %v652_v35 = vpop.permute.xlu1 %651  ;;  %v650_v36 = vpop.permute.xlu0 %649 }
 0x11e   : > { %v1050_v27 = vsel %vm3724_vm4, %v3845_v0, %v1049_v25  ;;  %718 = vst.msk [vmem:[#allocation2 + $0x84] sm:$0xf] %vm686_vm12, %v652_v35 }
 0x11f   : > { %1051 = vst [vmem:[#allocation2 + $0x50] sm:$0xf] %v1050_v27  ;;  %2975 = vmatmul.msk.bf16.gmra.mxu3 %vm1511_vm1, %v3099_v46  ;;  %v1267_v40 = vpop.permute.xlu2 %1266 }
 0x120   : > { %1076 = vst.msk [vmem:[#allocation2 + $0x84] sm:$0xf] %vm1009_vm14, %v4196_v54 }
 0x121   : > { %717 = vst.msk [vmem:[#allocation2 + $0x80] sm:$0xf] %vm686_vm12, %v650_v36 }
 0x122   : > { %v3110_v13 = vld [vmem:[#allocation2 + $0x48] sm:$0xff] }
 0x123   : > { %v3078_v37 = vld [vmem:[#allocation2 + $0x48] sm:$0xff] }
 0x124   : > { %v3094_v8 = vld [vmem:[#allocation2 + $0x48] sm:$0xff] }
 0x125   : > { %v1261_v42 = vpop.permute.xlu1 %1260  ;;  %v1287_v12 = vpop.permute.xlu0 %1286 }
 0x126   : > { %1359 = vst.msk [vmem:[#allocation2 + $0x50] sm:$0xf] %vm1320_vm6, %v1261_v42 }
 0x127   : > { %v1384_v41 = vld [vmem:[#allocation2 + $0x84] sm:$0xf] }
 0x128   : > { %v1073_v34 = vld [vmem:[#allocation2 + $0x80] sm:$0xf]  ;;  %v1385_v0 = vsel %vm3920_vm7, %v1287_v12, %v1384_v41  ;;  %v3115_v41 = vld [vmem:[#allocation2 + $0x70] sm:$0xff] }
 0x129   : > { %v1074_v51 = vsel %vm3724_vm4, %v3898_v15, %v1073_v34  ;;  %1386 = vst [vmem:[#allocation2 + $0x84] sm:$0xf] %v1385_v0  ;;  %v1578_v1 = vpop.f32.mrf.mxu0  ;;  %3056 = vmatmul.msk.bf16.gmra.mxu2 %vm1511_vm1, %v3110_v13 }
 0x12a   : > { %1075 = vst [vmem:[#allocation2 + $0x80] sm:$0xf] %v1074_v51  ;;  %v1871_v6 = vpop.f32.mrf.mxu1 }
 0x12b   : > { %1656 = vst.msk [vmem:[#allocation3 + $0x10] sm:$0xff] %vm1653_vm0, %v1578_v1  ;;  %v1983_v44 = vadd.f32 %v1951_v47, %v1871_v6 }
 0x12c   : > { %1383 = vst.msk [vmem:[#allocation2 + $0x80] sm:$0xf] %vm1320_vm6, %v1285_v24  ;;  %2884 = vmatmul.msk.bf16.gmra.mxu0 %vm1511_vm1, %v3078_v37 }
 0x12d   : > { %2015 = vst.msk [vmem:[#allocation3] sm:$0xff] %vm1653_vm0, %v1983_v44  ;;  %2970 = vmatmul.msk.bf16.gmra.mxu1 %vm1511_vm1, %v3094_v8  ;;  %v632_v15 = vpop.permute.xlu1 %631  ;;  %v630_v28 = vpop.permute.xlu0 %629  ;;  %v3111_v26 = vld [vmem:[#allocation2 + $0x50] sm:$0xff] }
 0x12e   : > { %708 = vst.msk [vmem:[#allocation2 + $0x5c] sm:$0xf] %vm686_vm12, %v632_v15  ;;  %v3079_v59 = vld [vmem:[#allocation2 + $0x50] sm:$0xff] }
 0x12f   : > { %1056 = vst.msk [vmem:[#allocation2 + $0x5c] sm:$0xf] %vm1009_vm14, %v896_v11  ;;  %2976 = vmatmul.msk.bf16.gmra.mxu3 %vm1511_vm1, %v3100_v56  ;;  %v3095_v7 = vld [vmem:[#allocation2 + $0x50] sm:$0xff]  ;;  %v297_v56 = vld [vmem:[#allocation2 + $0x88] sm:$0x1] }
 0x130   : > { %707 = vst.msk [vmem:[#allocation2 + $0x58] sm:$0xf] %vm686_vm12, %v630_v28  ;;  %v3113_v28 = vld [vmem:[#allocation2 + $0x60] sm:$0xff] }
 0x131   : > { %v1580_v54 = vpop.f32.mrf.mxu0 }
 0x132   : > { %v1873_v23 = vpop.f32.mrf.mxu1  ;;  %1657 = vst.msk [vmem:[#allocation3 + $0x18] sm:$0xff] %vm1653_vm0, %v1580_v54  ;;  %v1953_v17 = vld [vmem:[#allocation3 + $0x10] sm:$0xff]  ;;  %v298_v54 = vsel %vm3591_vm5, 0, %v297_v56 }
 0x133   : > { %v1984_v21 = vadd.f32 %v1952_v22, %v1873_v23  ;;  %v2233_v45 = vpop.f32.mrf.mxu2  ;;  %v3101_v38 = vld [vmem:[#allocation2 + $0x80] sm:$0xff]  ;;  %v354_v22 = vld [vmem:[#allocation2 + $0x8c] sm:$0x8]  ;;  %299 = vst [vmem:[#allocation2 + $0x88] sm:$0x1] %v298_v54 }
 0x134   : > { %v2313_v49 = vld [vmem:[#allocation3] sm:$0xff]  ;;  %v355_v23 = vsel %vm3657_vm9, 0, %v354_v22 }
 0x135   : > { %2016 = vst.msk [vmem:[#allocation3 + $0x8] sm:$0xff] %vm1653_vm0, %v1984_v21  ;;  %v2345_v5 = vadd.f32 %v2313_v49, %v2233_v45  ;;  %v1265_v63 = vpop.permute.xlu0 %1264 }
 0x136   : > { %v1364_v9 = vld [vmem:[#allocation2 + $0x5c] sm:$0xf]  ;;  %356 = vst [vmem:[#allocation2 + $0x8c] sm:$0x8] %v355_v23 }
 0x137   : > { %2377 = vst.msk [vmem:[#allocation3] sm:$0xff] %vm1653_vm0, %v2345_v5  ;;  %v1053_v10 = vld [vmem:[#allocation2 + $0x58] sm:$0xf]  ;;  %v1365_v57 = vsel %vm3920_vm7, %v1267_v40, %v1364_v9  ;;  %v3097_v5 = vld [vmem:[#allocation2 + $0x60] sm:$0xff] }
 0x138   : > { %v1054_v39 = vsel %vm3724_vm4, %v3989_v53, %v1053_v10  ;;  %1366 = vst [vmem:[#allocation2 + $0x5c] sm:$0xf] %v1365_v57  ;;  %v3116_v10 = vld [vmem:[#allocation2 + $0x78] sm:$0xff] }
 0x139   : > { %1055 = vst [vmem:[#allocation2 + $0x58] sm:$0xf] %v1054_v39  ;;  %v1583_v48 = vpop.f32.mrf.mxu0  ;;  %3057 = vmatmul.msk.bf16.gmra.mxu2 %vm1511_vm1, %v3111_v26  ;;  %v1954_v4 = vld [vmem:[#allocation3 + $0x18] sm:$0xff] }
 0x13a   : > { %v1876_v61 = vpop.f32.mrf.mxu1  ;;  %1363 = vst.msk [vmem:[#allocation2 + $0x58] sm:$0xf] %vm1320_vm6, %v1265_v63 }
 0x13b   : > { %1658 = vst.msk [vmem:[#allocation3 + $0x20] sm:$0xff] %vm1653_vm0, %v1583_v48  ;;  %v1985_v55 = vadd.f32 %v1953_v17, %v1876_v61  ;;  %v2235_v43 = vpop.f32.mrf.mxu2 }
 0x13c   : > { %v2314_v32 = vld [vmem:[#allocation3 + $0x8] sm:$0xff]  ;;  %2885 = vmatmul.msk.bf16.gmra.mxu0 %vm1511_vm1, %v3079_v59 }
 0x13d   : > { %2017 = vst.msk [vmem:[#allocation3 + $0x10] sm:$0xff] %vm1653_vm0, %v1985_v55  ;;  %2971 = vmatmul.msk.bf16.gmra.mxu1 %vm1511_vm1, %v3095_v7  ;;  %v2346_v2 = vadd.f32 %v2314_v32, %v2235_v43  ;;  %v3114_v55 = vld [vmem:[#allocation2 + $0x68] sm:$0xff] }
 0x13e   : > { %v4286_v53 = vld [vmem:[#allocation3] sm:$0xff] }
 0x13f   : > { %v2647_v14 = vpack.c.bf16 %v4286_v53, %v4286_v53  ;;  %2378 = vst.msk [vmem:[#allocation3 + $0x8] sm:$0xff] %vm1653_vm0, %v2346_v2  ;;  %2977 = vmatmul.msk.bf16.gmra.mxu3 %vm1511_vm1, %v3101_v38 }
 0x141   : > { %2679 = vst.msk [vmem:[%s4284_s26] sm:$0xf] %vm1009_vm14, %v2647_v14  ;;  %v1585_v3 = vpop.f32.mrf.mxu0  ;;  %v3112_v16 = vld [vmem:[#allocation2 + $0x58] sm:$0xff] }
 0x142   : > { %v1878_v62 = vpop.f32.mrf.mxu1  ;;  %1659 = vst.msk [vmem:[#allocation3 + $0x28] sm:$0xff] %vm1653_vm0, %v1585_v3  ;;  %v1633_v52 = vpop.f32.mrf.mxu3  ;;  %v3080_v33 = vld [vmem:[#allocation2 + $0x58] sm:$0xff]  ;;  %v1955_v35 = vld [vmem:[#allocation3 + $0x20] sm:$0xff] }
 0x143   : > { %v1986_v18 = vadd.f32 %v1954_v4, %v1878_v62  ;;  %1678 = vst.msk [vmem:[#allocation3 + $0xc0] sm:$0xff] %vm1653_vm0, %v1633_v52  ;;  %v2238_v50 = vpop.f32.mrf.mxu2  ;;  %v3096_v11 = vld [vmem:[#allocation2 + $0x58] sm:$0xff] }
 0x144   : > { %v2315_v20 = vld [vmem:[#allocation3 + $0x10] sm:$0xff] }
 0x145   : > { %2018 = vst.msk [vmem:[#allocation3 + $0x18] sm:$0xff] %vm1653_vm0, %v1986_v18  ;;  %v2347_v60 = vadd.f32 %v2315_v20, %v2238_v50  ;;  %v3117_v18 = vld [vmem:[#allocation2 + $0x80] sm:$0xff] }
 0x146   : > { %v4297_v31 = vld [vmem:[#allocation3 + $0x8] sm:$0xff] }
 0x147   : > { %v2648_v58 = vpack.c.bf16 %v4297_v31, %v4297_v31  ;;  %2379 = vst.msk [vmem:[#allocation3 + $0x10] sm:$0xff] %vm1653_vm0, %v2347_v60 }
 0x149   : > { %2680 = vst.msk [vmem:[%s4284_s26 + $0x4] sm:$0xf] %vm1009_vm14, %v2648_v58  ;;  %v1588_v19 = vpop.f32.mrf.mxu0  ;;  %3058 = vmatmul.msk.bf16.gmra.mxu2 %vm1511_vm1, %v3112_v16  ;;  %v1956_v51 = vld [vmem:[#allocation3 + $0x28] sm:$0xff] }
 0x14a   : > { %v1881_v25 = vpop.f32.mrf.mxu1  ;;  %1660 = vst.msk [vmem:[#allocation3 + $0x30] sm:$0xff] %vm1653_vm0, %v1588_v19  ;;  %v1635_v27 = vpop.f32.mrf.mxu3 }
 0x14b   : > { %v1987_v36 = vadd.f32 %v1955_v35, %v1881_v25  ;;  %1679 = vst.msk [vmem:[#allocation3 + $0xc8] sm:$0xff] %vm1653_vm0, %v1635_v27  ;;  %v2240_v46 = vpop.f32.mrf.mxu2 }
 0x14c   : > { %v2316_v42 = vld [vmem:[#allocation3 + $0x18] sm:$0xff]  ;;  %2886 = vmatmul.msk.bf16.gmra.mxu0 %vm1511_vm1, %v3080_v33 }
 0x14d   : > { %2019 = vst.msk [vmem:[#allocation3 + $0x20] sm:$0xff] %vm1653_vm0, %v1987_v36  ;;  %2972 = vmatmul.msk.bf16.gmra.mxu1 %vm1511_vm1, %v3096_v11  ;;  %v2348_v12 = vadd.f32 %v2316_v42, %v2240_v46  ;;  %v3118_v42 = vld [vmem:[#allocation2 + $0x88] sm:$0xff] }
 0x14e   : > { %v4310_v13 = vld [vmem:[#allocation3 + $0x10] sm:$0xff] }
 0x14f   : > { %v2649_v34 = vpack.c.bf16 %v4310_v13, %v4310_v13  ;;  %2380 = vst.msk [vmem:[#allocation3 + $0x18] sm:$0xff] %vm1653_vm0, %v2348_v12  ;;  %3061 = vmatmul.msk.bf16.vlgmr.msra.gmra.mxu3 %vm1511_vm1, %v3115_v41 }
 0x151   : > { %2681 = vst.msk [vmem:[%s4284_s26 + $0x8] sm:$0xf] %vm1009_vm14, %v2649_v34  ;;  %v1590_v47 = vpop.f32.mrf.mxu0  ;;  %v1957_v49 = vld [vmem:[#allocation3 + $0x30] sm:$0xff] }
 0x152   : > { %v1883_v0 = vpop.f32.mrf.mxu1  ;;  %1661 = vst.msk [vmem:[#allocation3 + $0x38] sm:$0xff] %vm1653_vm0, %v1590_v47 }
 0x153   : > { %v1988_v37 = vadd.f32 %v1956_v51, %v1883_v0  ;;  %v2243_v8 = vpop.f32.mrf.mxu2 }
 0x154   : > { %v2317_v24 = vld [vmem:[#allocation3 + $0x20] sm:$0xff] }
 0x155   : > { %2020 = vst.msk [vmem:[#allocation3 + $0x28] sm:$0xff] %vm1653_vm0, %v1988_v37  ;;  %v2349_v1 = vadd.f32 %v2317_v24, %v2243_v8 }
 0x156   : > { %v4320_v6 = vld [vmem:[#allocation3 + $0x18] sm:$0xff]  ;;  %v1638_v15 = vpop.f32.mrf.mxu3 }
 0x157   : > { %v2650_v44 = vpack.c.bf16 %v4320_v6, %v4320_v6  ;;  %2381 = vst.msk [vmem:[#allocation3 + $0x20] sm:$0xff] %vm1653_vm0, %v2349_v1 }
 0x158   : > { %1680 = vst.msk [vmem:[#allocation3 + $0xd0] sm:$0xff] %vm1653_vm0, %v1638_v15 }
 0x159   : > { %2682 = vst.msk [vmem:[%s4284_s26 + $0xc] sm:$0xf] %vm1009_vm14, %v2650_v44  ;;  %v1593_v21 = vpop.f32.mrf.mxu0  ;;  %3059 = vmatmul.msk.bf16.gmra.mxu2 %vm1511_vm1, %v3113_v28  ;;  %v1958_v7 = vld [vmem:[#allocation3 + $0x38] sm:$0xff] }
 0x15a   : > { %v1886_v45 = vpop.f32.mrf.mxu1  ;;  %1662 = vst.msk [vmem:[#allocation3 + $0x40] sm:$0xff] %vm1653_vm0, %v1593_v21 }
 0x15b   : > { %v1989_v40 = vadd.f32 %v1957_v49, %v1886_v45  ;;  %v2245_v26 = vpop.f32.mrf.mxu2 }
 0x15c   : > { %v2318_v9 = vld [vmem:[#allocation3 + $0x28] sm:$0xff] }
 0x15d   : > { %2021 = vst.msk [vmem:[#allocation3 + $0x30] sm:$0xff] %vm1653_vm0, %v1989_v40  ;;  %2973 = vmatmul.msk.bf16.gmra.mxu1 %vm1511_vm1, %v3097_v5  ;;  %v2350_v29 = vadd.f32 %v2318_v9, %v2245_v26 }
 0x15e   : > { %v4336_v30 = vld [vmem:[#allocation3 + $0x20] sm:$0xff]  ;;  %v1640_v63 = vpop.f32.mrf.mxu3 }
 0x15f   : > { %v2651_v57 = vpack.c.bf16 %v4336_v30, %v4336_v30  ;;  %2382 = vst.msk [vmem:[#allocation3 + $0x28] sm:$0xff] %vm1653_vm0, %v2350_v29  ;;  %3062 = vmatmul.msk.bf16.gmra.mxu3 %vm1511_vm1, %v3116_v10 }
 0x160   : > { %1681 = vst.msk [vmem:[#allocation3 + $0xd8] sm:$0xff] %vm1653_vm0, %v1640_v63 }
 0x161   : > { %2683 = vst.msk [vmem:[%s4284_s26 + $0x10] sm:$0xf] %vm1009_vm14, %v2651_v57  ;;  %v1595_v39 = vpop.f32.mrf.mxu0  ;;  %v1959_v38 = vld [vmem:[#allocation3 + $0x40] sm:$0xff] }
 0x162   : > { %v1888_v59 = vpop.f32.mrf.mxu1  ;;  %1663 = vst.msk [vmem:[#allocation3 + $0x48] sm:$0xff] %vm1653_vm0, %v1595_v39 }
 0x163   : > { %v1990_v48 = vadd.f32 %v1958_v7, %v1888_v59  ;;  %v1975_v7 = vld [vmem:[#allocation3 + $0xc0] sm:$0xff] }
 0x164   : > { %v2319_v3 = vld [vmem:[#allocation3 + $0x30] sm:$0xff] }
 0x165   : > { %2022 = vst.msk [vmem:[#allocation3 + $0x38] sm:$0xff] %vm1653_vm0, %v1990_v48 }
 0x166   : > { %v4347_v61 = vld [vmem:[#allocation3 + $0x28] sm:$0xff] }
 0x167   : > { %v2652_v17 = vpack.c.bf16 %v4347_v61, %v4347_v61 }
 0x169   : > { %2684 = vst.msk [vmem:[%s4284_s26 + $0x14] sm:$0xf] %vm1009_vm14, %v2652_v17  ;;  %v1598_v43 = vpop.f32.mrf.mxu0  ;;  %3060 = vmatmul.msk.bf16.gmra.mxu2 %vm1511_vm1, %v3114_v55  ;;  %v1960_v20 = vld [vmem:[#allocation3 + $0x48] sm:$0xff] }
 0x16a   : > { %v1891_v32 = vpop.f32.mrf.mxu1  ;;  %1664 = vst.msk [vmem:[#allocation3 + $0x50] sm:$0xff] %vm1653_vm0, %v1598_v43  ;;  %v2248_v14 = vpop.f32.mrf.mxu2 }
 0x16b   : > { %v1991_v2 = vadd.f32 %v1959_v38, %v1891_v32  ;;  %v2351_v62 = vadd.f32 %v2319_v3, %v2248_v14  ;;  %v1643_v4 = vpop.f32.mrf.mxu3 }
 0x16c   : > { %1682 = vst.msk [vmem:[#allocation3 + $0xe0] sm:$0xff] %vm1653_vm0, %v1643_v4  ;;  %v2320_v58 = vld [vmem:[#allocation3 + $0x38] sm:$0xff] }
 0x16d   : > { %2023 = vst.msk [vmem:[#allocation3 + $0x40] sm:$0xff] %vm1653_vm0, %v1991_v2 }
 0x16e   : > { %2383 = vst.msk [vmem:[#allocation3 + $0x30] sm:$0xff] %vm1653_vm0, %v2351_v62 }
 0x16f   : > { %3063 = vmatmul.msk.bf16.gmra.mxu3 %vm1511_vm1, %v3117_v18  ;;  %v1976_v18 = vld [vmem:[#allocation3 + $0xc8] sm:$0xff] }
 0x171   : > { %v1600_v52 = vpop.f32.mrf.mxu0  ;;  %v1961_v27 = vld [vmem:[#allocation3 + $0x50] sm:$0xff] }
 0x172   : > { %v1893_v50 = vpop.f32.mrf.mxu1  ;;  %1665 = vst.msk [vmem:[#allocation3 + $0x58] sm:$0xff] %vm1653_vm0, %v1600_v52  ;;  %v2250_v16 = vpop.f32.mrf.mxu2 }
 0x173   : > { %v1992_v60 = vadd.f32 %v1960_v20, %v1893_v50  ;;  %v2352_v33 = vadd.f32 %v2320_v58, %v2250_v16  ;;  %v1645_v11 = vpop.f32.mrf.mxu3 }
 0x174   : > { %1683 = vst.msk [vmem:[#allocation3 + $0xe8] sm:$0xff] %vm1653_vm0, %v1645_v11  ;;  %v2321_v34 = vld [vmem:[#allocation3 + $0x40] sm:$0xff] }
 0x175   : > { %v4360_v19 = vld [vmem:[#allocation3 + $0x30] sm:$0xff]  ;;  %2024 = vst.msk [vmem:[#allocation3 + $0x48] sm:$0xff] %vm1653_vm0, %v1992_v60 }
 0x176   : > { %v2653_v25 = vpack.c.bf16 %v4360_v19, %v4360_v19  ;;  %2384 = vst.msk [vmem:[#allocation3 + $0x38] sm:$0xff] %vm1653_vm0, %v2352_v33 }
 0x178   : > { %2685 = vst.msk [vmem:[%s4284_s26 + $0x18] sm:$0xf] %vm1009_vm14, %v2653_v25 }
 0x179   : > { %v1603_v35 = vpop.f32.mrf.mxu0  ;;  %v1962_v8 = vld [vmem:[#allocation3 + $0x58] sm:$0xff] }
 0x17a   : > { %v1896_v36 = vpop.f32.mrf.mxu1  ;;  %1666 = vst.msk [vmem:[#allocation3 + $0x60] sm:$0xff] %vm1653_vm0, %v1603_v35 }
 0x17b   : > { %v1993_v46 = vadd.f32 %v1961_v27, %v1896_v36  ;;  %v1977_v27 = vld [vmem:[#allocation3 + $0xd0] sm:$0xff] }
 0x17c   : > { %v2253_v41 = vpop.f32.mrf.mxu2  ;;  %v2322_v15 = vld [vmem:[#allocation3 + $0x48] sm:$0xff] }
 0x17d   : > { %v4370_v12 = vld [vmem:[#allocation3 + $0x38] sm:$0xff]  ;;  %2025 = vst.msk [vmem:[#allocation3 + $0x50] sm:$0xff] %vm1653_vm0, %v1993_v46  ;;  %v2353_v0 = vadd.f32 %v2321_v34, %v2253_v41 }
 0x17e   : > { %v2654_v47 = vpack.c.bf16 %v4370_v12, %v4370_v12 }
 0x17f   : > { %3064 = vmatmul.msk.bf16.gmra.mxu3 %vm1511_vm1, %v3118_v42  ;;  %2385 = vst.msk [vmem:[#allocation3 + $0x40] sm:$0xff] %vm1653_vm0, %v2353_v0 }
 0x180   : > { %2686 = vst.msk [vmem:[%s4284_s26 + $0x1c] sm:$0xf] %vm1009_vm14, %v2654_v47 }
 0x181   : > { %v1605_v51 = vpop.f32.mrf.mxu0  ;;  %v1963_v21 = vld [vmem:[#allocation3 + $0x60] sm:$0xff] }
 0x182   : > { %v1898_v37 = vpop.f32.mrf.mxu1  ;;  %1667 = vst.msk [vmem:[#allocation3 + $0x68] sm:$0xff] %vm1653_vm0, %v1605_v51  ;;  %v1648_v1 = vpop.f32.mrf.mxu3 }
 0x183   : > { %v1994_v24 = vadd.f32 %v1962_v8, %v1898_v37  ;;  %1684 = vst.msk [vmem:[#allocation3 + $0xf0] sm:$0xff] %vm1653_vm0, %v1648_v1 }
 0x184   : > { %v2255_v44 = vpop.f32.mrf.mxu2  ;;  %v2323_v5 = vld [vmem:[#allocation3 + $0x50] sm:$0xff] }
 0x185   : > { %2026 = vst.msk [vmem:[#allocation3 + $0x58] sm:$0xff] %vm1653_vm0, %v1994_v24  ;;  %v2354_v28 = vadd.f32 %v2322_v15, %v2255_v44  ;;  %v1978_v44 = vld [vmem:[#allocation3 + $0xd8] sm:$0xff] }
 0x186   : > { %v4382_v56 = vld [vmem:[#allocation3 + $0x40] sm:$0xff] }
 0x187   : > { %2386 = vst.msk [vmem:[#allocation3 + $0x48] sm:$0xff] %vm1653_vm0, %v2354_v28  ;;  %v2655_v22 = vpack.c.bf16 %v4382_v56, %v4382_v56 }
 0x189   : > { %v1608_v54 = vpop.f32.mrf.mxu0  ;;  %2687 = vst.msk [vmem:[%s4284_s26 + $0x20] sm:$0xf] %vm1009_vm14, %v2655_v22  ;;  %v1964_v63 = vld [vmem:[#allocation3 + $0x68] sm:$0xff] }
 0x18a   : > { %v1901_v23 = vpop.f32.mrf.mxu1  ;;  %v1650_v49 = vpop.f32.mrf.mxu3  ;;  %1668 = vst.msk [vmem:[#allocation3 + $0x70] sm:$0xff] %vm1653_vm0, %v1608_v54 }
 0x18b   : > { %v1995_v45 = vadd.f32 %v1963_v21, %v1901_v23  ;;  %1685 = vst.msk [vmem:[#allocation3 + $0xf8] sm:$0xff] %vm1653_vm0, %v1650_v49 }
 0x18c   : > { %v2258_v40 = vpop.f32.mrf.mxu2  ;;  %v2324_v55 = vld [vmem:[#allocation3 + $0x58] sm:$0xff] }
 0x18d   : > { %2027 = vst.msk [vmem:[#allocation3 + $0x60] sm:$0xff] %vm1653_vm0, %v1995_v45  ;;  %v2355_v26 = vadd.f32 %v2323_v5, %v2258_v40 }
 0x18e   : > { %v4392_v9 = vld [vmem:[#allocation3 + $0x48] sm:$0xff] }
 0x18f   : > { %v2656_v29 = vpack.c.bf16 %v4392_v9, %v4392_v9  ;;  %2387 = vst.msk [vmem:[#allocation3 + $0x50] sm:$0xff] %vm1653_vm0, %v2355_v26 }
 0x191   : > { %2688 = vst.msk [vmem:[%s4284_s26 + $0x24] sm:$0xf] %vm1009_vm14, %v2656_v29  ;;  %v1610_v10 = vpop.f32.mrf.mxu0  ;;  %v1965_v3 = vld [vmem:[#allocation3 + $0x70] sm:$0xff]  ;;  %v1979_v29 = vld [vmem:[#allocation3 + $0xe0] sm:$0xff] }
 0x192   : > { %v1903_v57 = vpop.f32.mrf.mxu1  ;;  %1669 = vst.msk [vmem:[#allocation3 + $0x78] sm:$0xff] %vm1653_vm0, %v1610_v10  ;;  %v1931_v59 = vpop.f32.mrf.mxu3 }
 0x193   : > { %v1996_v39 = vadd.f32 %v1964_v63, %v1903_v57  ;;  %v2007_v48 = vadd.f32 %v1975_v7, %v1931_v59 }
 0x194   : > { %v2260_v17 = vpop.f32.mrf.mxu2  ;;  %v2325_v20 = vld [vmem:[#allocation3 + $0x60] sm:$0xff] }
 0x195   : > { %2028 = vst.msk [vmem:[#allocation3 + $0x68] sm:$0xff] %vm1653_vm0, %v1996_v39  ;;  %v2356_v43 = vadd.f32 %v2324_v55, %v2260_v17 }
 0x196   : > { %2039 = vst.msk [vmem:[#allocation3 + $0xc0] sm:$0xff] %vm1653_vm0, %v2007_v48  ;;  %v4402_v32 = vld [vmem:[#allocation3 + $0x50] sm:$0xff] }
 0x197   : > { %v2657_v38 = vpack.c.bf16 %v4402_v32, %v4402_v32  ;;  %2388 = vst.msk [vmem:[#allocation3 + $0x58] sm:$0xff] %vm1653_vm0, %v2356_v43 }
 0x199   : > { %2689 = vst.msk [vmem:[%s4284_s26 + $0x28] sm:$0xf] %vm1009_vm14, %v2657_v38  ;;  %v1613_v2 = vpop.f32.mrf.mxu0  ;;  %v1966_v25 = vld [vmem:[#allocation3 + $0x78] sm:$0xff] }
 0x19a   : > { %v1906_v14 = vpop.f32.mrf.mxu1  ;;  %1670 = vst.msk [vmem:[#allocation3 + $0x80] sm:$0xff] %vm1653_vm0, %v1613_v2  ;;  %v1933_v4 = vpop.f32.mrf.mxu3  ;;  %v1980_v2 = vld [vmem:[#allocation3 + $0xe8] sm:$0xff] }
 0x19b   : > { %v1997_v62 = vadd.f32 %v1965_v3, %v1906_v14  ;;  %v2008_v52 = vadd.f32 %v1976_v18, %v1933_v4 }
 0x19c   : > { %v2263_v50 = vpop.f32.mrf.mxu2  ;;  %v2326_v41 = vld [vmem:[#allocation3 + $0x68] sm:$0xff] }
 0x19d   : > { %2029 = vst.msk [vmem:[#allocation3 + $0x70] sm:$0xff] %vm1653_vm0, %v1997_v62  ;;  %v2357_v60 = vadd.f32 %v2325_v20, %v2263_v50 }
 0x19e   : > { %2040 = vst.msk [vmem:[#allocation3 + $0xc8] sm:$0xff] %vm1653_vm0, %v2008_v52  ;;  %v4412_v16 = vld [vmem:[#allocation3 + $0x58] sm:$0xff] }
 0x19f   : > { %v2658_v58 = vpack.c.bf16 %v4412_v16, %v4412_v16  ;;  %2389 = vst.msk [vmem:[#allocation3 + $0x60] sm:$0xff] %vm1653_vm0, %v2357_v60 }
 0x1a1   : > { %2690 = vst.msk [vmem:[%s4284_s26 + $0x2c] sm:$0xf] %vm1009_vm14, %v2658_v58  ;;  %v1615_v33 = vpop.f32.mrf.mxu0  ;;  %v1967_v8 = vld [vmem:[#allocation3 + $0x80] sm:$0xff] }
 0x1a2   : > { %v1908_v11 = vpop.f32.mrf.mxu1  ;;  %1671 = vst.msk [vmem:[#allocation3 + $0x88] sm:$0xff] %vm1653_vm0, %v1615_v33  ;;  %v1936_v36 = vpop.f32.mrf.mxu3 }
 0x1a3   : > { %v1998_v35 = vadd.f32 %v1966_v25, %v1908_v11  ;;  %v2009_v46 = vadd.f32 %v1977_v27, %v1936_v36  ;;  %v1981_v11 = vld [vmem:[#allocation3 + $0xf0] sm:$0xff] }
 0x1a4   : > { %v2265_v42 = vpop.f32.mrf.mxu2  ;;  %v2327_v22 = vld [vmem:[#allocation3 + $0x70] sm:$0xff] }
 0x1a5   : > { %2030 = vst.msk [vmem:[#allocation3 + $0x78] sm:$0xff] %vm1653_vm0, %v1998_v35  ;;  %v2358_v34 = vadd.f32 %v2326_v41, %v2265_v42 }
 0x1a6   : > { %2041 = vst.msk [vmem:[#allocation3 + $0xd0] sm:$0xff] %vm1653_vm0, %v2009_v46  ;;  %v4422_v47 = vld [vmem:[#allocation3 + $0x60] sm:$0xff] }
 0x1a7   : > { %v2659_v0 = vpack.c.bf16 %v4422_v47, %v4422_v47  ;;  %2390 = vst.msk [vmem:[#allocation3 + $0x68] sm:$0xff] %vm1653_vm0, %v2358_v34 }
 0x1a9   : > { %2691 = vst.msk [vmem:[%s4284_s26 + $0x30] sm:$0xf] %vm1009_vm14, %v2659_v0  ;;  %v1618_v51 = vpop.f32.mrf.mxu0  ;;  %v1968_v40 = vld [vmem:[#allocation3 + $0x88] sm:$0xff] }
 0x1aa   : > { %v1911_v37 = vpop.f32.mrf.mxu1  ;;  %1672 = vst.msk [vmem:[#allocation3 + $0x90] sm:$0xff] %vm1653_vm0, %v1618_v51  ;;  %v1938_v1 = vpop.f32.mrf.mxu3 }
 0x1ab   : > { %v1999_v24 = vadd.f32 %v1967_v8, %v1911_v37  ;;  %v2010_v15 = vadd.f32 %v1978_v44, %v1938_v1  ;;  %v1982_v8 = vld [vmem:[#allocation3 + $0xf8] sm:$0xff] }
 0x1ac   : > { %v2268_v28 = vpop.f32.mrf.mxu2  ;;  %v2328_v63 = vld [vmem:[#allocation3 + $0x78] sm:$0xff] }
 0x1ad   : > { %2031 = vst.msk [vmem:[#allocation3 + $0x80] sm:$0xff] %vm1653_vm0, %v1999_v24  ;;  %v2359_v54 = vadd.f32 %v2327_v22, %v2268_v28 }
 0x1ae   : > { %2042 = vst.msk [vmem:[#allocation3 + $0xd8] sm:$0xff] %vm1653_vm0, %v2010_v15  ;;  %v4432_v23 = vld [vmem:[#allocation3 + $0x68] sm:$0xff] }
 0x1af   : > { %v2660_v21 = vpack.c.bf16 %v4432_v23, %v4432_v23  ;;  %2391 = vst.msk [vmem:[#allocation3 + $0x70] sm:$0xff] %vm1653_vm0, %v2359_v54 }
 0x1b1   : > { %2692 = vst.msk [vmem:[%s4284_s26 + $0x34] sm:$0xf] %vm1009_vm14, %v2660_v21  ;;  %v1620_v45 = vpop.f32.mrf.mxu0  ;;  %v1969_v55 = vld [vmem:[#allocation3 + $0x90] sm:$0xff] }
 0x1b2   : > { %v1913_v49 = vpop.f32.mrf.mxu1  ;;  %1673 = vst.msk [vmem:[#allocation3 + $0x98] sm:$0xff] %vm1653_vm0, %v1620_v45  ;;  %v1941_v26 = vpop.f32.mrf.mxu3 }
 0x1b3   : > { %v2000_v5 = vadd.f32 %v1968_v40, %v1913_v49  ;;  %v2011_v10 = vadd.f32 %v1979_v29, %v1941_v26  ;;  %v2442_v49 = vsel %vm1653_vm0, %v4297_v31, 0.0  ;;  %v2337_v26 = vld [vmem:[#allocation3 + $0xc0] sm:$0xff] }
 0x1b4   : > { %v2270_v57 = vpop.f32.mrf.mxu2  ;;  %v2329_v62 = vld [vmem:[#allocation3 + $0x80] sm:$0xff] }
 0x1b5   : > { %2032 = vst.msk [vmem:[#allocation3 + $0x88] sm:$0xff] %vm1653_vm0, %v2000_v5  ;;  %v2360_v39 = vadd.f32 %v2328_v63, %v2270_v57  ;;  %v2444_v57 = vsel %vm1653_vm0, %v4310_v13, 0.0 }
 0x1b6   : > { %2043 = vst.msk [vmem:[#allocation3 + $0xe0] sm:$0xff] %vm1653_vm0, %v2011_v10  ;;  %v4442_v59 = vld [vmem:[#allocation3 + $0x70] sm:$0xff]  ;;  %v2441_v10 = vsel %vm1653_vm0, %v4286_v53, 0.0 }
 0x1b7   : > { %v2661_v7 = vpack.c.bf16 %v4442_v59, %v4442_v59  ;;  %2392 = vst.msk [vmem:[#allocation3 + $0x78] sm:$0xff] %vm1653_vm0, %v2360_v39 }
 0x1b9   : > { %2693 = vst.msk [vmem:[%s4284_s26 + $0x38] sm:$0xf] %vm1009_vm14, %v2661_v7  ;;  %v1623_v48 = vpop.f32.mrf.mxu0  ;;  %v1970_v60 = vld [vmem:[#allocation3 + $0x98] sm:$0xff]  ;;  %v2443_v7 = vadd.f32 %v2442_v49, %v2441_v10  ;;  %v2460_v49 = vsel %vm1653_vm0, %v4402_v32, 0.0 }
 0x1ba   : > { %v1916_v17 = vpop.f32.mrf.mxu1  ;;  %1674 = vst.msk [vmem:[#allocation3 + $0xa0] sm:$0xff] %vm1653_vm0, %v1623_v48  ;;  %v1943_v38 = vpop.f32.mrf.mxu3 }
 0x1bb   : > { %v2001_v43 = vadd.f32 %v1969_v55, %v1916_v17  ;;  %v2012_v14 = vadd.f32 %v1980_v2, %v1943_v38  ;;  %v2446_v17 = vsel %vm1653_vm0, %v4320_v6, 0.0  ;;  %v2448_v2 = vsel %vm1653_vm0, %v4336_v30, 0.0 }
 0x1bc   : > { %v2273_v3 = vpop.f32.mrf.mxu2  ;;  %v2330_v36 = vld [vmem:[#allocation3 + $0x88] sm:$0xff] }
 0x1bd   : > { %2033 = vst.msk [vmem:[#allocation3 + $0x90] sm:$0xff] %vm1653_vm0, %v2001_v43  ;;  %v2361_v4 = vadd.f32 %v2329_v62, %v2273_v3  ;;  %v2445_v43 = vadd.f32 %v2444_v57, %v2443_v7 }
 0x1be   : > { %2044 = vst.msk [vmem:[#allocation3 + $0xe8] sm:$0xff] %vm1653_vm0, %v2012_v14  ;;  %v4452_v18 = vld [vmem:[#allocation3 + $0x78] sm:$0xff] }
 0x1bf   : > { %v2662_v52 = vpack.c.bf16 %v4452_v18, %v4452_v18  ;;  %2393 = vst.msk [vmem:[#allocation3 + $0x80] sm:$0xff] %vm1653_vm0, %v2361_v4  ;;  %v2447_v14 = vadd.f32 %v2446_v17, %v2445_v43  ;;  %v2450_v4 = vsel %vm1653_vm0, %v4347_v61, 0.0 }
 0x1c1   : > { %2694 = vst.msk [vmem:[%s4284_s26 + $0x3c] sm:$0xf] %vm1009_vm14, %v2662_v52  ;;  %v1625_v50 = vpop.f32.mrf.mxu0  ;;  %v1971_v0 = vld [vmem:[#allocation3 + $0xa0] sm:$0xff] }
 0x1c2   : > { %v1918_v20 = vpop.f32.mrf.mxu1  ;;  %1675 = vst.msk [vmem:[#allocation3 + $0xa8] sm:$0xff] %vm1653_vm0, %v1625_v50  ;;  %v1946_v33 = vpop.f32.mrf.mxu3 }
 0x1c3   : > { %v2002_v58 = vadd.f32 %v1970_v60, %v1918_v20  ;;  %v2013_v25 = vadd.f32 %v1981_v11, %v1946_v33  ;;  %v2338_v20 = vld [vmem:[#allocation3 + $0xc8] sm:$0xff]  ;;  %v2449_v60 = vadd.f32 %v2448_v2, %v2447_v14  ;;  %v2452_v33 = vsel %vm1653_vm0, %v4360_v19, 0.0  ;;  %v2340_v14 = vld [vmem:[#allocation3 + $0xd8] sm:$0xff] }
 0x1c4   : > { %v2275_v35 = vpop.f32.mrf.mxu2  ;;  %v2331_v44 = vld [vmem:[#allocation3 + $0x90] sm:$0xff] }
 0x1c5   : > { %2034 = vst.msk [vmem:[#allocation3 + $0x98] sm:$0xff] %vm1653_vm0, %v2002_v58  ;;  %v2362_v27 = vadd.f32 %v2330_v36, %v2275_v35  ;;  %v2451_v36 = vadd.f32 %v2450_v4, %v2449_v60  ;;  %v2468_v4 = vsel %vm1653_vm0, %v4442_v59, 0.0 }
 0x1c6   : > { %2045 = vst.msk [vmem:[#allocation3 + $0xf0] sm:$0xff] %vm1653_vm0, %v2013_v25  ;;  %v4462_v46 = vld [vmem:[#allocation3 + $0x80] sm:$0xff] }
 0x1c7   : > { %v2663_v42 = vpack.c.bf16 %v4462_v46, %v4462_v46  ;;  %2394 = vst.msk [vmem:[#allocation3 + $0x88] sm:$0xff] %vm1653_vm0, %v2362_v27 }
 0x1c9   : > { %2695 = vst.msk [vmem:[%s4284_s26 + $0x40] sm:$0xf] %vm1009_vm14, %v2663_v42  ;;  %v1628_v41 = vpop.f32.mrf.mxu0  ;;  %v1972_v45 = vld [vmem:[#allocation3 + $0xa8] sm:$0xff] }
 0x1ca   : > { %v1921_v34 = vpop.f32.mrf.mxu1  ;;  %1676 = vst.msk [vmem:[#allocation3 + $0xb0] sm:$0xff] %vm1653_vm0, %v1628_v41  ;;  %v1948_v37 = vpop.f32.mrf.mxu3  ;;  %v2454_v41 = vsel %vm1653_vm0, %v4370_v12, 0.0 }
 0x1cb   : > { %v2003_v51 = vadd.f32 %v1971_v0, %v1921_v34  ;;  %v2014_v24 = vadd.f32 %v1982_v8, %v1948_v37  ;;  %v2453_v0 = vadd.f32 %v2452_v33, %v2451_v36  ;;  %v2456_v37 = vsel %vm1653_vm0, %v4382_v56, 0.0 }
 0x1cc   : > { %v2278_v1 = vpop.f32.mrf.mxu2  ;;  %v2332_v39 = vld [vmem:[#allocation3 + $0x98] sm:$0xff] }
 0x1cd   : > { %2035 = vst.msk [vmem:[#allocation3 + $0xa0] sm:$0xff] %vm1653_vm0, %v2003_v51  ;;  %v2363_v15 = vadd.f32 %v2331_v44, %v2278_v1  ;;  %v2455_v8 = vadd.f32 %v2454_v41, %v2453_v0  ;;  %v2458_v44 = vsel %vm1653_vm0, %v4392_v9, 0.0 }
 0x1ce   : > { %2046 = vst.msk [vmem:[#allocation3 + $0xf8] sm:$0xff] %vm1653_vm0, %v2014_v24  ;;  %v4472_v28 = vld [vmem:[#allocation3 + $0x88] sm:$0xff] }
 0x1cf   : > { %v2664_v22 = vpack.c.bf16 %v4472_v28, %v4472_v28  ;;  %2395 = vst.msk [vmem:[#allocation3 + $0x90] sm:$0xff] %vm1653_vm0, %v2363_v15  ;;  %v2474_v0 = vsel %vm1653_vm0, %v4472_v28, 0.0 }
 0x1d1   : > { %2696 = vst.msk [vmem:[%s4284_s26 + $0x44] sm:$0xf] %vm1009_vm14, %v2664_v22  ;;  %v1630_v54 = vpop.f32.mrf.mxu0  ;;  %v1973_v62 = vld [vmem:[#allocation3 + $0xb0] sm:$0xff] }
 0x1d2   : > { %v1923_v21 = vpop.f32.mrf.mxu1  ;;  %1677 = vst.msk [vmem:[#allocation3 + $0xb8] sm:$0xff] %vm1653_vm0, %v1630_v54  ;;  %v2293_v5 = vpop.f32.mrf.mxu3  ;;  %v2339_v54 = vld [vmem:[#allocation3 + $0xd0] sm:$0xff] }
 0x1d3   : > { %v2004_v40 = vadd.f32 %v1972_v45, %v1923_v21  ;;  %v2369_v29 = vadd.f32 %v2337_v26, %v2293_v5  ;;  %v2457_v21 = vadd.f32 %v2456_v37, %v2455_v8  ;;  %v2341_v37 = vld [vmem:[#allocation3 + $0xe0] sm:$0xff] }
 0x1d4   : > { %v2280_v63 = vpop.f32.mrf.mxu2  ;;  %v2333_v35 = vld [vmem:[#allocation3 + $0xa0] sm:$0xff] }
 0x1d5   : > { %2036 = vst.msk [vmem:[#allocation3 + $0xa8] sm:$0xff] %vm1653_vm0, %v2004_v40  ;;  %v2364_v48 = vadd.f32 %v2332_v39, %v2280_v63  ;;  %v2462_v63 = vsel %vm1653_vm0, %v4412_v16, 0.0 }
 0x1d6   : > { %2401 = vst.msk [vmem:[#allocation3 + $0xc0] sm:$0xff] %vm1653_vm0, %v2369_v29  ;;  %v4490_v55 = vld [vmem:[#allocation3 + $0x90] sm:$0xff]  ;;  %v2459_v29 = vadd.f32 %v2458_v44, %v2457_v21 }
 0x1d7   : > { %v2665_v38 = vpack.c.bf16 %v4490_v55, %v4490_v55  ;;  %2396 = vst.msk [vmem:[#allocation3 + $0x98] sm:$0xff] %vm1653_vm0, %v2364_v48  ;;  %v2464_v48 = vsel %vm1653_vm0, %v4422_v47, 0.0 }
 0x1d8   : > { %v2461_v39 = vadd.f32 %v2460_v49, %v2459_v29 }
 0x1d9   : > { %2697 = vst.msk [vmem:[%s4284_s26 + $0x48] sm:$0xf] %vm1009_vm14, %v2665_v38  ;;  %v1974_v1 = vld [vmem:[#allocation3 + $0xb8] sm:$0xff]  ;;  %v2466_v38 = vsel %vm1653_vm0, %v4432_v23, 0.0 }
 0x1da   : > { %v1926_v3 = vpop.f32.mrf.mxu1  ;;  %v2295_v50 = vpop.f32.mrf.mxu3  ;;  %v2463_v43 = vadd.f32 %v2462_v63, %v2461_v39 }
 0x1db   : > { %v2005_v52 = vadd.f32 %v1973_v62, %v1926_v3  ;;  %v2370_v58 = vadd.f32 %v2338_v20, %v2295_v50 }
 0x1dc   : > { %v2283_v25 = vpop.f32.mrf.mxu2  ;;  %v2334_v26 = vld [vmem:[#allocation3 + $0xa8] sm:$0xff]  ;;  %v2465_v3 = vadd.f32 %v2464_v48, %v2463_v43 }
 0x1dd   : > { %v4503_v11 = vld [vmem:[#allocation3 + $0xc0] sm:$0xff]  ;;  %2037 = vst.msk [vmem:[#allocation3 + $0xb0] sm:$0xff] %vm1653_vm0, %v2005_v52  ;;  %v2365_v42 = vadd.f32 %v2333_v35, %v2283_v25  ;;  %v2470_v25 = vsel %vm1653_vm0, %v4452_v18, 0.0  ;;  %v2342_v48 = vld [vmem:[#allocation3 + $0xe8] sm:$0xff] }
 0x1de   : > { %v2671_v27 = vpack.c.bf16 %v4503_v11, %v4503_v11  ;;  %2402 = vst.msk [vmem:[#allocation3 + $0xc8] sm:$0xff] %vm1653_vm0, %v2370_v58  ;;  %v4511_v34 = vld [vmem:[#allocation3 + $0x98] sm:$0xff]  ;;  %v2467_v60 = vadd.f32 %v2466_v38, %v2465_v3 }
 0x1df   : > { %v2666_v51 = vpack.c.bf16 %v4511_v34, %v4511_v34  ;;  %2397 = vst.msk [vmem:[#allocation3 + $0xa0] sm:$0xff] %vm1653_vm0, %v2365_v42  ;;  %v2478_v49 = vsel %vm1653_vm0, %v4511_v34, 0.0 }
 0x1e0   : > { %2703 = vst.msk [vmem:[%s4284_s26 + $0x60] sm:$0xf] %vm1009_vm14, %v2671_v27  ;;  %v2469_v35 = vadd.f32 %v2468_v4, %v2467_v60  ;;  %v2472_v27 = vsel %vm1653_vm0, %v4462_v46, 0.0 }
 0x1e1   : > { %2698 = vst.msk [vmem:[%s4284_s26 + $0x4c] sm:$0xf] %vm1009_vm14, %v2666_v51 }
 0x1e2   : > { %v1928_v24 = vpop.f32.mrf.mxu1  ;;  %v2298_v22 = vpop.f32.mrf.mxu3  ;;  %v2471_v41 = vadd.f32 %v2470_v25, %v2469_v35  ;;  %v2343_v25 = vld [vmem:[#allocation3 + $0xf0] sm:$0xff] }
 0x1e3   : > { %v2006_v15 = vadd.f32 %v1974_v1, %v1928_v24  ;;  %v2371_v45 = vadd.f32 %v2339_v54, %v2298_v22  ;;  %v2476_v1 = vsel %vm1653_vm0, %v4490_v55, 0.0 }
 0x1e4   : > { %v2285_v5 = vpop.f32.mrf.mxu2  ;;  %v2335_v20 = vld [vmem:[#allocation3 + $0xb0] sm:$0xff]  ;;  %v2473_v8 = vadd.f32 %v2472_v27, %v2471_v41 }
 0x1e5   : > { %v4526_v40 = vld [vmem:[#allocation3 + $0xc8] sm:$0xff]  ;;  %2038 = vst.msk [vmem:[#allocation3 + $0xb8] sm:$0xff] %vm1653_vm0, %v2006_v15  ;;  %v2366_v57 = vadd.f32 %v2334_v26, %v2285_v5 }
 0x1e6   : > { %v2672_v10 = vpack.c.bf16 %v4526_v40, %v4526_v40  ;;  %2403 = vst.msk [vmem:[#allocation3 + $0xd0] sm:$0xff] %vm1653_vm0, %v2371_v45  ;;  %v4536_v7 = vld [vmem:[#allocation3 + $0xa0] sm:$0xff]  ;;  %v2475_v54 = vadd.f32 %v2474_v0, %v2473_v8 }
 0x1e7   : > { %v2667_v17 = vpack.c.bf16 %v4536_v7, %v4536_v7  ;;  %2398 = vst.msk [vmem:[#allocation3 + $0xa8] sm:$0xff] %vm1653_vm0, %v2366_v57  ;;  %v2480_v29 = vsel %vm1653_vm0, %v4536_v7, 0.0 }
 0x1e8   : > { %2704 = vst.msk [vmem:[%s4284_s26 + $0x64] sm:$0xf] %vm1009_vm14, %v2672_v10  ;;  %v2477_v5 = vadd.f32 %v2476_v1, %v2475_v54 }
 0x1e9   : > { %2699 = vst.msk [vmem:[%s4284_s26 + $0x50] sm:$0xf] %vm1009_vm14, %v2667_v17 }
 0x1ea   : > { %v2300_v2 = vpop.f32.mrf.mxu3  ;;  %v2479_v57 = vadd.f32 %v2478_v49, %v2477_v5 }
 0x1eb   : > { %v2372_v62 = vadd.f32 %v2340_v14, %v2300_v2 }
 0x1ec   : > { %v2288_v50 = vpop.f32.mrf.mxu2  ;;  %v2336_v22 = vld [vmem:[#allocation3 + $0xb8] sm:$0xff]  ;;  %v2481_v17 = vadd.f32 %v2480_v29, %v2479_v57 }
 0x1ed   : > { %v4549_v52 = vld [vmem:[#allocation3 + $0xd0] sm:$0xff]  ;;  %2404 = vst.msk [vmem:[#allocation3 + $0xd8] sm:$0xff] %vm1653_vm0, %v2372_v62  ;;  %v2367_v33 = vadd.f32 %v2335_v20, %v2288_v50 }
 0x1ee   : > { %v2673_v58 = vpack.c.bf16 %v4549_v52, %v4549_v52  ;;  %v4558_v36 = vld [vmem:[#allocation3 + $0xa8] sm:$0xff] }
 0x1ef   : > { %v2668_v42 = vpack.c.bf16 %v4558_v36, %v4558_v36  ;;  %2399 = vst.msk [vmem:[#allocation3 + $0xb0] sm:$0xff] %vm1653_vm0, %v2367_v33  ;;  %v2482_v63 = vsel %vm1653_vm0, %v4558_v36, 0.0 }
 0x1f0   : > { %2705 = vst.msk [vmem:[%s4284_s26 + $0x68] sm:$0xf] %vm1009_vm14, %v2673_v58  ;;  %v2483_v14 = vadd.f32 %v2482_v63, %v2481_v17  ;;  %v2488_v58 = vsel %vm1653_vm0, %v4503_v11, 0.0 }
 0x1f1   : > { %2700 = vst.msk [vmem:[%s4284_s26 + $0x54] sm:$0xf] %vm1009_vm14, %v2668_v42  ;;  %v2490_v42 = vsel %vm1653_vm0, %v4526_v40, 0.0 }
 0x1f2   : > { %v2303_v51 = vpop.f32.mrf.mxu3 }
 0x1f3   : > { %v2373_v24 = vadd.f32 %v2341_v37, %v2303_v51  ;;  %v2492_v37 = vsel %vm1653_vm0, %v4549_v52, 0.0 }
 0x1f4   : > { %v4571_v44 = vld [vmem:[#allocation3 + $0xd8] sm:$0xff]  ;;  %v2290_v15 = vpop.f32.mrf.mxu2 }
 0x1f5   : > { %v2674_v21 = vpack.c.bf16 %v4571_v44, %v4571_v44  ;;  %2405 = vst.msk [vmem:[#allocation3 + $0xe0] sm:$0xff] %vm1653_vm0, %v2373_v24  ;;  %v2368_v45 = vadd.f32 %v2336_v22, %v2290_v15  ;;  %v2494_v24 = vsel %vm1653_vm0, %v4571_v44, 0.0  ;;  %v2344_v22 = vld [vmem:[#allocation3 + $0xf8] sm:$0xff] }
 0x1f6   : > { %v4580_v26 = vld [vmem:[#allocation3 + $0xb0] sm:$0xff] }
 0x1f7   : > { %2706 = vst.msk [vmem:[%s4284_s26 + $0x6c] sm:$0xf] %vm1009_vm14, %v2674_v21  ;;  %v2669_v10 = vpack.c.bf16 %v4580_v26, %v4580_v26  ;;  %v2484_v38 = vsel %vm1653_vm0, %v4580_v26, 0.0 }
 0x1f8   : > { %2400 = vst.msk [vmem:[#allocation3 + $0xb8] sm:$0xff] %vm1653_vm0, %v2368_v45  ;;  %v2485_v62 = vadd.f32 %v2484_v38, %v2483_v14 }
 0x1f9   : > { %2701 = vst.msk [vmem:[%s4284_s26 + $0x58] sm:$0xf] %vm1009_vm14, %v2669_v10 }
 0x1fa   : > { %v2305_v39 = vpop.f32.mrf.mxu3 }
 0x1fb   : > { %v2374_v43 = vadd.f32 %v2342_v48, %v2305_v39 }
 0x1fc   : > { %v4593_v2 = vld [vmem:[#allocation3 + $0xe0] sm:$0xff] }
 0x1fd   : > { %v2675_v3 = vpack.c.bf16 %v4593_v2, %v4593_v2  ;;  %2406 = vst.msk [vmem:[#allocation3 + $0xe8] sm:$0xff] %vm1653_vm0, %v2374_v43  ;;  %v2496_v54 = vsel %vm1653_vm0, %v4593_v2, 0.0 }
 0x1ff   : > { %2707 = vst.msk [vmem:[%s4284_s26 + $0x70] sm:$0xf] %vm1009_vm14, %v2675_v3  ;;  %v4600_v4 = vld [vmem:[#allocation3 + $0xb8] sm:$0xff] }
 0x200   : > { %v2486_v50 = vsel %vm1653_vm0, %v4600_v4, 0.0  ;;  %v2670_v20 = vpack.c.bf16 %v4600_v4, %v4600_v4 }
 0x201   : > { %v2487_v60 = vadd.f32 %v2486_v50, %v2485_v62 }
 0x202   : > { %2702 = vst.msk [vmem:[%s4284_s26 + $0x5c] sm:$0xf] %vm1009_vm14, %v2670_v20  ;;  %v2308_v33 = vpop.f32.mrf.mxu3 }
 0x203   : > { %v2489_v35 = vadd.f32 %v2488_v58, %v2487_v60  ;;  %v2375_v27 = vadd.f32 %v2343_v25, %v2308_v33 }
 0x204   : > { %v4612_v41 = vld [vmem:[#allocation3 + $0xe8] sm:$0xff] }
 0x205   : > { %v2491_v0 = vadd.f32 %v2490_v42, %v2489_v35  ;;  %v2676_v51 = vpack.c.bf16 %v4612_v41, %v4612_v41  ;;  %2407 = vst.msk [vmem:[#allocation3 + $0xf0] sm:$0xff] %vm1653_vm0, %v2375_v27  ;;  %v2498_v29 = vsel %vm1653_vm0, %v4612_v41, 0.0 }
 0x207   : > { %v2493_v8 = vadd.f32 %v2492_v37, %v2491_v0  ;;  %2708 = vst.msk [vmem:[%s4284_s26 + $0x74] sm:$0xf] %vm1009_vm14, %v2676_v51 }
 0x209   : > { %v2495_v1 = vadd.f32 %v2494_v24, %v2493_v8 }
 0x20a   : > { %v2310_v15 = vpop.f32.mrf.mxu3 }
 0x20b   : > { %v2376_v21 = vadd.f32 %v2344_v22, %v2310_v15  ;;  %v2497_v45 = vadd.f32 %v2496_v54, %v2495_v1 }
 0x20c   : > { %v4625_v49 = vld [vmem:[#allocation3 + $0xf0] sm:$0xff] }
 0x20d   : > { %v2677_v5 = vpack.c.bf16 %v4625_v49, %v4625_v49  ;;  %2408 = vst.msk [vmem:[#allocation3 + $0xf8] sm:$0xff] %vm1653_vm0, %v2376_v21  ;;  %v2499_v10 = vadd.f32 %v2498_v29, %v2497_v45  ;;  %v2500_v57 = vsel %vm1653_vm0, %v4625_v49, 0.0 }
 0x20f   : > { %2709 = vst.msk [vmem:[%s4284_s26 + $0x78] sm:$0xf] %vm1009_vm14, %v2677_v5  ;;  %v2501_v63 = vadd.f32 %v2500_v57, %v2499_v10 }
 0x214   : > { %v4636_v39 = vld [vmem:[#allocation3 + $0xf8] sm:$0xff] }
 0x215   : > { %v2502_v48 = vsel %vm1653_vm0, %v4636_v39, 0.0  ;;  %v2678_v17 = vpack.c.bf16 %v4636_v39, %v4636_v39 }
 0x216   : > { %v2503_v43 = vadd.f32 %v2502_v48, %v2501_v63 }
 0x217   : > { %2710 = vst.msk [vmem:[%s4284_s26 + $0x7c] sm:$0xf] %vm1009_vm14, %v2678_v17 }
 0x218   : > { %v2504_v38 = vrot.slane %v2503_v43, 4 }
 0x21a   : > { %v2505_v14 = vadd.f32 %v2504_v38, %v2503_v43 }
 0x21c   : > { %v2506_v3 = vrot.slane %v2505_v14, 2 }
 0x21e   : > { %v2507_v62 = vadd.f32 %v2506_v3, %v2505_v14 }
 0x220   : > { %v2508_v50 = vrot.slane %v2507_v62, 1 }
 0x222   : > { %v2509_v20 = vadd.f32 %v2508_v50, %v2507_v62 }
 0x224   : > { %2645 = vst.msk [vmem:[%s4648_s29] sm:$0x1] %vm243_vm3, %v2509_v20  ;;  %v4652_v60 = vmul.f32 0.00390625, %v2509_v20 }
 0x226   : > { %v2511_v58 = vsub.f32 %v4286_v53, %v4652_v60  ;;  %v2512_v33 = vsub.f32 %v4297_v31, %v4652_v60  ;;  %v2513_v25 = vsub.f32 %v4310_v13, %v4652_v60  ;;  %v2514_v35 = vsub.f32 %v4320_v6, %v4652_v60 }
 0x227   : > { %v2515_v0 = vsub.f32 %v4336_v30, %v4652_v60  ;;  %v2516_v37 = vsub.f32 %v4347_v61, %v4652_v60  ;;  %v2517_v13 = vsub.f32 %v4360_v19, %v4652_v60  ;;  %v2518_v30 = vsub.f32 %v4370_v12, %v4652_v60 }
 0x228   : > { %v2543_v27 = vmul.f32 %v2511_v58, %v2511_v58  ;;  %v2544_v42 = vmul.f32 %v2512_v33, %v2512_v33  ;;  %v2545_v51 = vmul.f32 %v2513_v25, %v2513_v25  ;;  %v2546_v8 = vmul.f32 %v2514_v35, %v2514_v35 }
 0x229   : > { %v2547_v1 = vmul.f32 %v2515_v0, %v2515_v0  ;;  %v2548_v22 = vmul.f32 %v2516_v37, %v2516_v37  ;;  %v2519_v21 = vsub.f32 %v4382_v56, %v4652_v60  ;;  %v2549_v45 = vmul.f32 %v2517_v13, %v2517_v13 }
 0x22a   : > { %v2575_v53 = vsel %vm1653_vm0, %v2543_v27, 0.0  ;;  %v2576_v31 = vsel %vm1653_vm0, %v2544_v42, 0.0  ;;  %v2578_v6 = vsel %vm1653_vm0, %v2545_v51, 0.0  ;;  %v2580_v54 = vsel %vm1653_vm0, %v2546_v8, 0.0 }
 0x22b   : > { %v2577_v24 = vadd.f32 %v2576_v31, %v2575_v53  ;;  %v2582_v5 = vsel %vm1653_vm0, %v2547_v1, 0.0  ;;  %v2520_v19 = vsub.f32 %v4392_v9, %v4652_v60  ;;  %v2550_v10 = vmul.f32 %v2518_v30, %v2518_v30 }
 0x22c   : > { %v2584_v57 = vsel %vm1653_vm0, %v2548_v22, 0.0  ;;  %v2521_v12 = vsub.f32 %v4402_v32, %v4652_v60  ;;  %v2551_v48 = vmul.f32 %v2519_v21, %v2519_v21  ;;  %v2586_v17 = vsel %vm1653_vm0, %v2549_v45, 0.0 }
 0x22d   : > { %v2579_v15 = vadd.f32 %v2578_v6, %v2577_v24  ;;  %v2522_v56 = vsub.f32 %v4412_v16, %v4652_v60  ;;  %v2552_v38 = vmul.f32 %v2520_v19, %v2520_v19  ;;  %v2588_v14 = vsel %vm1653_vm0, %v2550_v10, 0.0 }
 0x22e   : > { %v2523_v9 = vsub.f32 %v4422_v47, %v4652_v60  ;;  %v2553_v62 = vmul.f32 %v2521_v12, %v2521_v12  ;;  %v2590_v50 = vsel %vm1653_vm0, %v2551_v48, 0.0  ;;  %v2524_v32 = vsub.f32 %v4432_v23, %v4652_v60 }
 0x22f   : > { %v2581_v61 = vadd.f32 %v2580_v54, %v2579_v15  ;;  %v2554_v58 = vmul.f32 %v2522_v56, %v2522_v56  ;;  %v2592_v33 = vsel %vm1653_vm0, %v2552_v38, 0.0  ;;  %v2525_v16 = vsub.f32 %v4442_v59, %v4652_v60 }
 0x230   : > { %v2555_v35 = vmul.f32 %v2523_v9, %v2523_v9  ;;  %v2594_v27 = vsel %vm1653_vm0, %v2553_v62, 0.0  ;;  %v2526_v47 = vsub.f32 %v4452_v18, %v4652_v60  ;;  %v2556_v0 = vmul.f32 %v2524_v32, %v2524_v32 }
 0x231   : > { %v2583_v29 = vadd.f32 %v2582_v5, %v2581_v61  ;;  %v2596_v51 = vsel %vm1653_vm0, %v2554_v58, 0.0  ;;  %v2527_v23 = vsub.f32 %v4462_v46, %v4652_v60  ;;  %v2557_v8 = vmul.f32 %v2525_v16, %v2525_v16 }
 0x232   : > { %v2598_v53 = vsel %vm1653_vm0, %v2555_v35, 0.0  ;;  %v2528_v59 = vsub.f32 %v4472_v28, %v4652_v60  ;;  %v2558_v24 = vmul.f32 %v2526_v47, %v2526_v47  ;;  %v2600_v13 = vsel %vm1653_vm0, %v2556_v0, 0.0 }
 0x233   : > { %v2585_v63 = vadd.f32 %v2584_v57, %v2583_v29  ;;  %v2529_v18 = vsub.f32 %v4490_v55, %v4652_v60  ;;  %v2559_v6 = vmul.f32 %v2527_v23, %v2527_v23  ;;  %v2602_v15 = vsel %vm1653_vm0, %v2557_v8, 0.0 }
 0x234   : > { %v2530_v46 = vsub.f32 %v4511_v34, %v4652_v60  ;;  %v2560_v22 = vmul.f32 %v2528_v59, %v2528_v59  ;;  %v2604_v54 = vsel %vm1653_vm0, %v2558_v24, 0.0  ;;  %v2531_v28 = vsub.f32 %v4536_v7, %v4652_v60 }
 0x235   : > { %v2587_v43 = vadd.f32 %v2586_v17, %v2585_v63  ;;  %v2561_v21 = vmul.f32 %v2529_v18, %v2529_v18  ;;  %v2606_v45 = vsel %vm1653_vm0, %v2559_v6, 0.0  ;;  %v2532_v55 = vsub.f32 %v4558_v36, %v4652_v60 }
 0x236   : > { %v2562_v29 = vmul.f32 %v2530_v46, %v2530_v46  ;;  %v2608_v19 = vsel %vm1653_vm0, %v2560_v22, 0.0  ;;  %v2533_v34 = vsub.f32 %v4580_v26, %v4652_v60  ;;  %v2563_v57 = vmul.f32 %v2531_v28, %v2531_v28 }
 0x237   : > { %v2589_v3 = vadd.f32 %v2588_v14, %v2587_v43  ;;  %v2610_v63 = vsel %vm1653_vm0, %v2561_v21, 0.0  ;;  %v2534_v7 = vsub.f32 %v4600_v4, %v4652_v60  ;;  %v2564_v48 = vmul.f32 %v2532_v55, %v2532_v55 }
 0x238   : > { %v2612_v17 = vsel %vm1653_vm0, %v2562_v29, 0.0  ;;  %v2535_v36 = vsub.f32 %v4503_v11, %v4652_v60  ;;  %v2565_v56 = vmul.f32 %v2533_v34, %v2533_v34  ;;  %v2614_v38 = vsel %vm1653_vm0, %v2563_v57, 0.0 }
 0x239   : > { %v2591_v20 = vadd.f32 %v2590_v50, %v2589_v3  ;;  %v2536_v26 = vsub.f32 %v4526_v40, %v4652_v60  ;;  %v2566_v3 = vmul.f32 %v2534_v7, %v2534_v7  ;;  %v2616_v9 = vsel %vm1653_vm0, %v2564_v48, 0.0 }
 0x23a   : > { %v2537_v4 = vsub.f32 %v4549_v52, %v4652_v60  ;;  %v2567_v50 = vmul.f32 %v2535_v36, %v2535_v36  ;;  %v2538_v11 = vsub.f32 %v4571_v44, %v4652_v60  ;;  %v2539_v40 = vsub.f32 %v4593_v2, %v4652_v60 }
 0x23b   : > { %v2593_v25 = vadd.f32 %v2592_v33, %v2591_v20  ;;  %v2618_v20 = vsel %vm1653_vm0, %v2565_v56, 0.0  ;;  %v2568_v58 = vmul.f32 %v2536_v26, %v2536_v26  ;;  %v2620_v33 = vsel %vm1653_vm0, %v2566_v3, 0.0 }
 0x23c   : > { %v2569_v16 = vmul.f32 %v2537_v4, %v2537_v4  ;;  %v2622_v35 = vsel %vm1653_vm0, %v2567_v50, 0.0  ;;  %v2540_v52 = vsub.f32 %v4612_v41, %v4652_v60  ;;  %v2541_v44 = vsub.f32 %v4625_v49, %v4652_v60 }
 0x23d   : > { %v2595_v42 = vadd.f32 %v2594_v27, %v2593_v25  ;;  %v2624_v47 = vsel %vm1653_vm0, %v2568_v58, 0.0  ;;  %v2542_v2 = vsub.f32 %v4636_v39, %v4652_v60 }
 0x23e   : > { %v2572_v8 = vmul.f32 %v2540_v52, %v2540_v52  ;;  %v2573_v59 = vmul.f32 %v2541_v44, %v2541_v44 }
 0x23f   : > { %v2597_v37 = vadd.f32 %v2596_v51, %v2595_v42  ;;  %v2570_v42 = vmul.f32 %v2538_v11, %v2538_v11  ;;  %v2571_v51 = vmul.f32 %v2539_v40, %v2539_v40 }
 0x240   : > { %v2634_v18 = vsel %vm1653_vm0, %v2573_v59, 0.0 }
 0x241   : > { %v2599_v31 = vadd.f32 %v2598_v53, %v2597_v37  ;;  %v2626_v37 = vsel %vm1653_vm0, %v2569_v16, 0.0  ;;  %v2628_v53 = vsel %vm1653_vm0, %v2570_v42, 0.0  ;;  %v2630_v41 = vsel %vm1653_vm0, %v2571_v51, 0.0 }
 0x243   : > { %v2601_v1 = vadd.f32 %v2600_v13, %v2599_v31  ;;  %v2574_v13 = vmul.f32 %v2542_v2, %v2542_v2 }
 0x245   : > { %v2603_v30 = vadd.f32 %v2602_v15, %v2601_v1  ;;  %v2632_v1 = vsel %vm1653_vm0, %v2572_v8, 0.0  ;;  %v2636_v15 = vsel %vm1653_vm0, %v2574_v13, 0.0 }
 0x247   : > { %v2605_v61 = vadd.f32 %v2604_v54, %v2603_v30 }
 0x249   : > { %v2607_v5 = vadd.f32 %v2606_v45, %v2605_v61 }
 0x24b   : > { %v2609_v10 = vadd.f32 %v2608_v19, %v2607_v5 }
 0x24d   : > { %v2611_v12 = vadd.f32 %v2610_v63, %v2609_v10 }
 0x24f   : > { %v2613_v43 = vadd.f32 %v2612_v17, %v2611_v12 }
 0x251   : > { %v2615_v14 = vadd.f32 %v2614_v38, %v2613_v43 }
 0x253   : > { %v2617_v62 = vadd.f32 %v2616_v9, %v2615_v14 }
 0x255   : > { %v2619_v32 = vadd.f32 %v2618_v20, %v2617_v62 }
 0x257   : > { %v2621_v25 = vadd.f32 %v2620_v33, %v2619_v32 }
 0x259   : > { %v2623_v27 = vadd.f32 %v2622_v35, %v2621_v25 }
 0x25b   : > { %v2625_v0 = vadd.f32 %v2624_v47, %v2623_v27 }
 0x25d   : > { %v2627_v23 = vadd.f32 %v2626_v37, %v2625_v0 }
 0x25f   : > { %v2629_v31 = vadd.f32 %v2628_v53, %v2627_v23 }
 0x261   : > { %v2631_v24 = vadd.f32 %v2630_v41, %v2629_v31 }
 0x263   : > { %v2633_v49 = vadd.f32 %v2632_v1, %v2631_v24 }
 0x265   : > { %v2635_v6 = vadd.f32 %v2634_v18, %v2633_v49 }
 0x267   : > { %v2637_v30 = vadd.f32 %v2636_v15, %v2635_v6 }
 0x269   : > { %v2638_v39 = vrot.slane %v2637_v30, 4 }
 0x26b   : > { %v2639_v60 = vadd.f32 %v2638_v39, %v2637_v30 }
 0x26d   : > { %v2640_v46 = vrot.slane %v2639_v60, 2 }
 0x26f   : > { %v2641_v22 = vadd.f32 %v2640_v46, %v2639_v60 }
 0x271   : > { %v2642_v54 = vrot.slane %v2641_v22, 1 }
 0x273   : > { %v2643_v61 = vadd.f32 %v2642_v54, %v2641_v22 }
 0x275   : > { %2646 = vst.msk [vmem:[%s4648_s29 + $0x1] sm:$0x1] %vm243_vm3, %v2643_v61 }
 0x276 PF: > { %s16_s18 = sadd.s32 1, %s3226_s18  }
 0x277   : > { %p13_p4 = scmp.ge.s32.totalorder %s16_s18, 4  }
 0x279   :  { %15 = sbr.rel (!%p13_p4) target bundleno = 1 (0x1), region = 83 }

</bundles_post_ra>
